<compile_context>
chip_gen: v6e
topology: v6e:2x2x1
jax: 0.10.0
libtpu: 0.0.40
codegen_flags: <defaults>
</compile_context>

<pallas_src>
import jax
import jax.numpy as jnp
from jax.experimental import pallas as pl
from jax.experimental.pallas import tpu as pltpu


# ---------------------------------------------------------------------------
# Model dimensions (TPU-tile friendly: feature dim = 2*128 so the coupling
# halves are 128-lane aligned; the batch is tiled by the grid)
# ---------------------------------------------------------------------------
B = 256          # total batch
D = 256          # feature dim (lane axis, multiple of 2*128)
DH = D // 2      # coupling half
H = 128          # coupling-MLP hidden dim


# ---------------------------------------------------------------------------
# Chip detection -> tile / precision policy (per review: v5e vs v6e vs v7x)
# ---------------------------------------------------------------------------
def _device_kind() -> str:
    try:
        return jax.devices()[0].device_kind.lower()
    except Exception:
        return ""


def _is_v7x() -> bool:
    return "7" in _device_kind()            # e.g. "tpu7x"


def _use_bf16_eup() -> bool:
    # bf16 EUP/VPU exists on v6e and v7x; v5e (and unknown backends) stay f32.
    k = _device_kind()
    return ("v6" in k) or ("7" in k)


def _pick_batch_tile(bsz: int) -> int:
    # v7x has 2 TensorCores per chip -> keep >= 2 "parallel" grid steps so both
    # cores get a tile; single-TC v5e/v6e prefer the fattest tile (fewest steps).
    min_steps = 2 if _is_v7x() else 1
    tb = min(256, bsz)
    while tb > 8 and (bsz % tb != 0 or bsz // tb < min_steps):
        tb //= 2
    assert bsz % tb == 0 and tb % 8 == 0, "batch must tile into multiples of 8"
    return tb


# ---------------------------------------------------------------------------
# Pallas kernel: full FlowModel forward for one batch tile
# ---------------------------------------------------------------------------
def _make_flow_kernel(tb: int, act_dtype):
    """act_dtype = dtype of the coupling-MLP activations / transcendentals
    (bf16 on v6e/v7x per review, f32 otherwise)."""

    def kernel(z_ref,                       # (tb, D) f32 latent tile
               exp_ls_ref, bias_ref,        # (1, D)  f32 ActNorm exp(log_scale) / bias
               w1a_ref, b1a_ref,            # (DH,H) bf16, (1,H) act  coupling-1 layer 1
               w2a_ref, b2a_ref,            # (H, D) bf16, (1,D) act  coupling-1 layer 2
               w1b_ref, b1b_ref,            # (DH,H) bf16, (1,H) act  coupling-2 layer 1
               w2b_ref, b2b_ref,            # (H, D) bf16, (1,D) act  coupling-2 layer 2
               zout_ref,                    # (tb, D) f32 transformed latent
               ldj_ref):                    # (1, tb) f32 lane-dense ldj row
        bf16 = jnp.bfloat16

        # ---- layer 1: ActNorm (exp(ls) precomputed; sum(ls) added in wrapper)
        z = z_ref[...] * exp_ls_ref[...] + bias_ref[...]          # (tb, D) f32

        def coupling(z_cond, z_trans, w1, b1, w2, b2):
            # MLP(z_cond) -> (s, t);  z_trans' = z_trans * exp(s) + t
            h = jnp.dot(z_cond.astype(bf16), w1[...],
                        preferred_element_type=act_dtype) + b1[...]
            h = jnp.maximum(h, 0.0)                               # ReLU (act_dtype)
            st = jnp.dot(h.astype(bf16), w2[...],
                         preferred_element_type=act_dtype) + b2[...]
            s = jnp.tanh(st[:, :DH])                              # bounded log-scale
            t = st[:, DH:]
            z_new = z_trans * jnp.exp(s) + t                      # promotes to f32
            # ldj row-sum accumulated in f32 (review correctness note)
            ldj_c = jnp.sum(s.astype(jnp.float32), axis=-1, keepdims=True)
            return z_new, ldj_c

        # ---- layer 2: affine coupling (conditions on first half) -----------
        z1 = z[:, :DH]
        z2 = z[:, DH:]
        z2, ldj1 = coupling(z1, z2, w1a_ref, b1a_ref, w2a_ref, b2a_ref)

        # ---- layer 3: flip permutation (volume preserving, ldj += 0) -------
        za, zb = z2, z1

        # ---- layer 4: affine coupling (conditions on new first half) -------
        zb, ldj2 = coupling(za, zb, w1b_ref, b1b_ref, w2b_ref, b2b_ref)

        # 128-lane-aligned half stores (no concatenate -> no VMEM copy)
        zout_ref[:, :DH] = za
        zout_ref[:, DH:] = zb

        # Lane-dense (1, tb) ldj row: broadcast the per-row column across the
        # 128 lanes, transpose once on the XLU, store a single unmasked row.
        ldj_col = ldj1 + ldj2                                     # (tb, 1) f32
        ldj_row = jnp.transpose(jnp.broadcast_to(ldj_col, (tb, 128)))[:1, :]
        ldj_ref[...] = ldj_row                                    # (1, tb)

    return kernel


# ---------------------------------------------------------------------------
# Wrapper
# ---------------------------------------------------------------------------
def flow_model_forward(z, params, tb=None, use_bf16_eup=None):
    """Returns (z_out, ldj) exactly like FlowModel.forward(z) (reverse=False)."""
    bsz, d = z.shape
    assert d == D
    if tb is None:
        tb = _pick_batch_tile(bsz)
    if use_bf16_eup is None:
        use_bf16_eup = _use_bf16_eup()
    act_dt = jnp.bfloat16 if use_bf16_eup else jnp.float32
    bf16 = jnp.bfloat16
    grid = (bsz // tb,)

    # Hoisted ActNorm constants; the scalar sum(ls) is added to the (B,) ldj in
    # the wrapper -> no SMEM scalar, no per-step broadcast (review item).
    exp_ls = jnp.exp(params["ls"])                                # (1, D) f32
    args = (
        z,
        exp_ls, params["bias"],
        params["w1a"].astype(bf16), params["b1a"].astype(act_dt),
        params["w2a"].astype(bf16), params["b2a"].astype(act_dt),
        params["w1b"].astype(bf16), params["b1b"].astype(act_dt),
        params["w2b"].astype(bf16), params["b2b"].astype(act_dt),
    )

    kernel = _make_flow_kernel(tb, act_dt)
    out_shape = (
        jax.ShapeDtypeStruct((bsz, D), jnp.float32),              # z_out
        jax.ShapeDtypeStruct((1, bsz), jnp.float32),              # lane-dense ldj row
    )
    out_specs = (
        pl.BlockSpec((tb, D), lambda i: (i, 0)),                  # z_out tile
        pl.BlockSpec((1, tb), lambda i: (0, i)),                  # ldj row slice
    )
    z_spec = pl.BlockSpec((tb, D), lambda i: (i, 0))

    def build(single_buffer_weights):
        def resident(a):  # VMEM-resident across all grid steps (constant index_map)
            if single_buffer_weights:
                return pl.BlockSpec(a.shape, lambda i: (0, 0),
                                    pipeline_mode=pl.Buffered(1))
            return pl.BlockSpec(a.shape, lambda i: (0, 0))
        in_specs = [z_spec] + [resident(a) for a in args[1:]]
        return pl.pallas_call(
            kernel,
            out_shape=out_shape,
            grid=grid,
            in_specs=in_specs,
            out_specs=out_specs,
            compiler_params=pltpu.CompilerParams(
                dimension_semantics=("parallel",)),   # 2x on v7x's two TensorCores
        )

    try:
        # Constant-index weight blocks don't need double buffering (review item).
        z_out, ldj_row = build(True)(*args)
    except Exception:
        # Some jax versions reject buffer_count=1; fall back to default buffering.
        z_out, ldj_row = build(False)(*args)

    ldj = ldj_row[0] + jnp.sum(params["ls"])                      # + ActNorm ldj (scalar)
    return z_out, ldj


# ---------------------------------------------------------------------------
# Pure-JAX reference (mirrors the per-layer PyTorch semantics).  mm_dtype /
# act_dtype allow it to mirror the kernel's precision policy; the defaults
# give the true f32 semantics.
# ---------------------------------------------------------------------------
def flow_model_reference(z, p, mm_dtype=jnp.float32, act_dtype=jnp.float32):
    def coupling(z_cond, z_trans, w1, b1, w2, b2):
        h = jnp.dot(z_cond.astype(mm_dtype), w1.astype(mm_dtype),
                    preferred_element_type=act_dtype) + b1.astype(act_dtype)
        h = jnp.maximum(h, 0.0)
        st = jnp.dot(h.astype(mm_dtype), w2.astype(mm_dtype),
                     preferred_element_type=act_dtype) + b2.astype(act_dtype)
        s = jnp.tanh(st[:, :DH])
        t = st[:, DH:]
        z_new = z_trans * jnp.exp(s) + t
        return z_new, jnp.sum(s.astype(jnp.float32), axis=-1)

    z = z * jnp.exp(p["ls"]) + p["bias"]                          # ActNorm
    z1, z2 = z[:, :DH], z[:, DH:]
    z2, l1 = coupling(z1, z2, p["w1a"], p["b1a"], p["w2a"], p["b2a"])
    za, zb = z2, z1                                               # flip
    zb, l2 = coupling(za, zb, p["w1b"], p["b1b"], p["w2b"], p["b2b"])
    ldj = (l1 + l2) + jnp.sum(p["ls"])
    return jnp.concatenate([za, zb], axis=-1), ldj


# ---------------------------------------------------------------------------
# Deterministic parameter init + run
# ---------------------------------------------------------------------------
def make_params(key):
    ks = jax.random.split(key, 8)
    sc = 0.05  # small weights -> well-conditioned flow, no NaNs
    return {
        "ls":   sc * jax.random.normal(ks[0], (1, D), jnp.float32),
        "bias": sc * jax.random.normal(ks[1], (1, D), jnp.float32),
        "w1a":  sc * jax.random.normal(ks[2], (DH, H), jnp.float32),
        "b1a":  jnp.zeros((1, H), jnp.float32),
        "w2a":  sc * jax.random.normal(ks[3], (H, D), jnp.float32),
        "b2a":  jnp.zeros((1, D), jnp.float32),
        "w1b":  sc * jax.random.normal(ks[4], (DH, H), jnp.float32),
        "b1b":  jnp.zeros((1, H), jnp.float32),
        "w2b":  sc * jax.random.normal(ks[5], (H, D), jnp.float32),
        "b2b":  jnp.zeros((1, D), jnp.float32),
    }


if __name__ == "__main__":
    key = jax.random.PRNGKey(0)
    params = make_params(key)
    z = jax.random.normal(jax.random.fold_in(key, 42), (B, D), jnp.float32)

    use_bf16_eup = _use_bf16_eup()
    z_out, ldj = flow_model_forward(z, params)
    jax.block_until_ready((z_out, ldj))

    # NaN guard (mirrors FlowModel's per-layer assert).
    assert jnp.isnan(z_out).sum() == 0, "Found NaN latent values"

    # Check 1: reference matched to the kernel's precision policy (tight).
    act_dt = jnp.bfloat16 if use_bf16_eup else jnp.float32
    z_m, ldj_m = flow_model_reference(z, params, mm_dtype=jnp.bfloat16, act_dtype=act_dt)
    if use_bf16_eup:
        z_tol, ldj_atol, ldj_rtol = 5e-2, 5e-1, 5e-2     # bf16 EUP impl may differ by ~ulps
    else:
        z_tol, ldj_atol, ldj_rtol = 2e-4, 2e-4, 2e-4
    assert jnp.allclose(z_out, z_m, atol=z_tol, rtol=z_tol), "z mismatch (matched ref)"
    assert jnp.allclose(ldj, ldj_m, atol=ldj_atol, rtol=ldj_rtol), "ldj mismatch (matched ref)"

    # Check 2: true f32 PyTorch semantics (loose sanity bound: bf16 matmuls /
    # bf16 transcendentals are a deliberate precision trade).
    z_f, ldj_f = flow_model_reference(z, params)
    assert jnp.allclose(z_out, z_f, atol=1e-1, rtol=5e-2), "z mismatch (f32 ref)"
    assert jnp.allclose(ldj, ldj_f, atol=1.0, rtol=1e-1), "ldj mismatch (f32 ref)"

    print("KERNEL_OK")
</pallas_src>

<mosaic_0001>
module attributes {stable_mosaic.version = 11 : i64} {
  func.func @kernel(%arg0: i32, %arg1: memref<256x256xf32, #tpu.memory_space<vmem>>, %arg2: memref<1x256xf32, #tpu.memory_space<vmem>>, %arg3: memref<1x256xf32, #tpu.memory_space<vmem>>, %arg4: memref<128x128xbf16, #tpu.memory_space<vmem>>, %arg5: memref<1x128xf32, #tpu.memory_space<vmem>>, %arg6: memref<128x256xbf16, #tpu.memory_space<vmem>>, %arg7: memref<1x256xf32, #tpu.memory_space<vmem>>, %arg8: memref<128x128xbf16, #tpu.memory_space<vmem>>, %arg9: memref<1x128xf32, #tpu.memory_space<vmem>>, %arg10: memref<128x256xbf16, #tpu.memory_space<vmem>>, %arg11: memref<1x256xf32, #tpu.memory_space<vmem>>, %arg12: memref<256x256xf32, #tpu.memory_space<vmem>>, %arg13: memref<1x256xf32, #tpu.memory_space<vmem>>) attributes {dimension_semantics = [#tpu.dimension_semantics<parallel>], iteration_bounds = array<i64: 1>, scalar_prefetch = 0 : i64, scratch_operands = 0 : i64, tpu.core_type = #tpu.core_type<tc>, window_params = [{transform_indices = @transform_0, window_bounds = array<i64: 256, 256>}, {pipeline_mode = #tpu.pipeline_mode<synchronous>, transform_indices = @transform_1, window_bounds = array<i64: 1, 256>}, {pipeline_mode = #tpu.pipeline_mode<synchronous>, transform_indices = @transform_2, window_bounds = array<i64: 1, 256>}, {pipeline_mode = #tpu.pipeline_mode<synchronous>, transform_indices = @transform_3, window_bounds = array<i64: 128, 128>}, {pipeline_mode = #tpu.pipeline_mode<synchronous>, transform_indices = @transform_4, window_bounds = array<i64: 1, 128>}, {pipeline_mode = #tpu.pipeline_mode<synchronous>, transform_indices = @transform_5, window_bounds = array<i64: 128, 256>}, {pipeline_mode = #tpu.pipeline_mode<synchronous>, transform_indices = @transform_6, window_bounds = array<i64: 1, 256>}, {pipeline_mode = #tpu.pipeline_mode<synchronous>, transform_indices = @transform_7, window_bounds = array<i64: 128, 128>}, {pipeline_mode = #tpu.pipeline_mode<synchronous>, transform_indices = @transform_8, window_bounds = array<i64: 1, 128>}, {pipeline_mode = #tpu.pipeline_mode<synchronous>, transform_indices = @transform_9, window_bounds = array<i64: 128, 256>}, {pipeline_mode = #tpu.pipeline_mode<synchronous>, transform_indices = @transform_10, window_bounds = array<i64: 1, 256>}, {transform_indices = @transform_11, window_bounds = array<i64: 256, 256>}, {transform_indices = @transform_12, window_bounds = array<i64: 1, 256>}]} {
    %c0 = arith.constant 0 : index
    %c0_0 = arith.constant 0 : index
    %0 = vector.load %arg1[%c0, %c0_0] : memref<256x256xf32, #tpu.memory_space<vmem>>, vector<256x256xf32>
    %c0_1 = arith.constant 0 : index
    %c0_2 = arith.constant 0 : index
    %1 = vector.load %arg2[%c0_1, %c0_2] : memref<1x256xf32, #tpu.memory_space<vmem>>, vector<1x256xf32>
    %2 = vector.broadcast %1 : vector<1x256xf32> to vector<256x256xf32>
    %3 = arith.mulf %0, %2 : vector<256x256xf32>
    %c0_3 = arith.constant 0 : index
    %c0_4 = arith.constant 0 : index
    %4 = vector.load %arg3[%c0_3, %c0_4] : memref<1x256xf32, #tpu.memory_space<vmem>>, vector<1x256xf32>
    %5 = vector.broadcast %4 : vector<1x256xf32> to vector<256x256xf32>
    %6 = arith.addf %3, %5 : vector<256x256xf32>
    %7 = vector.extract_strided_slice %6 {offsets = [0, 0], sizes = [256, 128], strides = [1, 1]} : vector<256x256xf32> to vector<256x128xf32>
    %8 = vector.extract_strided_slice %6 {offsets = [0, 128], sizes = [256, 128], strides = [1, 1]} : vector<256x256xf32> to vector<256x128xf32>
    %9 = arith.truncf %7 : vector<256x128xf32> to vector<256x128xbf16>
    %c0_5 = arith.constant 0 : index
    %c0_6 = arith.constant 0 : index
    %10 = vector.load %arg4[%c0_5, %c0_6] : memref<128x128xbf16, #tpu.memory_space<vmem>>, vector<128x128xbf16>
    %cst = arith.constant dense<0.000000e+00> : vector<256x128xf32>
    %11 = tpu.matmul %9, %10, %cst {dimension_numbers = #tpu.dot_dimension_numbers<[1], [0], [0], [1], [0, 0, 1, 1], [], []>} : vector<256x128xbf16>, vector<128x128xbf16>, vector<256x128xf32> -> vector<256x128xf32>
    %c0_7 = arith.constant 0 : index
    %c0_8 = arith.constant 0 : index
    %12 = vector.load %arg5[%c0_7, %c0_8] : memref<1x128xf32, #tpu.memory_space<vmem>>, vector<1x128xf32>
    %13 = vector.broadcast %12 : vector<1x128xf32> to vector<256x128xf32>
    %14 = arith.addf %11, %13 : vector<256x128xf32>
    %cst_9 = arith.constant 0.000000e+00 : f32
    %15 = vector.broadcast %cst_9 : f32 to vector<256x128xf32>
    %16 = arith.maximumf %14, %15 : vector<256x128xf32>
    %17 = arith.truncf %16 : vector<256x128xf32> to vector<256x128xbf16>
    %c0_10 = arith.constant 0 : index
    %c0_11 = arith.constant 0 : index
    %18 = vector.load %arg6[%c0_10, %c0_11] : memref<128x256xbf16, #tpu.memory_space<vmem>>, vector<128x256xbf16>
    %cst_12 = arith.constant dense<0.000000e+00> : vector<256x256xf32>
    %19 = tpu.matmul %17, %18, %cst_12 {dimension_numbers = #tpu.dot_dimension_numbers<[1], [0], [0], [1], [0, 0, 1, 1], [], []>} : vector<256x128xbf16>, vector<128x256xbf16>, vector<256x256xf32> -> vector<256x256xf32>
    %c0_13 = arith.constant 0 : index
    %c0_14 = arith.constant 0 : index
    %20 = vector.load %arg7[%c0_13, %c0_14] : memref<1x256xf32, #tpu.memory_space<vmem>>, vector<1x256xf32>
    %21 = vector.broadcast %20 : vector<1x256xf32> to vector<256x256xf32>
    %22 = arith.addf %19, %21 : vector<256x256xf32>
    %23 = vector.extract_strided_slice %22 {offsets = [0, 0], sizes = [256, 128], strides = [1, 1]} : vector<256x256xf32> to vector<256x128xf32>
    %24 = math.tanh %23 : vector<256x128xf32>
    %25 = vector.extract_strided_slice %22 {offsets = [0, 128], sizes = [256, 128], strides = [1, 1]} : vector<256x256xf32> to vector<256x128xf32>
    %26 = math.exp %24 : vector<256x128xf32>
    %27 = arith.mulf %8, %26 : vector<256x128xf32>
    %28 = arith.addf %27, %25 : vector<256x128xf32>
    %cst_15 = arith.constant dense<0.000000e+00> : vector<256xf32>
    %29 = vector.multi_reduction <add>, %24, %cst_15 [1] : vector<256x128xf32> to vector<256xf32>
    %30 = vector.shape_cast %29 : vector<256xf32> to vector<256x1xf32>
    %31 = arith.truncf %28 : vector<256x128xf32> to vector<256x128xbf16>
    %c0_16 = arith.constant 0 : index
    %c0_17 = arith.constant 0 : index
    %32 = vector.load %arg8[%c0_16, %c0_17] : memref<128x128xbf16, #tpu.memory_space<vmem>>, vector<128x128xbf16>
    %cst_18 = arith.constant dense<0.000000e+00> : vector<256x128xf32>
    %33 = tpu.matmul %31, %32, %cst_18 {dimension_numbers = #tpu.dot_dimension_numbers<[1], [0], [0], [1], [0, 0, 1, 1], [], []>} : vector<256x128xbf16>, vector<128x128xbf16>, vector<256x128xf32> -> vector<256x128xf32>
    %c0_19 = arith.constant 0 : index
    %c0_20 = arith.constant 0 : index
    %34 = vector.load %arg9[%c0_19, %c0_20] : memref<1x128xf32, #tpu.memory_space<vmem>>, vector<1x128xf32>
    %35 = vector.broadcast %34 : vector<1x128xf32> to vector<256x128xf32>
    %36 = arith.addf %33, %35 : vector<256x128xf32>
    %cst_21 = arith.constant 0.000000e+00 : f32
    %37 = vector.broadcast %cst_21 : f32 to vector<256x128xf32>
    %38 = arith.maximumf %36, %37 : vector<256x128xf32>
    %39 = arith.truncf %38 : vector<256x128xf32> to vector<256x128xbf16>
    %c0_22 = arith.constant 0 : index
    %c0_23 = arith.constant 0 : index
    %40 = vector.load %arg10[%c0_22, %c0_23] : memref<128x256xbf16, #tpu.memory_space<vmem>>, vector<128x256xbf16>
    %cst_24 = arith.constant dense<0.000000e+00> : vector<256x256xf32>
    %41 = tpu.matmul %39, %40, %cst_24 {dimension_numbers = #tpu.dot_dimension_numbers<[1], [0], [0], [1], [0, 0, 1, 1], [], []>} : vector<256x128xbf16>, vector<128x256xbf16>, vector<256x256xf32> -> vector<256x256xf32>
    %c0_25 = arith.constant 0 : index
    %c0_26 = arith.constant 0 : index
    %42 = vector.load %arg11[%c0_25, %c0_26] : memref<1x256xf32, #tpu.memory_space<vmem>>, vector<1x256xf32>
    %43 = vector.broadcast %42 : vector<1x256xf32> to vector<256x256xf32>
    %44 = arith.addf %41, %43 : vector<256x256xf32>
    %45 = vector.extract_strided_slice %44 {offsets = [0, 0], sizes = [256, 128], strides = [1, 1]} : vector<256x256xf32> to vector<256x128xf32>
    %46 = math.tanh %45 : vector<256x128xf32>
    %47 = vector.extract_strided_slice %44 {offsets = [0, 128], sizes = [256, 128], strides = [1, 1]} : vector<256x256xf32> to vector<256x128xf32>
    %48 = math.exp %46 : vector<256x128xf32>
    %49 = arith.mulf %7, %48 : vector<256x128xf32>
    %50 = arith.addf %49, %47 : vector<256x128xf32>
    %cst_27 = arith.constant dense<0.000000e+00> : vector<256xf32>
    %51 = vector.multi_reduction <add>, %46, %cst_27 [1] : vector<256x128xf32> to vector<256xf32>
    %52 = vector.shape_cast %51 : vector<256xf32> to vector<256x1xf32>
    %c0_28 = arith.constant 0 : index
    %c0_29 = arith.constant 0 : index
    %53 = vector.load %arg12[%c0_28, %c0_29] : memref<256x256xf32, #tpu.memory_space<vmem>>, vector<256x128xf32>
    tpu.vector_store %arg12[%c0_28, %c0_29], %28 {strides = array<i32>} : memref<256x256xf32, #tpu.memory_space<vmem>>, vector<256x128xf32>,
    %c0_30 = arith.constant 0 : index
    %c128 = arith.constant 128 : index
    %54 = vector.load %arg12[%c0_30, %c128] : memref<256x256xf32, #tpu.memory_space<vmem>>, vector<256x128xf32>
    tpu.vector_store %arg12[%c0_30, %c128], %50 {strides = array<i32>} : memref<256x256xf32, #tpu.memory_space<vmem>>, vector<256x128xf32>,
    %55 = arith.addf %30, %52 : vector<256x1xf32>
    %56 = vector.shape_cast %55 : vector<256x1xf32> to vector<256x1xf32>
    %57 = vector.broadcast %56 : vector<256x1xf32> to vector<256x128xf32>
    %58 = tpu.transpose %57, [1, 0] : vector<256x128xf32> -> vector<128x256xf32>
    %59 = vector.extract_strided_slice %58 {offsets = [0, 0], sizes = [1, 256], strides = [1, 1]} : vector<128x256xf32> to vector<1x256xf32>
    %c0_31 = arith.constant 0 : index
    %c0_32 = arith.constant 0 : index
    %60 = vector.load %arg13[%c0_31, %c0_32] : memref<1x256xf32, #tpu.memory_space<vmem>>, vector<1x256xf32>
    tpu.vector_store %arg13[%c0_31, %c0_32], %59 {strides = array<i32>} : memref<1x256xf32, #tpu.memory_space<vmem>>, vector<1x256xf32>,
    return
  }
  func.func @transform_0(%arg0: i32) -> (i32, i32) {
    %c0_i32 = arith.constant 0 : i32
    %c0_i32_0 = arith.constant 0 : i32
    return %arg0, %c0_i32 : i32, i32
  }
  func.func @transform_1(%arg0: i32) -> (i32, i32) {
    %c0_i32 = arith.constant 0 : i32
    %c0_i32_0 = arith.constant 0 : i32
    %c0_i32_1 = arith.constant 0 : i32
    return %c0_i32, %c0_i32_0 : i32, i32
  }
  func.func @transform_2(%arg0: i32) -> (i32, i32) {
    %c0_i32 = arith.constant 0 : i32
    %c0_i32_0 = arith.constant 0 : i32
    %c0_i32_1 = arith.constant 0 : i32
    return %c0_i32, %c0_i32_0 : i32, i32
  }
  func.func @transform_3(%arg0: i32) -> (i32, i32) {
    %c0_i32 = arith.constant 0 : i32
    %c0_i32_0 = arith.constant 0 : i32
    %c0_i32_1 = arith.constant 0 : i32
    return %c0_i32, %c0_i32_0 : i32, i32
  }
  func.func @transform_4(%arg0: i32) -> (i32, i32) {
    %c0_i32 = arith.constant 0 : i32
    %c0_i32_0 = arith.constant 0 : i32
    %c0_i32_1 = arith.constant 0 : i32
    return %c0_i32, %c0_i32_0 : i32, i32
  }
  func.func @transform_5(%arg0: i32) -> (i32, i32) {
    %c0_i32 = arith.constant 0 : i32
    %c0_i32_0 = arith.constant 0 : i32
    %c0_i32_1 = arith.constant 0 : i32
    return %c0_i32, %c0_i32_0 : i32, i32
  }
  func.func @transform_6(%arg0: i32) -> (i32, i32) {
    %c0_i32 = arith.constant 0 : i32
    %c0_i32_0 = arith.constant 0 : i32
    %c0_i32_1 = arith.constant 0 : i32
    return %c0_i32, %c0_i32_0 : i32, i32
  }
  func.func @transform_7(%arg0: i32) -> (i32, i32) {
    %c0_i32 = arith.constant 0 : i32
    %c0_i32_0 = arith.constant 0 : i32
    %c0_i32_1 = arith.constant 0 : i32
    return %c0_i32, %c0_i32_0 : i32, i32
  }
  func.func @transform_8(%arg0: i32) -> (i32, i32) {
    %c0_i32 = arith.constant 0 : i32
    %c0_i32_0 = arith.constant 0 : i32
    %c0_i32_1 = arith.constant 0 : i32
    return %c0_i32, %c0_i32_0 : i32, i32
  }
  func.func @transform_9(%arg0: i32) -> (i32, i32) {
    %c0_i32 = arith.constant 0 : i32
    %c0_i32_0 = arith.constant 0 : i32
    %c0_i32_1 = arith.constant 0 : i32
    return %c0_i32, %c0_i32_0 : i32, i32
  }
  func.func @transform_10(%arg0: i32) -> (i32, i32) {
    %c0_i32 = arith.constant 0 : i32
    %c0_i32_0 = arith.constant 0 : i32
    %c0_i32_1 = arith.constant 0 : i32
    return %c0_i32, %c0_i32_0 : i32, i32
  }
  func.func @transform_11(%arg0: i32) -> (i32, i32) {
    %c0_i32 = arith.constant 0 : i32
    %c0_i32_0 = arith.constant 0 : i32
    return %arg0, %c0_i32 : i32, i32
  }
  func.func @transform_12(%arg0: i32) -> (i32, i32) {
    %c0_i32 = arith.constant 0 : i32
    %c0_i32_0 = arith.constant 0 : i32
    return %c0_i32, %arg0 : i32, i32
  }
}

module attributes {stable_mosaic.version = 11 : i64} {
  func.func @kernel(%arg0: i32, %arg1: memref<256x256xf32, #tpu.memory_space<vmem>>, %arg2: memref<1x256xf32, #tpu.memory_space<vmem>>, %arg3: memref<1x256xf32, #tpu.memory_space<vmem>>, %arg4: memref<128x128xbf16, #tpu.memory_space<vmem>>, %arg5: memref<1x128xf32, #tpu.memory_space<vmem>>, %arg6: memref<128x256xbf16, #tpu.memory_space<vmem>>, %arg7: memref<1x256xf32, #tpu.memory_space<vmem>>, %arg8: memref<128x128xbf16, #tpu.memory_space<vmem>>, %arg9: memref<1x128xf32, #tpu.memory_space<vmem>>, %arg10: memref<128x256xbf16, #tpu.memory_space<vmem>>, %arg11: memref<1x256xf32, #tpu.memory_space<vmem>>, %arg12: memref<256x256xf32, #tpu.memory_space<vmem>>, %arg13: memref<1x256xf32, #tpu.memory_space<vmem>>) attributes {dimension_semantics = [#tpu.dimension_semantics<parallel>], iteration_bounds = array<i64: 1>, scalar_prefetch = 0 : i64, scratch_operands = 0 : i64, tpu.core_type = #tpu.core_type<tc>, window_params = [{transform_indices = @transform_0, window_bounds = array<i64: 256, 256>}, {pipeline_mode = #tpu.pipeline_mode<synchronous>, transform_indices = @transform_1, window_bounds = array<i64: 1, 256>}, {pipeline_mode = #tpu.pipeline_mode<synchronous>, transform_indices = @transform_2, window_bounds = array<i64: 1, 256>}, {pipeline_mode = #tpu.pipeline_mode<synchronous>, transform_indices = @transform_3, window_bounds = array<i64: 128, 128>}, {pipeline_mode = #tpu.pipeline_mode<synchronous>, transform_indices = @transform_4, window_bounds = array<i64: 1, 128>}, {pipeline_mode = #tpu.pipeline_mode<synchronous>, transform_indices = @transform_5, window_bounds = array<i64: 128, 256>}, {pipeline_mode = #tpu.pipeline_mode<synchronous>, transform_indices = @transform_6, window_bounds = array<i64: 1, 256>}, {pipeline_mode = #tpu.pipeline_mode<synchronous>, transform_indices = @transform_7, window_bounds = array<i64: 128, 128>}, {pipeline_mode = #tpu.pipeline_mode<synchronous>, transform_indices = @transform_8, window_bounds = array<i64: 1, 128>}, {pipeline_mode = #tpu.pipeline_mode<synchronous>, transform_indices = @transform_9, window_bounds = array<i64: 128, 256>}, {pipeline_mode = #tpu.pipeline_mode<synchronous>, transform_indices = @transform_10, window_bounds = array<i64: 1, 256>}, {transform_indices = @transform_11, window_bounds = array<i64: 256, 256>}, {transform_indices = @transform_12, window_bounds = array<i64: 1, 256>}]} {
    %c0 = arith.constant 0 : index
    %c0_0 = arith.constant 0 : index
    %0 = vector.load %arg1[%c0, %c0_0] : memref<256x256xf32, #tpu.memory_space<vmem>>, vector<256x256xf32>
    %c0_1 = arith.constant 0 : index
    %c0_2 = arith.constant 0 : index
    %1 = vector.load %arg2[%c0_1, %c0_2] : memref<1x256xf32, #tpu.memory_space<vmem>>, vector<1x256xf32>
    %2 = vector.broadcast %1 : vector<1x256xf32> to vector<256x256xf32>
    %3 = arith.mulf %0, %2 : vector<256x256xf32>
    %c0_3 = arith.constant 0 : index
    %c0_4 = arith.constant 0 : index
    %4 = vector.load %arg3[%c0_3, %c0_4] : memref<1x256xf32, #tpu.memory_space<vmem>>, vector<1x256xf32>
    %5 = vector.broadcast %4 : vector<1x256xf32> to vector<256x256xf32>
    %6 = arith.addf %3, %5 : vector<256x256xf32>
    %7 = vector.extract_strided_slice %6 {offsets = [0, 0], sizes = [256, 128], strides = [1, 1]} : vector<256x256xf32> to vector<256x128xf32>
    %8 = vector.extract_strided_slice %6 {offsets = [0, 128], sizes = [256, 128], strides = [1, 1]} : vector<256x256xf32> to vector<256x128xf32>
    %9 = arith.truncf %7 : vector<256x128xf32> to vector<256x128xbf16>
    %c0_5 = arith.constant 0 : index
    %c0_6 = arith.constant 0 : index
    %10 = vector.load %arg4[%c0_5, %c0_6] : memref<128x128xbf16, #tpu.memory_space<vmem>>, vector<128x128xbf16>
    %cst = arith.constant dense<0.000000e+00> : vector<256x128xf32>
    %11 = tpu.matmul %9, %10, %cst {dimension_numbers = #tpu.dot_dimension_numbers<[1], [0], [0], [1], [0, 0, 1, 1], [], []>} : vector<256x128xbf16>, vector<128x128xbf16>, vector<256x128xf32> -> vector<256x128xf32>
    %c0_7 = arith.constant 0 : index
    %c0_8 = arith.constant 0 : index
    %12 = vector.load %arg5[%c0_7, %c0_8] : memref<1x128xf32, #tpu.memory_space<vmem>>, vector<1x128xf32>
    %13 = vector.broadcast %12 : vector<1x128xf32> to vector<256x128xf32>
    %14 = arith.addf %11, %13 : vector<256x128xf32>
    %cst_9 = arith.constant 0.000000e+00 : f32
    %15 = vector.broadcast %cst_9 : f32 to vector<256x128xf32>
    %16 = arith.maximumf %14, %15 : vector<256x128xf32>
    %17 = arith.truncf %16 : vector<256x128xf32> to vector<256x128xbf16>
    %c0_10 = arith.constant 0 : index
    %c0_11 = arith.constant 0 : index
    %18 = vector.load %arg6[%c0_10, %c0_11] : memref<128x256xbf16, #tpu.memory_space<vmem>>, vector<128x256xbf16>
    %cst_12 = arith.constant dense<0.000000e+00> : vector<256x256xf32>
    %19 = tpu.matmul %17, %18, %cst_12 {dimension_numbers = #tpu.dot_dimension_numbers<[1], [0], [0], [1], [0, 0, 1, 1], [], []>} : vector<256x128xbf16>, vector<128x256xbf16>, vector<256x256xf32> -> vector<256x256xf32>
    %c0_13 = arith.constant 0 : index
    %c0_14 = arith.constant 0 : index
    %20 = vector.load %arg7[%c0_13, %c0_14] : memref<1x256xf32, #tpu.memory_space<vmem>>, vector<1x256xf32>
    %21 = vector.broadcast %20 : vector<1x256xf32> to vector<256x256xf32>
    %22 = arith.addf %19, %21 : vector<256x256xf32>
    %23 = vector.extract_strided_slice %22 {offsets = [0, 0], sizes = [256, 128], strides = [1, 1]} : vector<256x256xf32> to vector<256x128xf32>
    %24 = math.tanh %23 : vector<256x128xf32>
    %25 = vector.extract_strided_slice %22 {offsets = [0, 128], sizes = [256, 128], strides = [1, 1]} : vector<256x256xf32> to vector<256x128xf32>
    %26 = math.exp %24 : vector<256x128xf32>
    %27 = arith.mulf %8, %26 : vector<256x128xf32>
    %28 = arith.addf %27, %25 : vector<256x128xf32>
    %cst_15 = arith.constant dense<0.000000e+00> : vector<256xf32>
    %29 = vector.multi_reduction <add>, %24, %cst_15 [1] : vector<256x128xf32> to vector<256xf32>
    %30 = vector.shape_cast %29 : vector<256xf32> to vector<256x1xf32>
    %31 = arith.truncf %28 : vector<256x128xf32> to vector<256x128xbf16>
    %c0_16 = arith.constant 0 : index
    %c0_17 = arith.constant 0 : index
    %32 = vector.load %arg8[%c0_16, %c0_17] : memref<128x128xbf16, #tpu.memory_space<vmem>>, vector<128x128xbf16>
    %cst_18 = arith.constant dense<0.000000e+00> : vector<256x128xf32>
    %33 = tpu.matmul %31, %32, %cst_18 {dimension_numbers = #tpu.dot_dimension_numbers<[1], [0], [0], [1], [0, 0, 1, 1], [], []>} : vector<256x128xbf16>, vector<128x128xbf16>, vector<256x128xf32> -> vector<256x128xf32>
    %c0_19 = arith.constant 0 : index
    %c0_20 = arith.constant 0 : index
    %34 = vector.load %arg9[%c0_19, %c0_20] : memref<1x128xf32, #tpu.memory_space<vmem>>, vector<1x128xf32>
    %35 = vector.broadcast %34 : vector<1x128xf32> to vector<256x128xf32>
    %36 = arith.addf %33, %35 : vector<256x128xf32>
    %cst_21 = arith.constant 0.000000e+00 : f32
    %37 = vector.broadcast %cst_21 : f32 to vector<256x128xf32>
    %38 = arith.maximumf %36, %37 : vector<256x128xf32>
    %39 = arith.truncf %38 : vector<256x128xf32> to vector<256x128xbf16>
    %c0_22 = arith.constant 0 : index
    %c0_23 = arith.constant 0 : index
    %40 = vector.load %arg10[%c0_22, %c0_23] : memref<128x256xbf16, #tpu.memory_space<vmem>>, vector<128x256xbf16>
    %cst_24 = arith.constant dense<0.000000e+00> : vector<256x256xf32>
    %41 = tpu.matmul %39, %40, %cst_24 {dimension_numbers = #tpu.dot_dimension_numbers<[1], [0], [0], [1], [0, 0, 1, 1], [], []>} : vector<256x128xbf16>, vector<128x256xbf16>, vector<256x256xf32> -> vector<256x256xf32>
    %c0_25 = arith.constant 0 : index
    %c0_26 = arith.constant 0 : index
    %42 = vector.load %arg11[%c0_25, %c0_26] : memref<1x256xf32, #tpu.memory_space<vmem>>, vector<1x256xf32>
    %43 = vector.broadcast %42 : vector<1x256xf32> to vector<256x256xf32>
    %44 = arith.addf %41, %43 : vector<256x256xf32>
    %45 = vector.extract_strided_slice %44 {offsets = [0, 0], sizes = [256, 128], strides = [1, 1]} : vector<256x256xf32> to vector<256x128xf32>
    %46 = math.tanh %45 : vector<256x128xf32>
    %47 = vector.extract_strided_slice %44 {offsets = [0, 128], sizes = [256, 128], strides = [1, 1]} : vector<256x256xf32> to vector<256x128xf32>
    %48 = math.exp %46 : vector<256x128xf32>
    %49 = arith.mulf %7, %48 : vector<256x128xf32>
    %50 = arith.addf %49, %47 : vector<256x128xf32>
    %cst_27 = arith.constant dense<0.000000e+00> : vector<256xf32>
    %51 = vector.multi_reduction <add>, %46, %cst_27 [1] : vector<256x128xf32> to vector<256xf32>
    %52 = vector.shape_cast %51 : vector<256xf32> to vector<256x1xf32>
    %c0_28 = arith.constant 0 : index
    %c0_29 = arith.constant 0 : index
    %53 = vector.load %arg12[%c0_28, %c0_29] : memref<256x256xf32, #tpu.memory_space<vmem>>, vector<256x128xf32>
    tpu.vector_store %arg12[%c0_28, %c0_29], %28 {strides = array<i32>} : memref<256x256xf32, #tpu.memory_space<vmem>>, vector<256x128xf32>,
    %c0_30 = arith.constant 0 : index
    %c128 = arith.constant 128 : index
    %54 = vector.load %arg12[%c0_30, %c128] : memref<256x256xf32, #tpu.memory_space<vmem>>, vector<256x128xf32>
    tpu.vector_store %arg12[%c0_30, %c128], %50 {strides = array<i32>} : memref<256x256xf32, #tpu.memory_space<vmem>>, vector<256x128xf32>,
    %55 = arith.addf %30, %52 : vector<256x1xf32>
    %56 = vector.shape_cast %55 : vector<256x1xf32> to vector<256x1xf32>
    %57 = vector.broadcast %56 : vector<256x1xf32> to vector<256x128xf32>
    %58 = tpu.transpose %57, [1, 0] : vector<256x128xf32> -> vector<128x256xf32>
    %59 = vector.extract_strided_slice %58 {offsets = [0, 0], sizes = [1, 256], strides = [1, 1]} : vector<128x256xf32> to vector<1x256xf32>
    %c0_31 = arith.constant 0 : index
    %c0_32 = arith.constant 0 : index
    %60 = vector.load %arg13[%c0_31, %c0_32] : memref<1x256xf32, #tpu.memory_space<vmem>>, vector<1x256xf32>
    tpu.vector_store %arg13[%c0_31, %c0_32], %59 {strides = array<i32>} : memref<1x256xf32, #tpu.memory_space<vmem>>, vector<1x256xf32>,
    return
  }
  func.func @transform_0(%arg0: i32) -> (i32, i32) {
    %c0_i32 = arith.constant 0 : i32
    %c0_i32_0 = arith.constant 0 : i32
    return %arg0, %c0_i32 : i32, i32
  }
  func.func @transform_1(%arg0: i32) -> (i32, i32) {
    %c0_i32 = arith.constant 0 : i32
    %c0_i32_0 = arith.constant 0 : i32
    %c0_i32_1 = arith.constant 0 : i32
    return %c0_i32, %c0_i32_0 : i32, i32
  }
  func.func @transform_2(%arg0: i32) -> (i32, i32) {
    %c0_i32 = arith.constant 0 : i32
    %c0_i32_0 = arith.constant 0 : i32
    %c0_i32_1 = arith.constant 0 : i32
    return %c0_i32, %c0_i32_0 : i32, i32
  }
  func.func @transform_3(%arg0: i32) -> (i32, i32) {
    %c0_i32 = arith.constant 0 : i32
    %c0_i32_0 = arith.constant 0 : i32
    %c0_i32_1 = arith.constant 0 : i32
    return %c0_i32, %c0_i32_0 : i32, i32
  }
  func.func @transform_4(%arg0: i32) -> (i32, i32) {
    %c0_i32 = arith.constant 0 : i32
    %c0_i32_0 = arith.constant 0 : i32
    %c0_i32_1 = arith.constant 0 : i32
    return %c0_i32, %c0_i32_0 : i32, i32
  }
  func.func @transform_5(%arg0: i32) -> (i32, i32) {
    %c0_i32 = arith.constant 0 : i32
    %c0_i32_0 = arith.constant 0 : i32
    %c0_i32_1 = arith.constant 0 : i32
    return %c0_i32, %c0_i32_0 : i32, i32
  }
  func.func @transform_6(%arg0: i32) -> (i32, i32) {
    %c0_i32 = arith.constant 0 : i32
    %c0_i32_0 = arith.constant 0 : i32
    %c0_i32_1 = arith.constant 0 : i32
    return %c0_i32, %c0_i32_0 : i32, i32
  }
  func.func @transform_7(%arg0: i32) -> (i32, i32) {
    %c0_i32 = arith.constant 0 : i32
    %c0_i32_0 = arith.constant 0 : i32
    %c0_i32_1 = arith.constant 0 : i32
    return %c0_i32, %c0_i32_0 : i32, i32
  }
  func.func @transform_8(%arg0: i32) -> (i32, i32) {
    %c0_i32 = arith.constant 0 : i32
    %c0_i32_0 = arith.constant 0 : i32
    %c0_i32_1 = arith.constant 0 : i32
    return %c0_i32, %c0_i32_0 : i32, i32
  }
  func.func @transform_9(%arg0: i32) -> (i32, i32) {
    %c0_i32 = arith.constant 0 : i32
    %c0_i32_0 = arith.constant 0 : i32
    %c0_i32_1 = arith.constant 0 : i32
    return %c0_i32, %c0_i32_0 : i32, i32
  }
  func.func @transform_10(%arg0: i32) -> (i32, i32) {
    %c0_i32 = arith.constant 0 : i32
    %c0_i32_0 = arith.constant 0 : i32
    %c0_i32_1 = arith.constant 0 : i32
    return %c0_i32, %c0_i32_0 : i32, i32
  }
  func.func @transform_11(%arg0: i32) -> (i32, i32) {
    %c0_i32 = arith.constant 0 : i32
    %c0_i32_0 = arith.constant 0 : i32
    return %arg0, %c0_i32 : i32, i32
  }
  func.func @transform_12(%arg0: i32) -> (i32, i32) {
    %c0_i32 = arith.constant 0 : i32
    %c0_i32_0 = arith.constant 0 : i32
    return %c0_i32, %arg0 : i32, i32
  }
}

</mosaic_0001>

<bundles_post_ra>
// kernel: tpu_custom_call.1
= control target key start
LH: loop header
LB: loop body
LE: loop exit
PB: predicated region body
PF: predicated region fallthrough
CT: control target
= control target key end

     0   :  { %18 = vsyncpa [#allocation3], 0  ;;  %s3832_s0 = inlined_call_operand.hbm [shape: f32[256,256], index: 0, kind: input, shape index: {}]   ;;  %s3833_s1 = inlined_call_operand.hbm [shape: f32[1,256], index: 1, kind: input, shape index: {}]   ;;  %s3834_s2 = inlined_call_operand.vmem [shape: f32[1,256], index: 2, kind: input, shape index: {}]   ;;  %s3835_s3 = inlined_call_operand.hbm [shape: bf16[128,128], index: 3, kind: input, shape index: {}]   ;;  %s3836_s4 = inlined_call_operand.vmem [shape: f32[1,128], index: 4, kind: input, shape index: {}]   ;;  %s3837_s5 = inlined_call_operand.hbm [shape: bf16[128,256], index: 5, kind: input, shape index: {}]   ;;  %s3838_s6 = inlined_call_operand.vmem [shape: f32[1,256], index: 6, kind: input, shape index: {}]   ;;  %s3839_s7 = inlined_call_operand.hbm [shape: bf16[128,128], index: 7, kind: input, shape index: {}]   ;;  %s3840_s8 = inlined_call_operand.vmem [shape: f32[1,128], index: 8, kind: input, shape index: {}]   ;;  %s3841_s9 = inlined_call_operand.hbm [shape: bf16[128,256], index: 9, kind: input, shape index: {}]   ;;  %s3842_s10 = inlined_call_operand.vmem [shape: f32[1,256], index: 10, kind: input, shape index: {}]   ;;  %s3843_s11 = inlined_call_operand.hbm [shape: f32[256,256], index: 11, kind: output, shape index: {0}]   ;;  %s3844_s12 = inlined_call_operand.hbm [shape: f32[1,256], index: 12, kind: output, shape index: {1}]  }
   0x1   :  { %19 = vsyncpa [#allocation6], 0 }
   0x2   :  { %20 = vsyncpa [#allocation9], 0 }
   0x3   :  { %21 = vsyncpa [#allocation12], 0 }
   0x4   :  { %22 = vsyncpa [#allocation4], 0 }
   0x5   :  { %23 = vsyncpa [#allocation15], 0  ;;  %s2900_s21 = smov [#allocation5]   ;;  %s2901_s23 = smov [#allocation8]  }
   0x6   :  { %s42_s22 = sshll.u32 %s2900_s21, 4  ;;  %s67_s24 = sshll.u32 %s2901_s23, 4  ;;  %s43_s22 = int_to_ptr.vmem [resolvable:$true] %s42_s22  ;;  %s68_s24 = int_to_ptr.vmem [resolvable:$true] %s67_s24 }
   0x7   :  { %s2736_s25 = scalar_lea.vmem %s43_s22, 32  ;;  %p2741_p1 = scmp.lt.s32.totalorder %s43_s22, %s43_s22 }
   0x8   :  { %p2737_p0 = scmp.ne.s32.totalorder %s43_s22, %s2736_s25  ;;  %p2742_p2 = scmp.lt.s32.totalorder %s2736_s25, %s2736_s25 }
   0xa   :  { %p2743_p3 = por %p2742_p2, %p2741_p1 }
   0xc   :  { %p2744_p4 = pnand %p2743_p3, %p2737_p0 }
   0xe   :  { %2747 = shalt.err (!%p2744_p4)
}
   0xf   :  { %45 = dma.hbm_to_vmem [thread:$0]  %s3833_s1, 32, %s43_s22, [#allocation6]  }
  0x10   :  { %s2756_s28 = scalar_lea.vmem %s68_s24, 2048  ;;  %p2761_p6 = scmp.lt.s32.totalorder %s68_s24, %s68_s24 }
  0x11   :  { %p2757_p5 = scmp.ne.s32.totalorder %s68_s24, %s2756_s28  ;;  %p2762_p7 = scmp.lt.s32.totalorder %s2756_s28, %s2756_s28 }
  0x13   :  { %p2763_p8 = por %p2762_p7, %p2761_p6 }
  0x15   :  { %p2764_p9 = pnand %p2763_p8, %p2757_p5 }
  0x17   :  { %2767 = shalt.err (!%p2764_p9)
}
  0x18   :  { %s2902_s29 = smov 128   ;;  %s2903_s30 = smov 8  }
  0x19   :  { %73 = dma.hbm_to_vmem [thread:$0]  %s3837_s5, 2048, %s68_s24, [#allocation9], %s2902_s29, %s2902_s29, %s2903_s30  }
  0x1a   :  { %s2904_s15 = smov [#allocation2]  }
  0x1b   :  { %s29_s16 = sshll.u32 %s2904_s15, 4  ;;  %s30_s16 = int_to_ptr.vmem [resolvable:$true] %s29_s16 }
  0x1c   :  { %s2776_s1 = scalar_lea.vmem %s30_s16, 8192  ;;  %p2781_p11 = scmp.lt.s32.totalorder %s30_s16, %s30_s16 }
  0x1d   :  { %p2777_p10 = scmp.ne.s32.totalorder %s30_s16, %s2776_s1  ;;  %p2782_p12 = scmp.lt.s32.totalorder %s2776_s1, %s2776_s1 }
  0x1f   :  { %p2783_p13 = por %p2782_p12, %p2781_p11 }
  0x21   :  { %p2784_p0 = pnand %p2783_p13, %p2777_p10 }
  0x23   :  { %2787 = shalt.err (!%p2784_p0)
}
  0x24   :  { %s2905_s17 = smov 256   ;;  %s2906_s18 = smov 16  }
  0x25   :  { %35 = dma.hbm_to_vmem [thread:$0]  %s3832_s0, 8192, %s30_s16, [#allocation3], %s2905_s17, %s2905_s17, %s2906_s18  }
  0x26   :  { %s2907_s5 = smov [#allocation7]  }
  0x27   :  { %s53_s21 = sshll.u32 %s2907_s5, 4  ;;  %s54_s21 = int_to_ptr.vmem [resolvable:$true] %s53_s21 }
  0x28   :  { %s2796_s22 = scalar_lea.vmem %s54_s21, 1024  ;;  %p2801_p2 = scmp.lt.s32.totalorder %s54_s21, %s54_s21 }
  0x29   :  { %p2797_p1 = scmp.ne.s32.totalorder %s54_s21, %s2796_s22  ;;  %p2802_p3 = scmp.lt.s32.totalorder %s2796_s22, %s2796_s22 }
  0x2b   :  { %p2803_p4 = por %p2802_p3, %p2801_p2 }
  0x2d   :  { %p2804_p5 = pnand %p2803_p4, %p2797_p1 }
  0x2f   :  { %2807 = shalt.err (!%p2804_p5)
}
  0x30   :  { %s2908_s23 = smov 64   ;;  %s2909_s24 = smov 4  }
  0x31   :  { %59 = dma.hbm_to_vmem [thread:$0]  %s3835_s3, 1024, %s54_s21, [#allocation6], %s2908_s23, %s2908_s23, %s2909_s24  }
  0x32   :  { %s2910_s27 = smov [#allocation10]   ;;  %s2911_s13 = smov [#allocation11]  }
  0x33   :  { %s81_s28 = sshll.u32 %s2910_s27, 4  ;;  %s95_s0 = sshll.u32 %s2911_s13, 4  ;;  %s82_s28 = int_to_ptr.vmem [resolvable:$true] %s81_s28  ;;  %s96_s0 = int_to_ptr.vmem [resolvable:$true] %s95_s0 }
  0x34   :  { %s2816_s14 = scalar_lea.vmem %s82_s28, 1024  ;;  %p2821_p7 = scmp.lt.s32.totalorder %s82_s28, %s82_s28 }
  0x35   :  { %p2817_p6 = scmp.ne.s32.totalorder %s82_s28, %s2816_s14  ;;  %p2822_p8 = scmp.lt.s32.totalorder %s2816_s14, %s2816_s14 }
  0x37   :  { %p2823_p9 = por %p2822_p8, %p2821_p7 }
  0x39   :  { %p2824_p10 = pnand %p2823_p9, %p2817_p6 }
  0x3b   :  { %2827 = shalt.err (!%p2824_p10)
}
  0x3c   :  { %87 = dma.hbm_to_vmem [thread:$0]  %s3839_s7, 1024, %s82_s28, [#allocation9], %s2908_s23, %s2908_s23, %s2909_s24  }
  0x3d   :  { %s2836_s1 = scalar_lea.vmem %s96_s0, 2048  ;;  %p2841_p12 = scmp.lt.s32.totalorder %s96_s0, %s96_s0 }
  0x3e   :  { %p2837_p11 = scmp.ne.s32.totalorder %s96_s0, %s2836_s1  ;;  %p2842_p13 = scmp.lt.s32.totalorder %s2836_s1, %s2836_s1 }
  0x40   :  { %p2843_p0 = por %p2842_p13, %p2841_p12 }
  0x42   :  { %p2844_p1 = pnand %p2843_p0, %p2837_p11 }
  0x44   :  { %2847 = shalt.err (!%p2844_p1)
}
  0x45   :  { %101 = dma.hbm_to_vmem [thread:$0]  %s3841_s9, 2048, %s96_s0, [#allocation12], %s2902_s29, %s2902_s29, %s2903_s30  }
  0x46   :  { %2888 = dma.done.wait [#allocation3], 8192  }
  0x47   :  { %2889 = vsyncadd [#allocation3], 4294959104 }
  0x48   :  { %2890 = dma.done.wait [#allocation6], 1056  }
  0x49   :  { %2891 = vsyncadd [#allocation6], 4294966240 }
  0x4a   :  { %2892 = dma.done.wait [#allocation9], 3072  }
  0x4b   :  { %2893 = vsyncadd [#allocation9], 4294964224 }
  0x4c   :  { %2894 = dma.done.wait [#allocation12], 2048  }
  0x4d   :  { %2895 = vsyncadd [#allocation12], 4294965248  ;;  %v3845_v0 = vlaneseq  ;;  %v2408_v1 = vld [vmem:[#allocation7 + $0x38] sm:$0xff]   ;;  %v2409_v2 = vld [vmem:[#allocation7 + $0x30] sm:$0xff]  }
  0x4e   :  { %2296 = vmatprep.subr.bf16.mxu1 %v2408_v1  ;;  %v2410_v4 = vld [vmem:[#allocation7 + $0x28] sm:$0xff]   ;;  %v2411_v6 = vld [vmem:[#allocation7 + $0x20] sm:$0xff]   ;;  %v3014_v9 = vld [vmem:[#allocation5] sm:$0x3] }
  0x4f   :  { %v3009_v3 = vshrl.u32 %v3845_v0, 7  ;;  %2297 = vmatpush3.bf16.msra.mxu1 %v2408_v1  ;;  %v123_v7 = vld [vmem:[#allocation2] sm:$0xff]  ;;  %v125_v8 = vld [vmem:[#allocation2 + $0x10] sm:$0xff] }
  0x50   :  { %2298 = vmatprep.subr.bf16.mxu1 %v2409_v2  ;;  %v3023_v11 = vld [vmem:[%s3834_s2] sm:$0x3]  ;;  %v2413_v19 = vld [vmem:[#allocation7 + $0x10] sm:$0xff]   ;;  %v2414_v20 = vld [vmem:[#allocation7 + $0x8] sm:$0xff]  }
  0x51   :  { %3853 = vst [vmem:[#allocation22_spill] sm:$0xff] %v3009_v3  ;;  %v3012_v5 = vsub.s32 0, %v3009_v3  ;;  %v2412_v15 = vld [vmem:[#allocation7 + $0x18] sm:$0xff]   ;;  %v129_v22 = vld [vmem:[#allocation2 + $0x30] sm:$0xff]  ;;  %v2415_v25 = vld [vmem:[#allocation7] sm:$0xff]  }
  0x52   :  { %v127_v21 = vld [vmem:[#allocation2 + $0x20] sm:$0xff]  ;;  %v133_v24 = vld [vmem:[#allocation2 + $0x50] sm:$0xff] }
  0x53   :  { %2299 = vmatpush3.bf16.msra.mxu1 %v2409_v2  ;;  %v3018_v10 = vrot.slane %v3014_v9, %v3012_v5  ;;  %v3027_v12 = vrot.slane %v3023_v11, %v3012_v5  ;;  %v131_v23 = vld [vmem:[#allocation2 + $0x40] sm:$0xff]  ;;  %v177_v31 = vld [vmem:[#allocation2 + $0x1b0] sm:$0xff] }
  0x54   :  { %2300 = vmatprep.subr.bf16.mxu1 %v2410_v4  ;;  %v175_v28 = vld [vmem:[#allocation2 + $0x1a0] sm:$0xff]  ;;  %v181_v34 = vld [vmem:[#allocation2 + $0x1d0] sm:$0xff] }
  0x55   :  { %v199_v13 = vmul.f32 %v3018_v10, %v123_v7  ;;  %v201_v14 = vmul.f32 %v3018_v10, %v125_v8  ;;  %v203_v26 = vmul.f32 %v3018_v10, %v127_v21  ;;  %v205_v27 = vmul.f32 %v3018_v10, %v129_v22  ;;  %v135_v32 = vld [vmem:[#allocation2 + $0x60] sm:$0xff]  ;;  %v185_v36 = vld [vmem:[#allocation2 + $0x1f0] sm:$0xff] }
  0x56   :  { %v207_v29 = vmul.f32 %v3018_v10, %v131_v23  ;;  %v209_v30 = vmul.f32 %v3018_v10, %v133_v24  ;;  %v179_v33 = vld [vmem:[#allocation2 + $0x1c0] sm:$0xff]  ;;  %v137_v39 = vld [vmem:[#allocation2 + $0x70] sm:$0xff]  ;;  %v251_v40 = vmul.f32 %v3018_v10, %v175_v28  ;;  %v253_v41 = vmul.f32 %v3018_v10, %v177_v31 }
  0x57   :  { %2301 = vmatpush3.bf16.msra.mxu1 %v2410_v4  ;;  %v3032_v16 = vadd.f32 %v3027_v12, %v199_v13  ;;  %v3035_v17 = vadd.f32 %v3027_v12, %v201_v14  ;;  %v183_v35 = vld [vmem:[#allocation2 + $0x1e0] sm:$0xff]  ;;  %v3044_v37 = vadd.f32 %v3027_v12, %v203_v26  ;;  %v3047_v38 = vadd.f32 %v3027_v12, %v205_v27  ;;  %v141_v47 = vld [vmem:[#allocation2 + $0x90] sm:$0xff] }
  0x58   :  { %2302 = vmatprep.subr.bf16.mxu1 %v2411_v6  ;;  %v3052_v42 = vadd.f32 %v3027_v12, %v207_v29  ;;  %v3055_v43 = vadd.f32 %v3027_v12, %v209_v30  ;;  %v139_v44 = vld [vmem:[#allocation2 + $0x80] sm:$0xff]  ;;  %v255_v45 = vmul.f32 %v3018_v10, %v179_v33  ;;  %v257_v46 = vmul.f32 %v3018_v10, %v181_v34  ;;  %v2416_v56 = vld [vmem:[#allocation8 + $0x70] ss:$8 sps:$4 sm:$0xff]  }
  0x59   :  { %v339_v18 = vpack.c.bf16 %v3035_v17, %v3032_v16  ;;  %v3060_v48 = vadd.f32 %v3027_v12, %v251_v40  ;;  %v3063_v49 = vadd.f32 %v3027_v12, %v253_v41  ;;  %v259_v50 = vmul.f32 %v3018_v10, %v183_v35  ;;  %v2418_v52 = vld [vmem:[#allocation8 + $0x74] ss:$8 sps:$4 sm:$0xff]   ;;  %v2421_v61 = vld [vmem:[#allocation8 + $0x64] ss:$8 sps:$4 sm:$0xff]   ;;  %v2425_v34 = vld [vmem:[#allocation8 + $0x40] ss:$8 sps:$4 sm:$0xff]  }
  0x5a   :  { %v261_v51 = vmul.f32 %v3018_v10, %v185_v36  ;;  %v211_v53 = vmul.f32 %v3018_v10, %v135_v32  ;;  %v3069_v54 = vadd.f32 %v3027_v12, %v255_v45  ;;  %v3072_v55 = vadd.f32 %v3027_v12, %v257_v46  ;;  %v143_v2 = vld [vmem:[#allocation2 + $0xa0] sm:$0xff]  ;;  %v145_v4 = vld [vmem:[#allocation2 + $0xb0] sm:$0xff] }
  0x5b   :  { %2303 = vmatpush3.bf16.msra.mxu1 %v2411_v6  ;;  %2312 = vmatprep.mubr.bf16.mxu1 %v339_v18  ;;  %v340_v57 = vpack.c.bf16 %v3047_v38, %v3044_v37  ;;  %v213_v58 = vmul.f32 %v3018_v10, %v137_v39  ;;  %v3078_v59 = vadd.f32 %v3027_v12, %v259_v50  ;;  %v2419_v6 = vld [vmem:[#allocation8 + $0x60] ss:$8 sps:$4 sm:$0xff]   ;;  %v149_v14 = vld [vmem:[#allocation2 + $0xd0] sm:$0xff] }
  0x5c   :  { %2304 = vmatprep.subr.bf16.mxu1 %v2412_v15  ;;  %3854 = vst [vmem:[#allocation23_spill] sm:$0xff] %v3069_v54  ;;  %3855 = vst [vmem:[#allocation24_spill] sm:$0xff] %v3072_v55  ;;  %v3081_v60 = vadd.f32 %v3027_v12, %v261_v51  ;;  %v341_v62 = vpack.c.bf16 %v3055_v43, %v3052_v42  ;;  %v215_v63 = vmul.f32 %v3018_v10, %v139_v44  ;;  %v147_v13 = vld [vmem:[#allocation2 + $0xc0] sm:$0xff]  ;;  %v153_v33 = vld [vmem:[#allocation2 + $0xf0] sm:$0xff] }
  0x5d   :  { %3856 = vst [vmem:[#allocation25_spill] sm:$0xff] %v3078_v59  ;;  %v217_v1 = vmul.f32 %v3018_v10, %v141_v47  ;;  %v3088_v7 = vadd.f32 %v3027_v12, %v211_v53  ;;  %v3091_v8 = vadd.f32 %v3027_v12, %v213_v58  ;;  %v219_v22 = vmul.f32 %v3018_v10, %v143_v2  ;;  %v2427_v27 = vld [vmem:[#allocation8 + $0x44] ss:$8 sps:$4 sm:$0xff]   ;;  %v2430_v39 = vld [vmem:[#allocation8 + $0x34] ss:$8 sps:$4 sm:$0xff]  }
  0x5e   :  { %3857 = vst [vmem:[#allocation26_spill] sm:$0xff] %v3081_v60  ;;  %v3094_v18 = vadd.f32 %v3027_v12, %v215_v63  ;;  %v221_v23 = vmul.f32 %v3018_v10, %v145_v4  ;;  %v225_v26 = vmul.f32 %v3018_v10, %v149_v14  ;;  %v151_v32 = vld [vmem:[#allocation2 + $0xe0] sm:$0xff]  ;;  %v157_v36 = vld [vmem:[#allocation2 + $0x110] sm:$0xff]  ;;  %v229_v44 = vmul.f32 %v3018_v10, %v153_v33 }
  0x5f   :  { %2305 = vmatpush3.bf16.msra.mxu1 %v2412_v15  ;;  %v2424_v15 = vld [vmem:[#allocation8 + $0x54] ss:$8 sps:$4 sm:$0xff]   ;;  %v342_v21 = vpack.c.bf16 %v3091_v8, %v3088_v7  ;;  %v3108_v28 = vadd.f32 %v3027_v12, %v219_v22  ;;  %v227_v41 = vmul.f32 %v3018_v10, %v151_v32  ;;  %v233_v47 = vmul.f32 %v3018_v10, %v157_v36  ;;  %v2428_v50 = vld [vmem:[#allocation8 + $0x30] ss:$8 sps:$4 sm:$0xff]   ;;  %v2433_v51 = vld [vmem:[#allocation8 + $0x24] ss:$8 sps:$4 sm:$0xff]  }
  0x60   :  { %2306 = vmatprep.subr.bf16.mxu1 %v2413_v19  ;;  %v3111_v29 = vadd.f32 %v3027_v12, %v221_v23  ;;  %v3117_v31 = vadd.f32 %v3027_v12, %v225_v26  ;;  %v155_v35 = vld [vmem:[#allocation2 + $0x100] sm:$0xff]  ;;  %v3131_v53 = vadd.f32 %v3027_v12, %v229_v44  ;;  %v173_v33 = vld [vmem:[#allocation2 + $0x190] sm:$0xff] }
  0x61   :  { %v231_v46 = vmul.f32 %v3018_v10, %v155_v35  ;;  %v159_v58 = vld [vmem:[#allocation2 + $0x120] sm:$0xff] }
  0x62   :  { %v344_v40 = vpack.c.bf16 %v3111_v29, %v3108_v28  ;;  %v163_v63 = vld [vmem:[#allocation2 + $0x140] sm:$0xff] }
  0x63   :  { %2307 = vmatpush3.bf16.msra.mxu1 %v2413_v19  ;;  %v3097_v19 = vadd.f32 %v3027_v12, %v217_v1  ;;  %v165_v1 = vld [vmem:[#allocation2 + $0x150] sm:$0xff]  ;;  %v167_v26 = vld [vmem:[#allocation2 + $0x160] sm:$0xff] }
  0x64   :  { %2308 = vmatprep.subr.bf16.mxu1 %v2414_v20  ;;  %v2436_v2 = vld [vmem:[#allocation8 + $0x14] ss:$8 sps:$4 sm:$0xff]   ;;  %v243_v35 = vmul.f32 %v3018_v10, %v167_v26 }
  0x65   :  { %v343_v24 = vpack.c.bf16 %v3097_v19, %v3094_v18  ;;  %v171_v32 = vld [vmem:[#allocation2 + $0x180] sm:$0xff] }
  0x66   :  { %v3168_v44 = vadd.f32 %v3027_v12, %v243_v35 }
  0x67   :  { %2309 = vmatpush3.bf16.msra.mxu1 %v2414_v20  ;;  %v2422_v20 = vld [vmem:[#allocation8 + $0x50] ss:$8 sps:$4 sm:$0xff]  }
  0x68   :  { %2310 = vmatprep.subr.bf16.mxu1 %v2415_v25 }
  0x6b   :  { %2311 = vmatpush3.bf16.msra.mxu1 %v2415_v25  ;;  %v223_v25 = vmul.f32 %v3018_v10, %v147_v13 }
  0x6c   :  { %743 = vmatprep.subr.bf16.mxu1 %v2418_v52  ;;  %v3128_v52 = vadd.f32 %v3027_v12, %v227_v41  ;;  %v249_v41 = vmul.f32 %v3018_v10, %v173_v33 }
  0x6d   :  { %v3114_v30 = vadd.f32 %v3027_v12, %v223_v25 }
  0x6e   :  { %2313 = vmatmul.mubr.bf16.vlgmr.msra.gmra.mxu1 %v340_v57  ;;  %v3137_v57 = vadd.f32 %v3027_v12, %v233_v47  ;;  %v346_v4 = vpack.c.bf16 %v3131_v53, %v3128_v52  ;;  %v3177_v47 = vadd.f32 %v3027_v12, %v249_v41 }
  0x6f   :  { %2316 = vmatprep.mubr.bf16.mxu1 %v341_v62  ;;  %744 = vmatpush1.bf16.msra.mxu1 %v2416_v56  ;;  %v345_v45 = vpack.c.bf16 %v3117_v31, %v3114_v30  ;;  %v3134_v56 = vadd.f32 %v3027_v12, %v231_v46  ;;  %v2431_v62 = vld [vmem:[#allocation8 + $0x20] ss:$8 sps:$4 sm:$0xff]  }
  0x70   :  { %745 = vmatprep.subr.bf16.mxu1 %v2421_v61  ;;  %v161_v61 = vld [vmem:[#allocation2 + $0x130] sm:$0xff] }
  0x71   :  { %v237_v13 = vmul.f32 %v3018_v10, %v161_v61  ;;  %v347_v14 = vpack.c.bf16 %v3137_v57, %v3134_v56  ;;  %v2439_v61 = vld [vmem:[#allocation8 + $0x4] ss:$8 sps:$4 sm:$0xff]  }
  0x73   :  { %746 = vmatpush1.bf16.msra.mxu1 %v2419_v6  ;;  %v235_v6 = vmul.f32 %v3018_v10, %v159_v58  ;;  %v3151_v23 = vadd.f32 %v3027_v12, %v237_v13  ;;  %v353_v58 = vpack.c.bf16 %v3072_v55, %v3069_v54 }
  0x74   :  { %747 = vmatprep.subr.bf16.mxu1 %v2424_v15  ;;  %v239_v15 = vmul.f32 %v3018_v10, %v163_v63  ;;  %v3846_v63 = vmov 0  }
  0x75   :  { %v3148_v22 = vadd.f32 %v3027_v12, %v235_v6 }
  0x76   :  { %2317 = vmatmul.mubr.bf16.gmra.mxu1 %v342_v21  ;;  %v2434_v21 = vld [vmem:[#allocation8 + $0x10] ss:$8 sps:$4 sm:$0xff]  }
  0x77   :  { %2320 = vmatprep.mubr.bf16.mxu1 %v343_v24  ;;  %748 = vmatpush1.bf16.msra.mxu1 %v2422_v20  ;;  %v241_v20 = vmul.f32 %v3018_v10, %v165_v1  ;;  %v3154_v24 = vadd.f32 %v3027_v12, %v239_v15 }
  0x78   :  { %749 = vmatprep.subr.bf16.mxu1 %v2427_v27  ;;  %v169_v27 = vld [vmem:[#allocation2 + $0x170] sm:$0xff] }
  0x79   :  { %v3157_v25 = vadd.f32 %v3027_v12, %v241_v20  ;;  %v245_v36 = vmul.f32 %v3018_v10, %v169_v27 }
  0x7b   :  { %750 = vmatpush1.bf16.msra.mxu1 %v2425_v34  ;;  %v348_v34 = vpack.c.bf16 %v3151_v23, %v3148_v22 }
  0x7c   :  { %751 = vmatprep.subr.bf16.mxu1 %v2430_v39  ;;  %v349_v39 = vpack.c.bf16 %v3157_v25, %v3154_v24 }
  0x7e   :  { %2321 = vmatmul.mubr.bf16.gmra.mxu1 %v344_v40  ;;  %v247_v40 = vmul.f32 %v3018_v10, %v171_v32 }
  0x7f   :  { %2324 = vmatprep.mubr.bf16.mxu1 %v345_v45  ;;  %752 = vmatpush1.bf16.msra.mxu1 %v2428_v50  ;;  %v3171_v45 = vadd.f32 %v3027_v12, %v245_v36 }
  0x80   :  { %753 = vmatprep.subr.bf16.mxu1 %v2433_v51  ;;  %v3174_v46 = vadd.f32 %v3027_v12, %v247_v40  ;;  %v352_v51 = vpack.c.bf16 %v3063_v49, %v3060_v48  ;;  %v354_v12 = vpack.c.bf16 %v3081_v60, %v3078_v59 }
  0x81   :  { %v350_v50 = vpack.c.bf16 %v3171_v45, %v3168_v44 }
  0x82   :  { %v351_v10 = vpack.c.bf16 %v3177_v47, %v3174_v46 }
  0x83   :  { %754 = vmatpush1.bf16.msra.mxu1 %v2431_v62  ;;  %v2437_v62 = vld [vmem:[#allocation8] ss:$8 sps:$4 sm:$0xff]  }
  0x84   :  { %755 = vmatprep.subr.bf16.mxu1 %v2436_v2 }
  0x86   :  { %2325 = vmatmul.mubr.bf16.gmra.mxu1 %v346_v4  ;;  %v3193_v4 = vld [vmem:[%s3836_s4] ss:$0 sm:$0xff] }
  0x87   :  { %2328 = vmatprep.mubr.bf16.mxu1 %v347_v14  ;;  %756 = vmatpush1.bf16.msra.mxu1 %v2434_v21 }
  0x88   :  { %757 = vmatprep.subr.bf16.mxu1 %v2439_v61 }
  0x8b   :  { %758 = vmatpush1.bf16.msra.mxu1 %v2437_v62 }
  0x8e   :  { %2329 = vmatmul.mubr.bf16.gmra.mxu1 %v348_v34 }
  0x8f   :  { %2332 = vmatprep.mubr.bf16.mxu1 %v349_v39 }
  0x96   :  { %2333 = vmatmul.mubr.bf16.gmra.mxu1 %v350_v50 }
  0x97   :  { %2336 = vmatprep.mubr.bf16.mxu1 %v351_v10 }
  0x9e   :  { %2337 = vmatmul.mubr.bf16.gmra.mxu1 %v352_v51 }
  0x9f   :  { %2340 = vmatprep.mubr.bf16.mxu1 %v353_v58 }
  0xa6   :  { %2341 = vmatmul.mubr.bf16.gmra.mxu1 %v354_v12 }
  0xa7   :  { %775 = vmatprep.mubr.bf16.mxu1 %v3846_v63 }
 0x12e   :  { %v2314_v1 = vpop.f32.mrf.mxu1 }
 0x12f   :  { %v469_v35 = vadd.f32 %v2314_v1, %v3193_v4 }
 0x130   :  { %v460_v2 = vpop.f32.mrf.mxu1 }
 0x131   :  { %v461_v13 = vadd.f32 %v3193_v4, %v460_v2  ;;  %v589_v40 = vmax.f32 %v469_v35, 0.0 }
 0x132   :  { %v2315_v6 = vpop.f32.mrf.mxu1 }
 0x133   :  { %v587_v21 = vmax.f32 %v461_v13, 0.0  ;;  %v472_v32 = vadd.f32 %v2315_v6, %v3193_v4 }
 0x134   :  { %v463_v14 = vpop.f32.mrf.mxu1 }
 0x135   :  { %v464_v15 = vadd.f32 %v3193_v4, %v463_v14  ;;  %v590_v36 = vmax.f32 %v472_v32, 0.0 }
 0x136   :  { %v2318_v20 = vpop.f32.mrf.mxu1 }
 0x137   :  { %v588_v26 = vmax.f32 %v464_v15, 0.0  ;;  %v620_v41 = vpack.c.bf16 %v590_v36, %v589_v40  ;;  %v485_v62 = vadd.f32 %v2318_v20, %v3193_v4 }
 0x138   :  { %v476_v27 = vpop.f32.mrf.mxu1 }
 0x139   :  { %v619_v33 = vpack.c.bf16 %v588_v26, %v587_v21  ;;  %v477_v50 = vadd.f32 %v3193_v4, %v476_v27  ;;  %v593_v13 = vmax.f32 %v485_v62, 0.0 }
 0x13a   :  { %v2319_v34 = vpop.f32.mrf.mxu1 }
 0x13b   :  { %776 = vmatmul.mubr.bf16.vlgmr.msra.gmra.mxu1 %v619_v33  ;;  %v591_v58 = vmax.f32 %v477_v50, 0.0  ;;  %v488_v1 = vadd.f32 %v2319_v34, %v3193_v4 }
 0x13c   :  { %785 = vmatprep.mubr.bf16.mxu1 %v3846_v63  ;;  %v479_v39 = vpop.f32.mrf.mxu1 }
 0x13d   :  { %v480_v10 = vadd.f32 %v3193_v4, %v479_v39  ;;  %v594_v14 = vmax.f32 %v488_v1, 0.0 }
 0x13e   :  { %v2322_v51 = vpop.f32.mrf.mxu1 }
 0x13f   :  { %v592_v12 = vmax.f32 %v480_v10, 0.0  ;;  %v622_v21 = vpack.c.bf16 %v594_v14, %v593_v13  ;;  %v501_v35 = vadd.f32 %v2322_v51, %v3193_v4 }
 0x140   :  { %v492_v61 = vpop.f32.mrf.mxu1 }
 0x141   :  { %v621_v2 = vpack.c.bf16 %v592_v12, %v591_v58  ;;  %v493_v26 = vadd.f32 %v3193_v4, %v492_v61 }
 0x142   :  { %v2323_v6 = vpop.f32.mrf.mxu1 }
 0x143   :  { %786 = vmatmul.mubr.bf16.gmra.mxu1 %v620_v41  ;;  %v595_v20 = vmax.f32 %v493_v26, 0.0  ;;  %v504_v36 = vadd.f32 %v2323_v6, %v3193_v4  ;;  %v597_v41 = vmax.f32 %v501_v35, 0.0 }
 0x144   :  { %795 = vmatprep.mubr.bf16.mxu1 %v3846_v63  ;;  %v495_v15 = vpop.f32.mrf.mxu1 }
 0x145   :  { %v496_v27 = vadd.f32 %v3193_v4, %v495_v15  ;;  %v598_v50 = vmax.f32 %v504_v36, 0.0 }
 0x146   :  { %v2326_v32 = vpop.f32.mrf.mxu1 }
 0x147   :  { %v596_v33 = vmax.f32 %v496_v27, 0.0  ;;  %v624_v58 = vpack.c.bf16 %v598_v50, %v597_v41  ;;  %v517_v6 = vadd.f32 %v2326_v32, %v3193_v4 }
 0x148   :  { %v508_v34 = vpop.f32.mrf.mxu1 }
 0x149   :  { %v623_v39 = vpack.c.bf16 %v596_v33, %v595_v20  ;;  %v509_v12 = vadd.f32 %v3193_v4, %v508_v34 }
 0x14a   :  { %v2327_v40 = vpop.f32.mrf.mxu1 }
 0x14b   :  { %796 = vmatmul.mubr.bf16.gmra.mxu1 %v621_v2  ;;  %v599_v51 = vmax.f32 %v509_v12, 0.0  ;;  %v520_v13 = vadd.f32 %v2327_v40, %v3193_v4 }
 0x14c   :  { %805 = vmatprep.mubr.bf16.mxu1 %v3846_v63  ;;  %v511_v10 = vpop.f32.mrf.mxu1 }
 0x14d   :  { %v512_v61 = vadd.f32 %v3193_v4, %v511_v10  ;;  %v602_v26 = vmax.f32 %v520_v13, 0.0 }
 0x14e   :  { %v2330_v62 = vpop.f32.mrf.mxu1 }
 0x14f   :  { %v600_v1 = vmax.f32 %v512_v61, 0.0  ;;  %v533_v40 = vadd.f32 %v2330_v62, %v3193_v4 }
 0x150   :  { %v524_v2 = vpop.f32.mrf.mxu1 }
 0x151   :  { %v625_v14 = vpack.c.bf16 %v600_v1, %v599_v51  ;;  %v525_v33 = vadd.f32 %v3193_v4, %v524_v2 }
 0x152   :  { %v2331_v15 = vpop.f32.mrf.mxu1 }
 0x153   :  { %806 = vmatmul.mubr.bf16.gmra.mxu1 %v622_v21  ;;  %v601_v21 = vmax.f32 %v517_v6, 0.0  ;;  %v603_v32 = vmax.f32 %v525_v33, 0.0  ;;  %v536_v41 = vadd.f32 %v2331_v15, %v3193_v4 }
 0x154   :  { %815 = vmatprep.mubr.bf16.mxu1 %v3846_v63  ;;  %v527_v27 = vpop.f32.mrf.mxu1 }
 0x155   :  { %v626_v20 = vpack.c.bf16 %v602_v26, %v601_v21  ;;  %v528_v34 = vadd.f32 %v3193_v4, %v527_v27  ;;  %v606_v12 = vmax.f32 %v536_v41, 0.0  ;;  %v2441_v41 = vld [vmem:[#allocation10 + $0x30] sm:$0xff]  }
 0x156   :  { %v2334_v35 = vpop.f32.mrf.mxu1 }
 0x157   :  { %v604_v36 = vmax.f32 %v528_v34, 0.0  ;;  %v549_v15 = vadd.f32 %v2334_v35, %v3193_v4  ;;  %v2440_v34 = vld [vmem:[#allocation10 + $0x38] sm:$0xff]  }
 0x158   :  { %2344 = vmatprep.subr.bf16.mxu0 %v2440_v34 }
 0x159   :  { %v627_v50 = vpack.c.bf16 %v604_v36, %v603_v32  ;;  %2345 = vmatpush3.bf16.msra.mxu0 %v2440_v34 }
 0x15a   :  { %2346 = vmatprep.subr.bf16.mxu0 %v2441_v41 }
 0x15b   :  { %816 = vmatmul.mubr.bf16.gmra.mxu1 %v623_v39  ;;  %v540_v39 = vpop.f32.mrf.mxu1 }
 0x15c   :  { %825 = vmatprep.mubr.bf16.mxu1 %v3846_v63  ;;  %v541_v1 = vadd.f32 %v3193_v4, %v540_v39 }
 0x15d   :  { %v2335_v10 = vpop.f32.mrf.mxu1  ;;  %2347 = vmatpush3.bf16.msra.mxu0 %v2441_v41  ;;  %v2447_v41 = vld [vmem:[#allocation10] sm:$0xff]  }
 0x15e   :  { %v607_v62 = vmax.f32 %v541_v1, 0.0  ;;  %v552_v21 = vadd.f32 %v2335_v10, %v3193_v4 }
 0x15f   :  { %v543_v61 = vpop.f32.mrf.mxu1 }
 0x160   :  { %v544_v2 = vadd.f32 %v3193_v4, %v543_v61  ;;  %v610_v33 = vmax.f32 %v552_v21, 0.0 }
 0x161   :  { %v2338_v6 = vpop.f32.mrf.mxu1 }
 0x162   :  { %v608_v13 = vmax.f32 %v544_v2, 0.0  ;;  %v565_v61 = vadd.f32 %v2338_v6, %v3193_v4  ;;  %v2443_v2 = vld [vmem:[#allocation10 + $0x20] sm:$0xff]  }
 0x163   :  { %826 = vmatmul.mubr.bf16.gmra.mxu1 %v624_v58  ;;  %v605_v58 = vmax.f32 %v533_v40, 0.0 }
 0x164   :  { %835 = vmatprep.mubr.bf16.mxu1 %v3846_v63  ;;  %v629_v26 = vpack.c.bf16 %v608_v13, %v607_v62  ;;  %v613_v13 = vmax.f32 %v565_v61, 0.0 }
 0x165   :  { %v628_v51 = vpack.c.bf16 %v606_v12, %v605_v58  ;;  %v2442_v58 = vld [vmem:[#allocation10 + $0x28] sm:$0xff]  }
 0x166   :  { %2348 = vmatprep.subr.bf16.mxu0 %v2442_v58 }
 0x167   :  { %2349 = vmatpush3.bf16.msra.mxu0 %v2442_v58 }
 0x168   :  { %2350 = vmatprep.subr.bf16.mxu0 %v2443_v2 }
 0x16b   :  { %836 = vmatmul.mubr.bf16.gmra.mxu1 %v625_v14  ;;  %v556_v14 = vpop.f32.mrf.mxu1  ;;  %2351 = vmatpush3.bf16.msra.mxu0 %v2443_v2 }
 0x16c   :  { %845 = vmatprep.mubr.bf16.mxu1 %v3846_v63  ;;  %v557_v39 = vadd.f32 %v3193_v4, %v556_v14 }
 0x16d   :  { %v2339_v27 = vpop.f32.mrf.mxu1 }
 0x16f   :  { %v559_v32 = vpop.f32.mrf.mxu1 }
 0x170   :  { %v560_v40 = vadd.f32 %v3193_v4, %v559_v32  ;;  %v2446_v32 = vld [vmem:[#allocation10 + $0x8] sm:$0xff]  }
 0x171   :  { %v2342_v35 = vpop.f32.mrf.mxu1 }
 0x172   :  { %v612_v10 = vmax.f32 %v560_v40, 0.0 }
 0x173   :  { %846 = vmatmul.mubr.bf16.gmra.mxu1 %v626_v20  ;;  %v609_v20 = vmax.f32 %v549_v15, 0.0  ;;  %v572_v12 = vpop.f32.mrf.mxu1  ;;  %v2444_v15 = vld [vmem:[#allocation10 + $0x18] sm:$0xff]  }
 0x174   :  { %855 = vmatprep.mubr.bf16.mxu1 %v3846_v63  ;;  %2352 = vmatprep.subr.bf16.mxu0 %v2444_v15 }
 0x175   :  { %v630_v36 = vpack.c.bf16 %v610_v33, %v609_v20  ;;  %v2343_v62 = vpop.f32.mrf.mxu1  ;;  %2353 = vmatpush3.bf16.msra.mxu0 %v2444_v15  ;;  %v573_v20 = vadd.f32 %v3193_v4, %v572_v12  ;;  %v651_v12 = vld [vmem:[%s3838_s6] sm:$0x3] }
 0x176   :  { %v3246_v61 = vrot.slane %v651_v12, %v3012_v5 }
 0x177   :  { %v575_v21 = vpop.f32.mrf.mxu1  ;;  %v615_v33 = vmax.f32 %v573_v20, 0.0 }
 0x178   :  { %v576_v6 = vadd.f32 %v3193_v4, %v575_v21 }
 0x17a   :  { %v616_v34 = vmax.f32 %v576_v6, 0.0 }
 0x17b   :  { %856 = vmatmul.mubr.bf16.gmra.mxu1 %v627_v50  ;;  %v611_v50 = vmax.f32 %v557_v39, 0.0  ;;  %v584_v39 = vadd.f32 %v2343_v62, %v3193_v4 }
 0x17c   :  { %865 = vmatprep.mubr.bf16.mxu1 %v3846_v63  ;;  %v633_v40 = vpack.c.bf16 %v616_v34, %v615_v33 }
 0x17d   :  { %v631_v1 = vpack.c.bf16 %v612_v10, %v611_v50  ;;  %v618_v10 = vmax.f32 %v584_v39, 0.0 }
 0x183   :  { %866 = vmatmul.mubr.bf16.gmra.mxu1 %v628_v51  ;;  %v568_v51 = vadd.f32 %v2339_v27, %v3193_v4  ;;  %v2445_v27 = vld [vmem:[#allocation10 + $0x10] sm:$0xff]  }
 0x184   :  { %875 = vmatprep.mubr.bf16.mxu1 %v3846_v63  ;;  %2354 = vmatprep.subr.bf16.mxu0 %v2445_v27 }
 0x185   :  { %v614_v14 = vmax.f32 %v568_v51, 0.0  ;;  %2355 = vmatpush3.bf16.msra.mxu0 %v2445_v27 }
 0x186   :  { %2356 = vmatprep.subr.bf16.mxu0 %v2446_v32 }
 0x189   :  { %2357 = vmatpush3.bf16.msra.mxu0 %v2446_v32 }
 0x18a   :  { %2358 = vmatprep.subr.bf16.mxu0 %v2447_v41 }
 0x18b   :  { %876 = vmatmul.mubr.bf16.gmra.mxu1 %v629_v26  ;;  %v632_v26 = vpack.c.bf16 %v614_v14, %v613_v13 }
 0x18c   :  { %885 = vmatprep.mubr.bf16.mxu1 %v3846_v63 }
 0x18d   :  { %2359 = vmatpush3.bf16.msra.mxu0 %v2447_v41 }
 0x193   :  { %886 = vmatmul.mubr.bf16.gmra.mxu1 %v630_v36  ;;  %v581_v36 = vadd.f32 %v2342_v35, %v3193_v4 }
 0x194   :  { %895 = vmatprep.mubr.bf16.mxu1 %v3846_v63 }
 0x195   :  { %v617_v50 = vmax.f32 %v581_v36, 0.0  ;;  %v3262_v36 = vsub.s32 1, %v3009_v3 }
 0x197   :  { %v634_v58 = vpack.c.bf16 %v618_v10, %v617_v50  ;;  %v3266_v41 = vrot.slane %v3014_v9, %v3262_v36 }
 0x19b   :  { %896 = vmatmul.mubr.bf16.gmra.mxu1 %v631_v1 }
 0x19c   :  { %905 = vmatprep.mubr.bf16.mxu1 %v3846_v63 }
 0x1a3   :  { %906 = vmatmul.mubr.bf16.gmra.mxu1 %v632_v26 }
 0x1a4   :  { %915 = vmatprep.mubr.bf16.mxu1 %v3846_v63 }
 0x1ab   :  { %916 = vmatmul.mubr.bf16.gmra.mxu1 %v633_v40 }
 0x1ac   :  { %925 = vmatprep.mubr.bf16.mxu1 %v3846_v63 }
 0x1b3   :  { %926 = vmatmul.mubr.bf16.gmra.mxu1 %v634_v58 }
 0x1fb   :  { %v777_v35 = vpop.f32.mrf.mxu1 }
 0x1fc   :  { %v778_v4 = vadd.f32 %v777_v35, %v3246_v61  ;;  %v124_v35 = vld [vmem:[#allocation2 + $0x8] sm:$0xff] }
 0x1fd   :  { %v779_v51 = vpop.f32.mrf.mxu1  ;;  %v200_v9 = vmul.f32 %v3266_v41, %v124_v35 }
 0x1fe   :  { %2472 = vtanh.f32 %v778_v4 }
 0x1ff   :  { %v781_v1 = vpop.f32.mrf.mxu1 }
 0x200   :  { %v782_v2 = vadd.f32 %v781_v1, %v3246_v61 }
 0x201   :  { %v3250_v62 = vpop.f32.mrf.mxu1 }
 0x202   :  { %2474 = vtanh.f32 %v782_v2  ;;  %v3273_v2 = vrot.slane %v3023_v11, %v3262_v36 }
 0x203   :  { %v787_v13 = vpop.f32.mrf.mxu1 }
 0x204   :  { %v788_v14 = vadd.f32 %v787_v13, %v3246_v61 }
 0x205   :  { %v3253_v15 = vpop.f32.mrf.mxu1 }
 0x206   :  { %2476 = vtanh.f32 %v788_v14 }
 0x207   :  { %v791_v21 = vpop.f32.mrf.mxu1 }
 0x208   :  { %v792_v26 = vadd.f32 %v791_v21, %v3246_v61 }
 0x209   :  { %v3256_v20 = vpop.f32.mrf.mxu1 }
 0x20a   :  { %2478 = vtanh.f32 %v792_v26  ;;  %v126_v26 = vld [vmem:[#allocation2 + $0x18] sm:$0xff] }
 0x20b   :  { %v2473_v6 = vpop.eup %2472  ;;  %v797_v27 = vpop.f32.mrf.mxu1 }
 0x20c   :  { %v968_v33 = vmul.f32 1.442695, %v2473_v6  ;;  %v798_v34 = vadd.f32 %v797_v27, %v3246_v61  ;;  %1096 = vadd.xlane.f32.xlu0 %v2473_v6  ;;  %v3280_v27 = vrot.slane %v651_v12, %v3262_v36 }
 0x20d   :  { %v3259_v32 = vpop.f32.mrf.mxu1 }
 0x20e   :  { %2480 = vpow2.f32 %v968_v33 }
 0x20f   :  { %v2475_v39 = vpop.eup %2474  ;;  %2482 = vtanh.f32 %v798_v34  ;;  %v801_v40 = vpop.f32.mrf.mxu1  ;;  %v128_v34 = vld [vmem:[#allocation2 + $0x28] sm:$0xff] }
 0x210   :  { %v970_v50 = vmul.f32 1.442695, %v2475_v39  ;;  %v802_v10 = vadd.f32 %v801_v40, %v3246_v61  ;;  %1098 = vadd.xlane.f32.xlu0 %v2475_v39  ;;  %v202_v40 = vmul.f32 %v3266_v41, %v126_v26 }
 0x211   :  { %v3269_v58 = vpop.f32.mrf.mxu1 }
 0x212   :  { %2484 = vpow2.f32 %v970_v50  ;;  %v276_v50 = vadd.f32 %v3273_v2, %v200_v9 }
 0x213   :  { %v2477_v4 = vpop.eup %2476  ;;  %2486 = vtanh.f32 %v802_v10  ;;  %v807_v1 = vpop.f32.mrf.mxu1 }
 0x214   :  { %v972_v13 = vmul.f32 1.442695, %v2477_v4  ;;  %v808_v14 = vadd.f32 %v807_v1, %v3246_v61  ;;  %1100 = vadd.xlane.f32.xlu1 %v2477_v4  ;;  %v204_v4 = vmul.f32 %v3266_v41, %v128_v34 }
 0x215   :  { %v3277_v21 = vpop.f32.mrf.mxu1 }
 0x216   :  { %2488 = vpow2.f32 %v972_v13  ;;  %v780_v13 = vadd.f32 %v779_v51, %v3280_v27  ;;  %v784_v51 = vadd.f32 %v3250_v62, %v3280_v27  ;;  %v790_v62 = vadd.f32 %v3253_v15, %v3280_v27 }
 0x217   :  { %v2479_v6 = vpop.eup %2478  ;;  %2490 = vtanh.f32 %v808_v14  ;;  %v811_v33 = vpop.f32.mrf.mxu1  ;;  %v130_v14 = vld [vmem:[#allocation2 + $0x38] sm:$0xff]  ;;  %v794_v15 = vadd.f32 %v3256_v20, %v3280_v27 }
 0x218   :  { %v974_v39 = vmul.f32 1.442695, %v2479_v6  ;;  %v812_v11 = vadd.f32 %v811_v33, %v3246_v61  ;;  %1102 = vadd.xlane.f32.xlu1 %v2479_v6  ;;  %v278_v6 = vadd.f32 %v3273_v2, %v202_v40  ;;  %v206_v34 = vmul.f32 %v3266_v41, %v130_v14 }
 0x219   :  { %v3285_v10 = vpop.f32.mrf.mxu1 }
 0x21a   :  { %2492 = vpow2.f32 %v974_v39 }
 0x21b   :  { %v2481_v35 = vpop.eup %2480  ;;  %2494 = vtanh.f32 %v812_v11  ;;  %v817_v12 = vpop.f32.mrf.mxu1 }
 0x21c   :  { %v2483_v1 = vpop.eup %2482  ;;  %v818_v0 = vadd.f32 %v817_v12, %v3246_v61  ;;  %v1032_v33 = vmul.f32 %v2481_v35, %v276_v50  ;;  %v280_v12 = vadd.f32 %v3273_v2, %v204_v4 }
 0x21d   :  { %v976_v26 = vmul.f32 1.442695, %v2483_v1  ;;  %1104 = vadd.xlane.f32.xlu0 %v2483_v1  ;;  %v3291_v9 = vpop.f32.mrf.mxu1 }
 0x21e   :  { %2496 = vtanh.f32 %v818_v0  ;;  %v1064_v39 = vadd.f32 %v1032_v33, %v780_v13  ;;  %v132_v0 = vld [vmem:[#allocation2 + $0x48] sm:$0xff]  ;;  %v282_v33 = vadd.f32 %v3273_v2, %v206_v34 }
 0x21f   :  { %v2485_v63 = vpop.eup %2484  ;;  %2498 = vpow2.f32 %v976_v26  ;;  %v821_v11 = vpop.f32.mrf.mxu1 }
 0x220   :  { %v2487_v3 = vpop.eup %2486  ;;  %v822_v40 = vadd.f32 %v821_v11, %v3246_v61  ;;  %v1033_v50 = vmul.f32 %v2485_v63, %v278_v6  ;;  %1981 = vst [vmem:[#allocation13] sm:$0xff] %v1064_v39 }
 0x221   :  { %v978_v35 = vmul.f32 1.442695, %v2487_v3  ;;  %1106 = vadd.xlane.f32.xlu1 %v2487_v3  ;;  %v3298_v1 = vpop.f32.mrf.mxu1  ;;  %v208_v3 = vmul.f32 %v3266_v41, %v132_v0 }
 0x222   :  { %2500 = vtanh.f32 %v822_v40  ;;  %v1065_v13 = vadd.f32 %v1033_v50, %v784_v51  ;;  %v134_v50 = vld [vmem:[#allocation2 + $0x58] sm:$0xff] }
 0x223   :  { %v2489_v14 = vpop.eup %2488  ;;  %2502 = vpow2.f32 %v978_v35  ;;  %v827_v26 = vpop.f32.mrf.mxu1  ;;  %v284_v0 = vadd.f32 %v3273_v2, %v208_v3  ;;  %v800_v3 = vadd.f32 %v3259_v32, %v3280_v27  ;;  %v804_v32 = vadd.f32 %v3269_v58, %v3280_v27 }
 0x224   :  { %v2491_v60 = vpop.eup %2490  ;;  %v1034_v4 = vmul.f32 %v2489_v14, %v280_v12  ;;  %v828_v63 = vadd.f32 %v827_v26, %v3246_v61  ;;  %v1160_v6 = vpack.c.bf16 %v1065_v13, %v1064_v39  ;;  %1982 = vst [vmem:[#allocation13 + $0x10] sm:$0xff] %v1065_v13 }
 0x225   :  { %v980_v11 = vmul.f32 1.442695, %v2491_v60  ;;  %1108 = vadd.xlane.f32.xlu0 %v2491_v60  ;;  %v3305_v40 = vpop.f32.mrf.mxu1  ;;  %v210_v60 = vmul.f32 %v3266_v41, %v134_v50 }
 0x226   :  { %v1066_v51 = vadd.f32 %v1034_v4, %v790_v62  ;;  %2504 = vtanh.f32 %v828_v63  ;;  %2360 = vmatprep.mubr.bf16.mxu0 %v1160_v6  ;;  %v136_v62 = vld [vmem:[#allocation2 + $0x68] sm:$0xff] }
 0x227   :  { %v2493_v34 = vpop.eup %2492  ;;  %2506 = vpow2.f32 %v980_v11  ;;  %v831_v35 = vpop.f32.mrf.mxu1 }
 0x228   :  { %v2495_v59 = vpop.eup %2494  ;;  %1983 = vst [vmem:[#allocation13 + $0x20] sm:$0xff] %v1066_v51  ;;  %v1035_v39 = vmul.f32 %v2493_v34, %v282_v33  ;;  %v832_v12 = vadd.f32 %v831_v35, %v3246_v61  ;;  %v212_v34 = vmul.f32 %v3266_v41, %v136_v62  ;;  %v140_v62 = vld [vmem:[#allocation2 + $0x88] sm:$0xff] }
 0x229   :  { %v982_v13 = vmul.f32 1.442695, %v2495_v59  ;;  %1110 = vadd.xlane.f32.xlu1 %v2495_v59  ;;  %v3312_v14 = vpop.f32.mrf.mxu1  ;;  %v286_v59 = vadd.f32 %v3273_v2, %v210_v60 }
 0x22a   :  { %v1067_v26 = vadd.f32 %v1035_v39, %v794_v15  ;;  %2508 = vtanh.f32 %v832_v12  ;;  %v138_v15 = vld [vmem:[#allocation2 + $0x78] sm:$0xff]  ;;  %v288_v60 = vadd.f32 %v3273_v2, %v212_v34 }
 0x22b   :  { %v2497_v4 = vpop.eup %2496  ;;  %2510 = vpow2.f32 %v982_v13  ;;  %v837_v63 = vpop.f32.mrf.mxu1 }
 0x22c   :  { %v2499_v6 = vpop.eup %2498  ;;  %1984 = vst [vmem:[#allocation13 + $0x30] sm:$0xff] %v1067_v26  ;;  %v984_v20 = vmul.f32 1.442695, %v2497_v4  ;;  %v838_v33 = vadd.f32 %v837_v63, %v3246_v61  ;;  %1112 = vadd.xlane.f32.xlu0 %v2497_v4  ;;  %v1161_v11 = vpack.c.bf16 %v1067_v26, %v1066_v51  ;;  %v214_v26 = vmul.f32 %v3266_v41, %v138_v15 }
 0x22d   :  { %v1036_v50 = vmul.f32 %v2499_v6, %v284_v0  ;;  %v3319_v35 = vpop.f32.mrf.mxu1 }
 0x22e   :  { %2512 = vpow2.f32 %v984_v20  ;;  %2361 = vmatmul.mubr.bf16.vlgmr.msra.gmra.mxu0 %v1161_v11  ;;  %v290_v15 = vadd.f32 %v3273_v2, %v214_v26  ;;  %v144_v26 = vld [vmem:[#allocation2 + $0xa8] sm:$0xff] }
 0x22f   :  { %v2501_v39 = vpop.eup %2500  ;;  %v1068_v12 = vadd.f32 %v1036_v50, %v800_v3  ;;  %2514 = vtanh.f32 %v838_v33  ;;  %v841_v13 = vpop.f32.mrf.mxu1  ;;  %v216_v50 = vmul.f32 %v3266_v41, %v140_v62 }
 0x230   :  { %v2503_v63 = vpop.eup %2502  ;;  %v986_v4 = vmul.f32 1.442695, %v2501_v39  ;;  %v842_v51 = vadd.f32 %v841_v13, %v3246_v61  ;;  %1114 = vadd.xlane.f32.xlu1 %v2501_v39  ;;  %v142_v39 = vld [vmem:[#allocation2 + $0x98] sm:$0xff] }
 0x231   :  { %1985 = vst [vmem:[#allocation13 + $0x40] sm:$0xff] %v1068_v12  ;;  %v1037_v0 = vmul.f32 %v2503_v63, %v286_v59  ;;  %v3326_v6 = vpop.f32.mrf.mxu1  ;;  %v810_v59 = vadd.f32 %v3277_v21, %v3280_v27 }
 0x232   :  { %2516 = vpow2.f32 %v986_v4 }
 0x233   :  { %v2505_v20 = vpop.eup %2504  ;;  %v1069_v33 = vadd.f32 %v1037_v0, %v804_v32  ;;  %2518 = vtanh.f32 %v842_v51  ;;  %v847_v11 = vpop.f32.mrf.mxu1  ;;  %v218_v0 = vmul.f32 %v3266_v41, %v142_v39  ;;  %v2450_v39 = vld [vmem:[#allocation11 + $0x74] ss:$8 sps:$4 sm:$0xff]  }
 0x234   :  { %v2507_v3 = vpop.eup %2506  ;;  %v988_v13 = vmul.f32 1.442695, %v2505_v20  ;;  %v848_v58 = vadd.f32 %v847_v11, %v3246_v61  ;;  %1116 = vadd.xlane.f32.xlu0 %v2505_v20  ;;  %v292_v20 = vadd.f32 %v3273_v2, %v216_v50  ;;  %1564 = vmatprep.subr.bf16.mxu0 %v2450_v39 }
 0x235   :  { %1986 = vst [vmem:[#allocation13 + $0x50] sm:$0xff] %v1069_v33  ;;  %v1038_v34 = vmul.f32 %v2507_v3, %v288_v60  ;;  %v3333_v63 = vpop.f32.mrf.mxu1  ;;  %v1162_v4 = vpack.c.bf16 %v1069_v33, %v1068_v12  ;;  %v814_v60 = vadd.f32 %v3285_v10, %v3280_v27  ;;  %v2448_v3 = vld [vmem:[#allocation11 + $0x70] ss:$8 sps:$4 sm:$0xff]   ;;  %v220_v10 = vmul.f32 %v3266_v41, %v144_v26 }
 0x236   :  { %2520 = vpow2.f32 %v988_v13  ;;  %1565 = vmatpush1.bf16.msra.mxu0 %v2448_v3  ;;  %v824_v26 = vadd.f32 %v3298_v1, %v3280_v27 }
 0x237   :  { %v2509_v51 = vpop.eup %2508  ;;  %v1070_v32 = vadd.f32 %v1038_v34, %v810_v59  ;;  %2522 = vtanh.f32 %v848_v58  ;;  %2364 = vmatprep.mubr.bf16.mxu0 %v1162_v4  ;;  %v851_v62 = vpop.f32.mrf.mxu1  ;;  %v294_v59 = vadd.f32 %v3273_v2, %v218_v0  ;;  %v820_v4 = vadd.f32 %v3291_v9, %v3280_v27 }
 0x238   :  { %v2511_v11 = vpop.eup %2510  ;;  %v990_v55 = vmul.f32 1.442695, %v2509_v51  ;;  %v852_v21 = vadd.f32 %v851_v62, %v3246_v61  ;;  %1118 = vadd.xlane.f32.xlu1 %v2509_v51  ;;  %v296_v39 = vadd.f32 %v3273_v2, %v220_v10 }
 0x239   :  { %1987 = vst [vmem:[#allocation13 + $0x60] sm:$0xff] %v1070_v32  ;;  %v1039_v12 = vmul.f32 %v2511_v11, %v290_v15  ;;  %v3340_v33 = vpop.f32.mrf.mxu1  ;;  %v146_v15 = vld [vmem:[#allocation2 + $0xb8] sm:$0xff] }
 0x23a   :  { %2524 = vpow2.f32 %v990_v55 }
 0x23b   :  { %v2513_v13 = vpop.eup %2512  ;;  %v1071_v58 = vadd.f32 %v1039_v12, %v814_v60  ;;  %2526 = vtanh.f32 %v852_v21  ;;  %v857_v50 = vpop.f32.mrf.mxu1  ;;  %v222_v12 = vmul.f32 %v3266_v41, %v146_v15 }
 0x23c   :  { %v2515_v34 = vpop.eup %2514  ;;  %v1040_v51 = vmul.f32 %v2513_v13, %v292_v20  ;;  %v858_v62 = vadd.f32 %v857_v50, %v3246_v61 }
 0x23d   :  { %1988 = vst [vmem:[#allocation13 + $0x70] sm:$0xff] %v1071_v58  ;;  %v992_v55 = vmul.f32 1.442695, %v2515_v34  ;;  %1120 = vadd.xlane.f32.xlu0 %v2515_v34  ;;  %v3347_v11 = vpop.f32.mrf.mxu1  ;;  %v1163_v0 = vpack.c.bf16 %v1071_v58, %v1070_v32  ;;  %v2451_v58 = vld [vmem:[#allocation11 + $0x60] ss:$8 sps:$4 sm:$0xff]  }
 0x23e   :  { %v1072_v21 = vadd.f32 %v1040_v51, %v820_v4  ;;  %2528 = vtanh.f32 %v858_v62  ;;  %v2453_v34 = vld [vmem:[#allocation11 + $0x64] ss:$8 sps:$4 sm:$0xff]   ;;  %v298_v62 = vadd.f32 %v3273_v2, %v222_v12 }
 0x23f   :  { %v2517_v60 = vpop.eup %2516  ;;  %2530 = vpow2.f32 %v992_v55  ;;  %2365 = vmatmul.mubr.bf16.gmra.mxu0 %v1163_v0  ;;  %v861_v9 = vpop.f32.mrf.mxu1  ;;  %v148_v51 = vld [vmem:[#allocation2 + $0xc8] sm:$0xff]  ;;  %1566 = vmatprep.subr.bf16.mxu0 %v2453_v34 }
 0x240   :  { %v2519_v20 = vpop.eup %2518  ;;  %1989 = vst [vmem:[#allocation13 + $0x80] sm:$0xff] %v1072_v21  ;;  %v1041_v3 = vmul.f32 %v2517_v60, %v294_v59  ;;  %v862_v13 = vadd.f32 %v861_v9, %v3246_v61  ;;  %v830_v59 = vadd.f32 %v3305_v40, %v3280_v27  ;;  %1567 = vmatpush1.bf16.msra.mxu0 %v2451_v58 }
 0x241   :  { %v994_v50 = vmul.f32 1.442695, %v2519_v20  ;;  %1122 = vadd.xlane.f32.xlu1 %v2519_v20  ;;  %v3354_v32 = vpop.f32.mrf.mxu1  ;;  %v224_v9 = vmul.f32 %v3266_v41, %v148_v51  ;;  %v834_v40 = vadd.f32 %v3312_v14, %v3280_v27 }
 0x242   :  { %v1073_v4 = vadd.f32 %v1041_v3, %v824_v26  ;;  %2532 = vtanh.f32 %v862_v13  ;;  %v150_v3 = vld [vmem:[#allocation2 + $0xd8] sm:$0xff] }
 0x243   :  { %v2521_v15 = vpop.eup %2520  ;;  %2534 = vpow2.f32 %v994_v50  ;;  %v867_v55 = vpop.f32.mrf.mxu1  ;;  %v300_v58 = vadd.f32 %v3273_v2, %v224_v9 }
 0x244   :  { %v2523_v1 = vpop.eup %2522  ;;  %1990 = vst [vmem:[#allocation13 + $0x90] sm:$0xff] %v1073_v4  ;;  %v1042_v10 = vmul.f32 %v2521_v15, %v296_v39  ;;  %v868_v0 = vadd.f32 %v867_v55, %v3246_v61  ;;  %v1164_v60 = vpack.c.bf16 %v1073_v4, %v1072_v21  ;;  %v226_v4 = vmul.f32 %v3266_v41, %v150_v3 }
 0x245   :  { %v996_v20 = vmul.f32 1.442695, %v2523_v1  ;;  %1124 = vadd.xlane.f32.xlu0 %v2523_v1  ;;  %v3361_v26 = vpop.f32.mrf.mxu1  ;;  %v152_v1 = vld [vmem:[#allocation2 + $0xe8] sm:$0xff]  ;;  %v840_v3 = vadd.f32 %v3319_v35, %v3280_v27  ;;  %v844_v35 = vadd.f32 %v3326_v6, %v3280_v27 }
 0x246   :  { %v1074_v12 = vadd.f32 %v1042_v10, %v830_v59  ;;  %2536 = vtanh.f32 %v868_v0  ;;  %2368 = vmatprep.mubr.bf16.mxu0 %v1164_v60  ;;  %v2454_v59 = vld [vmem:[#allocation11 + $0x50] ss:$8 sps:$4 sm:$0xff]   ;;  %v2456_v10 = vld [vmem:[#allocation11 + $0x54] ss:$8 sps:$4 sm:$0xff]  }
 0x247   :  { %v2525_v13 = vpop.eup %2524  ;;  %2538 = vpow2.f32 %v996_v20  ;;  %v871_v50 = vpop.f32.mrf.mxu1  ;;  %1568 = vmatprep.subr.bf16.mxu0 %v2456_v10 }
 0x248   :  { %v2527_v34 = vpop.eup %2526  ;;  %1991 = vst [vmem:[#allocation13 + $0xa0] sm:$0xff] %v1074_v12  ;;  %v1043_v21 = vmul.f32 %v2525_v13, %v298_v62  ;;  %v872_v39 = vadd.f32 %v871_v50, %v3246_v61  ;;  %v302_v50 = vadd.f32 %v3273_v2, %v226_v4  ;;  %1569 = vmatpush1.bf16.msra.mxu0 %v2454_v59  ;;  %v156_v59 = vld [vmem:[#allocation2 + $0x108] sm:$0xff] }
 0x249   :  { %v998_v51 = vmul.f32 1.442695, %v2527_v34  ;;  %1126 = vadd.xlane.f32.xlu1 %v2527_v34  ;;  %v3368_v15 = vpop.f32.mrf.mxu1  ;;  %v228_v34 = vmul.f32 %v3266_v41, %v152_v1 }
 0x24a   :  { %v1075_v55 = vadd.f32 %v1043_v21, %v834_v40  ;;  %2540 = vtanh.f32 %v872_v39  ;;  %v154_v21 = vld [vmem:[#allocation2 + $0xf8] sm:$0xff] }
 0x24b   :  { %v2529_v0 = vpop.eup %2528  ;;  %2542 = vpow2.f32 %v998_v51  ;;  %v877_v60 = vpop.f32.mrf.mxu1  ;;  %v304_v4 = vadd.f32 %v3273_v2, %v228_v34  ;;  %v230_v1 = vmul.f32 %v3266_v41, %v154_v21  ;;  %v850_v34 = vadd.f32 %v3333_v63, %v3280_v27 }
 0x24c   :  { %v2531_v14 = vpop.eup %2530  ;;  %1992 = vst [vmem:[#allocation13 + $0xb0] sm:$0xff] %v1075_v55  ;;  %v1000_v62 = vmul.f32 1.442695, %v2529_v0  ;;  %v878_v20 = vadd.f32 %v877_v60, %v3246_v61  ;;  %1128 = vadd.xlane.f32.xlu0 %v2529_v0  ;;  %v1165_v9 = vpack.c.bf16 %v1075_v55, %v1074_v12 }
 0x24d   :  { %v1044_v13 = vmul.f32 %v2531_v14, %v300_v58  ;;  %v3375_v40 = vpop.f32.mrf.mxu1  ;;  %v2457_v14 = vld [vmem:[#allocation11 + $0x40] ss:$8 sps:$4 sm:$0xff]  }
 0x24e   :  { %2544 = vpow2.f32 %v1000_v62  ;;  %2369 = vmatmul.mubr.bf16.gmra.mxu0 %v1165_v9  ;;  %v2459_v62 = vld [vmem:[#allocation11 + $0x44] ss:$8 sps:$4 sm:$0xff]  }
 0x24f   :  { %v2533_v39 = vpop.eup %2532  ;;  %v1076_v51 = vadd.f32 %v1044_v13, %v840_v3  ;;  %2546 = vtanh.f32 %v878_v20  ;;  %v881_v0 = vpop.f32.mrf.mxu1  ;;  %1570 = vmatprep.subr.bf16.mxu0 %v2459_v62 }
 0x250   :  { %v2535_v12 = vpop.eup %2534  ;;  %v1002_v55 = vmul.f32 1.442695, %v2533_v39  ;;  %v882_v10 = vadd.f32 %v881_v0, %v3246_v61  ;;  %1130 = vadd.xlane.f32.xlu1 %v2533_v39  ;;  %v232_v39 = vmul.f32 %v3266_v41, %v156_v59  ;;  %v158_v0 = vld [vmem:[#allocation2 + $0x118] sm:$0xff]  ;;  %1571 = vmatpush1.bf16.msra.mxu0 %v2457_v14 }
 0x251   :  { %1993 = vst [vmem:[#allocation13 + $0xc0] sm:$0xff] %v1076_v51  ;;  %v1045_v58 = vmul.f32 %v2535_v12, %v302_v50  ;;  %v3382_v60 = vpop.f32.mrf.mxu1  ;;  %v306_v12 = vadd.f32 %v3273_v2, %v230_v1  ;;  %v234_v59 = vmul.f32 %v3266_v41, %v158_v0  ;;  %v160_v1 = vld [vmem:[#allocation2 + $0x128] sm:$0xff] }
 0x252   :  { %2548 = vpow2.f32 %v1002_v55 }
 0x253   :  { %v2537_v20 = vpop.eup %2536  ;;  %v1077_v9 = vadd.f32 %v1045_v58, %v844_v35  ;;  %2550 = vtanh.f32 %v882_v10  ;;  %v887_v3 = vpop.f32.mrf.mxu1 }
 0x254   :  { %v2539_v13 = vpop.eup %2538  ;;  %v1004_v6 = vmul.f32 1.442695, %v2537_v20  ;;  %v888_v50 = vadd.f32 %v887_v3, %v3246_v61  ;;  %1132 = vadd.xlane.f32.xlu0 %v2537_v20  ;;  %v308_v3 = vadd.f32 %v3273_v2, %v232_v39 }
 0x255   :  { %1994 = vst [vmem:[#allocation13 + $0xd0] sm:$0xff] %v1077_v9  ;;  %v1046_v21 = vmul.f32 %v2539_v13, %v304_v4  ;;  %v3389_v55 = vpop.f32.mrf.mxu1  ;;  %v1166_v10 = vpack.c.bf16 %v1077_v9, %v1076_v51  ;;  %v854_v51 = vadd.f32 %v3340_v33, %v3280_v27  ;;  %v2460_v9 = vld [vmem:[#allocation11 + $0x30] ss:$8 sps:$4 sm:$0xff]   ;;  %v2462_v13 = vld [vmem:[#allocation11 + $0x34] ss:$8 sps:$4 sm:$0xff]   ;;  %v236_v33 = vmul.f32 %v3266_v41, %v160_v1 }
 0x256   :  { %2552 = vpow2.f32 %v1004_v6  ;;  %1572 = vmatprep.subr.bf16.mxu0 %v2462_v13 }
 0x257   :  { %v2541_v35 = vpop.eup %2540  ;;  %v1078_v58 = vadd.f32 %v1046_v21, %v850_v34  ;;  %2554 = vtanh.f32 %v888_v50  ;;  %2372 = vmatprep.mubr.bf16.mxu0 %v1166_v10  ;;  %v891_v20 = vpop.f32.mrf.mxu1  ;;  %v310_v50 = vadd.f32 %v3273_v2, %v234_v59  ;;  %v860_v21 = vadd.f32 %v3347_v11, %v3280_v27  ;;  %1573 = vmatpush1.bf16.msra.mxu0 %v2460_v9 }
 0x258   :  { %v2543_v62 = vpop.eup %2542  ;;  %v1006_v54 = vmul.f32 1.442695, %v2541_v35  ;;  %v892_v63 = vadd.f32 %v891_v20, %v3246_v61  ;;  %1134 = vadd.xlane.f32.xlu1 %v2541_v35  ;;  %v312_v9 = vadd.f32 %v3273_v2, %v236_v33 }
 0x259   :  { %1995 = vst [vmem:[#allocation13 + $0xe0] sm:$0xff] %v1078_v58  ;;  %v1047_v4 = vmul.f32 %v2543_v62, %v306_v12  ;;  %v3396_v14 = vpop.f32.mrf.mxu1  ;;  %v162_v12 = vld [vmem:[#allocation2 + $0x138] sm:$0xff] }
 0x25a   :  { %2556 = vpow2.f32 %v1006_v54 }
 0x25b   :  { %v2545_v0 = vpop.eup %2544  ;;  %v1079_v6 = vadd.f32 %v1047_v4, %v854_v51  ;;  %2558 = vtanh.f32 %v892_v63  ;;  %v897_v39 = vpop.f32.mrf.mxu1  ;;  %v238_v51 = vmul.f32 %v3266_v41, %v162_v12  ;;  %v864_v4 = vadd.f32 %v3354_v32, %v3280_v27 }
 0x25c   :  { %v2547_v34 = vpop.eup %2546  ;;  %v1048_v10 = vmul.f32 %v2545_v0, %v308_v3  ;;  %v898_v35 = vadd.f32 %v897_v39, %v3246_v61  ;;  %v2465_v39 = vld [vmem:[#allocation11 + $0x24] ss:$8 sps:$4 sm:$0xff]  }
 0x25d   :  { %1996 = vst [vmem:[#allocation13 + $0xf0] sm:$0xff] %v1079_v6  ;;  %v1008_v54 = vmul.f32 1.442695, %v2547_v34  ;;  %1136 = vadd.xlane.f32.xlu0 %v2547_v34  ;;  %v3403_v20 = vpop.f32.mrf.mxu1  ;;  %v1167_v59 = vpack.c.bf16 %v1079_v6, %v1078_v58  ;;  %v2463_v6 = vld [vmem:[#allocation11 + $0x20] ss:$8 sps:$4 sm:$0xff]   ;;  %v314_v12 = vadd.f32 %v3273_v2, %v238_v51  ;;  %1574 = vmatprep.subr.bf16.mxu0 %v2465_v39 }
 0x25e   :  { %v1080_v62 = vadd.f32 %v1048_v10, %v860_v21  ;;  %2560 = vtanh.f32 %v898_v35  ;;  %v164_v21 = vld [vmem:[#allocation2 + $0x148] sm:$0xff]  ;;  %1575 = vmatpush1.bf16.msra.mxu0 %v2463_v6 }
 0x25f   :  { %v2549_v63 = vpop.eup %2548  ;;  %2562 = vpow2.f32 %v1008_v54  ;;  %2373 = vmatmul.mubr.bf16.gmra.mxu0 %v1167_v59  ;;  %v901_v11 = vpop.f32.mrf.mxu1 }
 0x260   :  { %v2551_v3 = vpop.eup %2550  ;;  %1997 = vst [vmem:[#allocation13 + $0x100] sm:$0xff] %v1080_v62  ;;  %v1049_v1 = vmul.f32 %v2549_v63, %v310_v50  ;;  %v902_v13 = vadd.f32 %v901_v11, %v3246_v61  ;;  %v870_v50 = vadd.f32 %v3361_v26, %v3280_v27  ;;  %v240_v63 = vmul.f32 %v3266_v41, %v164_v21 }
 0x261   :  { %v1010_v0 = vmul.f32 1.442695, %v2551_v3  ;;  %1138 = vadd.xlane.f32.xlu1 %v2551_v3  ;;  %v3410_v58 = vpop.f32.mrf.mxu1  ;;  %v874_v26 = vadd.f32 %v3368_v15, %v3280_v27 }
 0x262   :  { %v1081_v34 = vadd.f32 %v1049_v1, %v864_v4  ;;  %2564 = vtanh.f32 %v902_v13  ;;  %v166_v4 = vld [vmem:[#allocation2 + $0x158] sm:$0xff]  ;;  %v316_v6 = vadd.f32 %v3273_v2, %v240_v63 }
 0x263   :  { %v2553_v10 = vpop.eup %2552  ;;  %2566 = vpow2.f32 %v1010_v0  ;;  %v907_v35 = vpop.f32.mrf.mxu1  ;;  %v242_v39 = vmul.f32 %v3266_v41, %v166_v4 }
 0x264   :  { %v2555_v32 = vpop.eup %2554  ;;  %1998 = vst [vmem:[#allocation13 + $0x110] sm:$0xff] %v1081_v34  ;;  %v1050_v33 = vmul.f32 %v2553_v10, %v312_v9  ;;  %v908_v54 = vadd.f32 %v907_v35, %v3246_v61  ;;  %v1168_v59 = vpack.c.bf16 %v1081_v34, %v1080_v62  ;;  %v168_v35 = vld [vmem:[#allocation2 + $0x168] sm:$0xff] }
 0x265   :  { %v1012_v11 = vmul.f32 1.442695, %v2555_v32  ;;  %1140 = vadd.xlane.f32.xlu0 %v2555_v32  ;;  %v3417_v3 = vpop.f32.mrf.mxu1  ;;  %v2466_v32 = vld [vmem:[#allocation11 + $0x10] ss:$8 sps:$4 sm:$0xff]  }
 0x266   :  { %v1082_v51 = vadd.f32 %v1050_v33, %v870_v50  ;;  %2568 = vtanh.f32 %v908_v54  ;;  %2376 = vmatprep.mubr.bf16.mxu0 %v1168_v59  ;;  %v2468_v50 = vld [vmem:[#allocation11 + $0x14] ss:$8 sps:$4 sm:$0xff]  }
 0x267   :  { %v2557_v1 = vpop.eup %2556  ;;  %2570 = vpow2.f32 %v1012_v11  ;;  %v911_v13 = vpop.f32.mrf.mxu1  ;;  %1576 = vmatprep.subr.bf16.mxu0 %v2468_v50  ;;  %v880_v11 = vadd.f32 %v3375_v40, %v3280_v27  ;;  %v884_v40 = vadd.f32 %v3382_v60, %v3280_v27  ;;  %v890_v60 = vadd.f32 %v3389_v55, %v3280_v27 }
 0x268   :  { %v2559_v0 = vpop.eup %2558  ;;  %1999 = vst [vmem:[#allocation13 + $0x120] sm:$0xff] %v1082_v51  ;;  %v1051_v62 = vmul.f32 %v2557_v1, %v314_v12  ;;  %v912_v9 = vadd.f32 %v911_v13, %v3246_v61  ;;  %v318_v1 = vadd.f32 %v3273_v2, %v242_v39  ;;  %v244_v13 = vmul.f32 %v3266_v41, %v168_v35 }
 0x269   :  { %v1014_v34 = vmul.f32 1.442695, %v2559_v0  ;;  %1142 = vadd.xlane.f32.xlu1 %v2559_v0  ;;  %v3424_v21 = vpop.f32.mrf.mxu1  ;;  %1577 = vmatpush1.bf16.msra.mxu0 %v2466_v32  ;;  %v172_v32 = vld [vmem:[#allocation2 + $0x188] sm:$0xff] }
 0x26a   :  { %v1083_v10 = vadd.f32 %v1051_v62, %v874_v26  ;;  %2572 = vtanh.f32 %v912_v9  ;;  %v170_v26 = vld [vmem:[#allocation2 + $0x178] sm:$0xff]  ;;  %v320_v39 = vadd.f32 %v3273_v2, %v244_v13 }
 0x26b   :  { %v2561_v33 = vpop.eup %2560  ;;  %2574 = vpow2.f32 %v1014_v34  ;;  %v917_v54 = vpop.f32.mrf.mxu1  ;;  %v246_v35 = vmul.f32 %v3266_v41, %v170_v26  ;;  %v174_v26 = vld [vmem:[#allocation2 + $0x198] sm:$0xff] }
 0x26c   :  { %v2563_v15 = vpop.eup %2562  ;;  %2000 = vst [vmem:[#allocation13 + $0x130] sm:$0xff] %v1083_v10  ;;  %v1016_v12 = vmul.f32 1.442695, %v2561_v33  ;;  %v918_v59 = vadd.f32 %v917_v54, %v3246_v61  ;;  %1144 = vadd.xlane.f32.xlu0 %v2561_v33  ;;  %v1169_v63 = vpack.c.bf16 %v1083_v10, %v1082_v51  ;;  %v250_v55 = vmul.f32 %v3266_v41, %v174_v26  ;;  %v178_v26 = vld [vmem:[#allocation2 + $0x1b8] sm:$0xff] }
 0x26d   :  { %v1052_v4 = vmul.f32 %v2563_v15, %v316_v6  ;;  %v3431_v0 = vpop.f32.mrf.mxu1  ;;  %v322_v13 = vadd.f32 %v3273_v2, %v246_v35 }
 0x26e   :  { %2576 = vpow2.f32 %v1016_v12  ;;  %2377 = vmatmul.mubr.bf16.gmra.mxu0 %v1169_v63  ;;  %v248_v63 = vmul.f32 %v3266_v41, %v172_v32 }
 0x26f   :  { %v2565_v62 = vpop.eup %2564  ;;  %v1084_v9 = vadd.f32 %v1052_v4, %v880_v11  ;;  %2578 = vtanh.f32 %v918_v59  ;;  %v921_v34 = vpop.f32.mrf.mxu1 }
 0x270   :  { %v2567_v51 = vpop.eup %2566  ;;  %v1018_v10 = vmul.f32 1.442695, %v2565_v62  ;;  %v922_v50 = vadd.f32 %v921_v34, %v3246_v61  ;;  %1146 = vadd.xlane.f32.xlu1 %v2565_v62 }
 0x271   :  { %2001 = vst [vmem:[#allocation13 + $0x140] sm:$0xff] %v1084_v9  ;;  %v1053_v6 = vmul.f32 %v2567_v51, %v318_v1  ;;  %v3438_v33 = vpop.f32.mrf.mxu1  ;;  %v2471_v51 = vld [vmem:[#allocation11 + $0x4] ss:$8 sps:$4 sm:$0xff]  }
 0x272   :  { %2580 = vpow2.f32 %v1018_v10  ;;  %1578 = vmatprep.subr.bf16.mxu0 %v2471_v51 }
 0x273   :  { %v2569_v54 = vpop.eup %2568  ;;  %v1085_v15 = vadd.f32 %v1053_v6, %v884_v40  ;;  %2582 = vtanh.f32 %v922_v50  ;;  %v927_v12 = vpop.f32.mrf.mxu1  ;;  %v2469_v6 = vld [vmem:[#allocation11] ss:$8 sps:$4 sm:$0xff]  }
 0x274   :  { %v2571_v59 = vpop.eup %2570  ;;  %v1020_v11 = vmul.f32 1.442695, %v2569_v54  ;;  %v928_v4 = vadd.f32 %v927_v12, %v3246_v61  ;;  %1148 = vadd.xlane.f32.xlu0 %v2569_v54  ;;  %v324_v54 = vadd.f32 %v3273_v2, %v248_v63  ;;  %v176_v12 = vld [vmem:[#allocation2 + $0x1a8] sm:$0xff]  ;;  %1579 = vmatpush1.bf16.msra.mxu0 %v2469_v6  ;;  %v900_v63 = vadd.f32 %v3403_v20, %v3280_v27 }
 0x275   :  { %2002 = vst [vmem:[#allocation13 + $0x150] sm:$0xff] %v1085_v15  ;;  %v1054_v1 = vmul.f32 %v2571_v59, %v320_v39  ;;  %v3445_v62 = vpop.f32.mrf.mxu1  ;;  %v1170_v34 = vpack.c.bf16 %v1085_v15, %v1084_v9  ;;  %v894_v9 = vadd.f32 %v3396_v14, %v3280_v27 }
 0x276   :  { %2584 = vpow2.f32 %v1020_v11 }
 0x277   :  { %v2573_v10 = vpop.eup %2572  ;;  %v1086_v50 = vadd.f32 %v1054_v1, %v890_v60  ;;  %2586 = vtanh.f32 %v928_v4  ;;  %2380 = vmatprep.mubr.bf16.mxu0 %v1170_v34  ;;  %v931_v40 = vpop.f32.mrf.mxu1  ;;  %v252_v1 = vmul.f32 %v3266_v41, %v176_v12 }
 0x278   :  { %v2575_v32 = vpop.eup %2574  ;;  %v1022_v39 = vmul.f32 1.442695, %v2573_v10  ;;  %v932_v35 = vadd.f32 %v931_v40, %v3246_v61  ;;  %1150 = vadd.xlane.f32.xlu1 %v2573_v10  ;;  %v326_v61 = vadd.f32 %v3273_v2, %v250_v55  ;;  %v904_v40 = vadd.f32 %v3410_v58, %v3280_v27 }
 0x279   :  { %2003 = vst [vmem:[#allocation13 + $0x160] sm:$0xff] %v1086_v50  ;;  %v1055_v15 = vmul.f32 %v2575_v32, %v322_v13  ;;  %v328_v6 = vadd.f32 %v3273_v2, %v252_v1  ;;  %v254_v32 = vmul.f32 %v3266_v41, %v178_v26  ;;  %v914_v1 = vadd.f32 %v3424_v21, %v3280_v27 }
 0x27a   :  { %2588 = vpow2.f32 %v1022_v39  ;;  %v180_v39 = vld [vmem:[#allocation2 + $0x1c8] sm:$0xff] }
 0x27b   :  { %v2577_v59 = vpop.eup %2576  ;;  %v1087_v11 = vadd.f32 %v1055_v15, %v894_v9  ;;  %2590 = vtanh.f32 %v932_v35  ;;  %v910_v9 = vadd.f32 %v3417_v3, %v3280_v27  ;;  %v330_v12 = vadd.f32 %v3273_v2, %v254_v32 }
 0x27c   :  { %v2579_v4 = vpop.eup %2578  ;;  %v1056_v60 = vmul.f32 %v2577_v59, %v324_v54  ;;  %v256_v59 = vmul.f32 %v3266_v41, %v180_v39 }
 0x27d   :  { %2004 = vst [vmem:[#allocation13 + $0x170] sm:$0xff] %v1087_v11  ;;  %v1024_v34 = vmul.f32 1.442695, %v2579_v4  ;;  %1152 = vadd.xlane.f32.xlu0 %v2579_v4  ;;  %v1171_v14 = vpack.c.bf16 %v1087_v11, %v1086_v50 }
 0x27e   :  { %v1088_v13 = vadd.f32 %v1056_v60, %v900_v63  ;;  %v182_v63 = vld [vmem:[#allocation2 + $0x1d8] sm:$0xff]  ;;  %v332_v3 = vadd.f32 %v3273_v2, %v256_v59 }
 0x27f   :  { %v2581_v51 = vpop.eup %2580  ;;  %2592 = vpow2.f32 %v1024_v34  ;;  %2381 = vmatmul.mubr.bf16.gmra.mxu0 %v1171_v14  ;;  %v258_v34 = vmul.f32 %v3266_v41, %v182_v63  ;;  %v933_v63 = vpop.f32.mrf.mxu1 }
 0x280   :  { %v2583_v10 = vpop.eup %2582  ;;  %2005 = vst [vmem:[#allocation13 + $0x180] sm:$0xff] %v1088_v13  ;;  %v1057_v20 = vmul.f32 %v2581_v51, %v326_v61  ;;  %v184_v51 = vld [vmem:[#allocation2 + $0x1e8] sm:$0xff] }
 0x281   :  { %v1026_v54 = vmul.f32 1.442695, %v2583_v10  ;;  %1154 = vadd.xlane.f32.xlu1 %v2583_v10  ;;  %v334_v32 = vadd.f32 %v3273_v2, %v258_v34  ;;  %v260_v21 = vmul.f32 %v3266_v41, %v184_v51 }
 0x282   :  { %v1089_v55 = vadd.f32 %v1057_v20, %v904_v40  ;;  %v920_v20 = vadd.f32 %v3431_v0, %v3280_v27 }
 0x283   :  { %v2585_v35 = vpop.eup %2584  ;;  %2594 = vpow2.f32 %v1026_v54  ;;  %v186_v54 = vld [vmem:[#allocation2 + $0x1f8] sm:$0xff] }
 0x284   :  { %v2587_v50 = vpop.eup %2586  ;;  %2006 = vst [vmem:[#allocation13 + $0x190] sm:$0xff] %v1089_v55  ;;  %v1058_v15 = vmul.f32 %v2585_v35, %v328_v6  ;;  %v1172_v58 = vpack.c.bf16 %v1089_v55, %v1088_v13  ;;  %v924_v35 = vadd.f32 %v3438_v33, %v3280_v27  ;;  %v934_v33 = vadd.f32 %v933_v63, %v3280_v27 }
 0x285   :  { %v1028_v11 = vmul.f32 1.442695, %v2587_v50  ;;  %1156 = vadd.xlane.f32.xlu0 %v2587_v50 }
 0x286   :  { %v1090_v4 = vadd.f32 %v1058_v15, %v910_v9  ;;  %2384 = vmatprep.mubr.bf16.mxu0 %v1172_v58  ;;  %v336_v9 = vadd.f32 %v3273_v2, %v260_v21  ;;  %v262_v15 = vmul.f32 %v3266_v41, %v186_v54  ;;  %v930_v58 = vadd.f32 %v3445_v62, %v3280_v27 }
 0x287   :  { %v2589_v60 = vpop.eup %2588  ;;  %2596 = vpow2.f32 %v1028_v11 }
 0x288   :  { %v2591_v61 = vpop.eup %2590  ;;  %2007 = vst [vmem:[#allocation13 + $0x1a0] sm:$0xff] %v1090_v4  ;;  %v1059_v26 = vmul.f32 %v2589_v60, %v330_v12  ;;  %v338_v11 = vadd.f32 %v3273_v2, %v262_v15  ;;  %v3484_v2 = vld [vmem:[%s3840_s8] ss:$0 sm:$0xff] }
 0x289   :  { %v1030_v14 = vmul.f32 1.442695, %v2591_v61  ;;  %1158 = vadd.xlane.f32.xlu1 %v2591_v61 }
 0x28a   :  { %v1091_v13 = vadd.f32 %v1059_v26, %v914_v1 }
 0x28b   :  { %2598 = vpow2.f32 %v1030_v14 }
 0x28c   :  { %v2593_v10 = vpop.eup %2592  ;;  %2008 = vst [vmem:[#allocation13 + $0x1b0] sm:$0xff] %v1091_v13  ;;  %v1173_v40 = vpack.c.bf16 %v1091_v13, %v1090_v4 }
 0x28d   :  { %v1060_v6 = vmul.f32 %v2593_v10, %v332_v3  ;;  %v3858_v3 = vmov 0  }
 0x28e   :  { %2385 = vmatmul.mubr.bf16.gmra.mxu0 %v1173_v40 }
 0x28f   :  { %v1092_v55 = vadd.f32 %v1060_v6, %v920_v20 }
 0x290   :  { %v2595_v39 = vpop.eup %2594 }
 0x291   :  { %2009 = vst [vmem:[#allocation13 + $0x1c0] sm:$0xff] %v1092_v55  ;;  %v1061_v50 = vmul.f32 %v2595_v39, %v334_v32 }
 0x293   :  { %v1093_v12 = vadd.f32 %v1061_v50, %v924_v35 }
 0x294   :  { %v2597_v0 = vpop.eup %2596 }
 0x295   :  { %2010 = vst [vmem:[#allocation13 + $0x1d0] sm:$0xff] %v1093_v12  ;;  %v1062_v59 = vmul.f32 %v2597_v0, %v336_v9  ;;  %v1174_v4 = vpack.c.bf16 %v1093_v12, %v1092_v55 }
 0x297   :  { %v1094_v60 = vadd.f32 %v1062_v59, %v930_v58  ;;  %2388 = vmatprep.mubr.bf16.mxu0 %v1174_v4 }
 0x298   :  { %v2599_v61 = vpop.eup %2598 }
 0x299   :  { %2011 = vst [vmem:[#allocation13 + $0x1e0] sm:$0xff] %v1094_v60  ;;  %v1063_v1 = vmul.f32 %v2599_v61, %v338_v11 }
 0x29b   :  { %v1095_v26 = vadd.f32 %v1063_v1, %v934_v33 }
 0x29d   :  { %2012 = vst [vmem:[#allocation13 + $0x1f0] sm:$0xff] %v1095_v26  ;;  %v1175_v41 = vpack.c.bf16 %v1095_v26, %v1094_v60 }
 0x29f   :  { %2389 = vmatmul.mubr.bf16.gmra.mxu0 %v1175_v41 }
 0x2a0   :  { %1596 = vmatprep.mubr.bf16.mxu0 %v3858_v3 }
 0x2ee   :  { %v2362_v34 = vpop.f32.mrf.mxu0 }
 0x2ef   :  { %v1290_v32 = vadd.f32 %v2362_v34, %v3484_v2 }
 0x2f0   :  { %v1281_v62 = vpop.f32.mrf.mxu0 }
 0x2f1   :  { %v1282_v13 = vadd.f32 %v3484_v2, %v1281_v62  ;;  %v1410_v54 = vmax.f32 %v1290_v32, 0.0 }
 0x2f2   :  { %v2363_v14 = vpop.f32.mrf.mxu0 }
 0x2f3   :  { %v1408_v10 = vmax.f32 %v1282_v13, 0.0  ;;  %v1293_v20 = vadd.f32 %v2363_v14, %v3484_v2 }
 0x2f4   :  { %v1284_v51 = vpop.f32.mrf.mxu0 }
 0x2f5   :  { %v1285_v27 = vadd.f32 %v3484_v2, %v1284_v51  ;;  %v1411_v21 = vmax.f32 %v1293_v20, 0.0 }
 0x2f7   :  { %v1409_v40 = vmax.f32 %v1285_v27, 0.0  ;;  %v1441_v39 = vpack.c.bf16 %v1411_v21, %v1410_v54 }
 0x2f9   :  { %v1440_v6 = vpack.c.bf16 %v1409_v40, %v1408_v10 }
 0x2fb   :  { %1597 = vmatmul.mubr.bf16.vlgmr.msra.gmra.mxu0 %v1440_v6 }
 0x2fc   :  { %1606 = vmatprep.mubr.bf16.mxu0 %v3858_v3 }
 0x2ff   :  { %v2366_v55 = vpop.f32.mrf.mxu0 }
 0x300   :  { %v1306_v4 = vadd.f32 %v2366_v55, %v3484_v2 }
 0x301   :  { %v1297_v35 = vpop.f32.mrf.mxu0 }
 0x302   :  { %v1298_v9 = vadd.f32 %v3484_v2, %v1297_v35  ;;  %v1414_v61 = vmax.f32 %v1306_v4, 0.0 }
 0x303   :  { %v2367_v50 = vpop.f32.mrf.mxu0  ;;  %1607 = vmatmul.mubr.bf16.gmra.mxu0 %v1441_v39 }
 0x304   :  { %1616 = vmatprep.mubr.bf16.mxu0 %v3858_v3  ;;  %v1412_v0 = vmax.f32 %v1298_v9, 0.0  ;;  %v1309_v59 = vadd.f32 %v2367_v50, %v3484_v2 }
 0x305   :  { %v1300_v15 = vpop.f32.mrf.mxu0 }
 0x306   :  { %v1301_v12 = vadd.f32 %v3484_v2, %v1300_v15  ;;  %v1415_v63 = vmax.f32 %v1309_v59, 0.0 }
 0x308   :  { %v1413_v58 = vmax.f32 %v1301_v12, 0.0  ;;  %v1443_v1 = vpack.c.bf16 %v1415_v63, %v1414_v61 }
 0x30a   :  { %v1442_v11 = vpack.c.bf16 %v1413_v58, %v1412_v0 }
 0x30c   :  { %1617 = vmatmul.mubr.bf16.gmra.mxu0 %v1442_v11 }
 0x30d   :  { %1626 = vmatprep.mubr.bf16.mxu0 %v3858_v3 }
 0x30e   :  { %v2370_v60 = vpop.f32.mrf.mxu0 }
 0x30f   :  { %v1322_v10 = vadd.f32 %v2370_v60, %v3484_v2 }
 0x310   :  { %v1313_v33 = vpop.f32.mrf.mxu0 }
 0x311   :  { %v1314_v41 = vadd.f32 %v3484_v2, %v1313_v33  ;;  %v1418_v6 = vmax.f32 %v1322_v10, 0.0 }
 0x312   :  { %v2371_v26 = vpop.f32.mrf.mxu0 }
 0x313   :  { %v1416_v14 = vmax.f32 %v1314_v41, 0.0  ;;  %v1325_v27 = vadd.f32 %v2371_v26, %v3484_v2 }
 0x314   :  { %1627 = vmatmul.mubr.bf16.gmra.mxu0 %v1443_v1  ;;  %v1316_v34 = vpop.f32.mrf.mxu0 }
 0x315   :  { %v1317_v62 = vadd.f32 %v3484_v2, %v1316_v34  ;;  %1636 = vmatprep.mubr.bf16.mxu0 %v3858_v3  ;;  %v1419_v40 = vmax.f32 %v1325_v27, 0.0 }
 0x317   :  { %v1417_v13 = vmax.f32 %v1317_v62, 0.0  ;;  %v1445_v21 = vpack.c.bf16 %v1419_v40, %v1418_v6 }
 0x319   :  { %v1444_v51 = vpack.c.bf16 %v1417_v13, %v1416_v14 }
 0x31c   :  { %1637 = vmatmul.mubr.bf16.gmra.mxu0 %v1444_v51 }
 0x31d   :  { %1646 = vmatprep.mubr.bf16.mxu0 %v3858_v3 }
 0x31f   :  { %v2374_v20 = vpop.f32.mrf.mxu0 }
 0x320   :  { %v1338_v0 = vadd.f32 %v2374_v20, %v3484_v2 }
 0x321   :  { %v1329_v32 = vpop.f32.mrf.mxu0 }
 0x322   :  { %v1330_v55 = vadd.f32 %v3484_v2, %v1329_v32  ;;  %v1422_v11 = vmax.f32 %v1338_v0, 0.0 }
 0x323   :  { %v2375_v54 = vpop.f32.mrf.mxu0 }
 0x324   :  { %1647 = vmatmul.mubr.bf16.gmra.mxu0 %v1445_v21  ;;  %v1420_v50 = vmax.f32 %v1330_v55, 0.0  ;;  %v1341_v15 = vadd.f32 %v2375_v54, %v3484_v2 }
 0x325   :  { %v1332_v39 = vpop.f32.mrf.mxu0  ;;  %1656 = vmatprep.mubr.bf16.mxu0 %v3858_v3 }
 0x326   :  { %v1333_v35 = vadd.f32 %v3484_v2, %v1332_v39  ;;  %v1423_v58 = vmax.f32 %v1341_v15, 0.0 }
 0x328   :  { %v1421_v9 = vmax.f32 %v1333_v35, 0.0  ;;  %v1447_v63 = vpack.c.bf16 %v1423_v58, %v1422_v11 }
 0x32a   :  { %v1446_v12 = vpack.c.bf16 %v1421_v9, %v1420_v50 }
 0x32c   :  { %1657 = vmatmul.mubr.bf16.gmra.mxu0 %v1446_v12 }
 0x32d   :  { %1666 = vmatprep.mubr.bf16.mxu0 %v3858_v3 }
 0x32e   :  { %v2378_v59 = vpop.f32.mrf.mxu0 }
 0x32f   :  { %v1354_v14 = vadd.f32 %v2378_v59, %v3484_v2 }
 0x330   :  { %v1345_v4 = vpop.f32.mrf.mxu0 }
 0x331   :  { %v1346_v61 = vadd.f32 %v3484_v2, %v1345_v4  ;;  %v1426_v27 = vmax.f32 %v1354_v14, 0.0 }
 0x332   :  { %v2379_v60 = vpop.f32.mrf.mxu0 }
 0x333   :  { %v1424_v26 = vmax.f32 %v1346_v61, 0.0  ;;  %v1357_v62 = vadd.f32 %v2379_v60, %v3484_v2 }
 0x334   :  { %1667 = vmatmul.mubr.bf16.gmra.mxu0 %v1447_v63  ;;  %v1348_v33 = vpop.f32.mrf.mxu0 }
 0x335   :  { %v1349_v1 = vadd.f32 %v3484_v2, %v1348_v33  ;;  %1676 = vmatprep.mubr.bf16.mxu0 %v3858_v3  ;;  %v1427_v13 = vmax.f32 %v1357_v62, 0.0 }
 0x337   :  { %v1425_v41 = vmax.f32 %v1349_v1, 0.0  ;;  %v1449_v40 = vpack.c.bf16 %v1427_v13, %v1426_v27 }
 0x339   :  { %v1448_v34 = vpack.c.bf16 %v1425_v41, %v1424_v26 }
 0x33c   :  { %1677 = vmatmul.mubr.bf16.gmra.mxu0 %v1448_v34 }
 0x33d   :  { %1686 = vmatprep.mubr.bf16.mxu0 %v3858_v3 }
 0x33f   :  { %v2382_v51 = vpop.f32.mrf.mxu0 }
 0x340   :  { %v1370_v50 = vadd.f32 %v2382_v51, %v3484_v2 }
 0x341   :  { %v1361_v10 = vpop.f32.mrf.mxu0 }
 0x342   :  { %v1362_v6 = vadd.f32 %v3484_v2, %v1361_v10  ;;  %v1430_v12 = vmax.f32 %v1370_v50, 0.0  ;;  %v1472_v50 = vld [vmem:[%s3842_s10] sm:$0x3]  ;;  %s2913_s10 = smov [#allocation13]  }
 0x343   :  { %v2383_v20 = vpop.f32.mrf.mxu0  ;;  %s2169_s21 = sshll.u32 %s2913_s10, 4  ;;  %s2170_s21 = int_to_ptr.vmem [resolvable:$true] %s2169_s21 }
 0x344   :  { %1687 = vmatmul.mubr.bf16.gmra.mxu0 %v1449_v40  ;;  %v1428_v54 = vmax.f32 %v1362_v6, 0.0  ;;  %v1373_v39 = vadd.f32 %v2383_v20, %v3484_v2  ;;  %s2848_s22 = scalar_lea.vmem %s2170_s21, 8192  ;;  %p2853_p3 = scmp.lt.s32.totalorder %s2170_s21, %s2170_s21 }
 0x345   :  { %v1364_v32 = vpop.f32.mrf.mxu0  ;;  %1696 = vmatprep.mubr.bf16.mxu0 %v3858_v3  ;;  %p2849_p2 = scmp.ne.s32.totalorder %s2170_s21, %s2848_s22  ;;  %p2854_p4 = scmp.lt.s32.totalorder %s2848_s22, %s2848_s22 }
 0x346   :  { %v1365_v21 = vadd.f32 %v3484_v2, %v1364_v32  ;;  %v1431_v9 = vmax.f32 %v1373_v39, 0.0 }
 0x347   :  { %p2855_p5 = por %p2854_p4, %p2853_p3 }
 0x348   :  { %v1429_v55 = vmax.f32 %v1365_v21, 0.0  ;;  %v1451_v58 = vpack.c.bf16 %v1431_v9, %v1430_v12  ;;  %v3537_v9 = vrot.slane %v1472_v50, %v3012_v5 }
 0x349   :  { %p2856_p6 = pnand %p2855_p5, %p2849_p2 }
 0x34a   :  { %v1450_v35 = vpack.c.bf16 %v1429_v55, %v1428_v54 }
 0x34c   :  { %1697 = vmatmul.mubr.bf16.gmra.mxu0 %v1450_v35 }
 0x34d   :  { %1706 = vmatprep.mubr.bf16.mxu0 %v3858_v3 }
 0x34e   :  { %v2386_v15 = vpop.f32.mrf.mxu0 }
 0x34f   :  { %v1386_v26 = vadd.f32 %v2386_v15, %v3484_v2 }
 0x350   :  { %v1377_v0 = vpop.f32.mrf.mxu0 }
 0x351   :  { %v1378_v11 = vadd.f32 %v3484_v2, %v1377_v0  ;;  %v1434_v62 = vmax.f32 %v1386_v26, 0.0 }
 0x352   :  { %v2387_v59 = vpop.f32.mrf.mxu0 }
 0x353   :  { %v1432_v60 = vmax.f32 %v1378_v11, 0.0  ;;  %v1389_v1 = vadd.f32 %v2387_v59, %v3484_v2 }
 0x354   :  { %1707 = vmatmul.mubr.bf16.gmra.mxu0 %v1451_v58  ;;  %v1380_v4 = vpop.f32.mrf.mxu0 }
 0x355   :  { %v1381_v63 = vadd.f32 %v3484_v2, %v1380_v4  ;;  %1716 = vmatprep.mubr.bf16.mxu0 %v3858_v3  ;;  %v1435_v41 = vmax.f32 %v1389_v1, 0.0 }
 0x357   :  { %v1433_v61 = vmax.f32 %v1381_v63, 0.0  ;;  %v1453_v13 = vpack.c.bf16 %v1435_v41, %v1434_v62 }
 0x359   :  { %v1452_v33 = vpack.c.bf16 %v1433_v61, %v1432_v60 }
 0x35c   :  { %1717 = vmatmul.mubr.bf16.gmra.mxu0 %v1452_v33 }
 0x35d   :  { %1726 = vmatprep.mubr.bf16.mxu0 %v3858_v3 }
 0x35f   :  { %v2390_v34 = vpop.f32.mrf.mxu0 }
 0x360   :  { %v1402_v54 = vadd.f32 %v2390_v34, %v3484_v2 }
 0x361   :  { %v1393_v14 = vpop.f32.mrf.mxu0 }
 0x362   :  { %v1394_v27 = vadd.f32 %v3484_v2, %v1393_v14  ;;  %v1438_v39 = vmax.f32 %v1402_v54, 0.0 }
 0x363   :  { %v2391_v51 = vpop.f32.mrf.mxu0 }
 0x364   :  { %1727 = vmatmul.mubr.bf16.gmra.mxu0 %v1453_v13  ;;  %v1436_v20 = vmax.f32 %v1394_v27, 0.0  ;;  %v1405_v32 = vadd.f32 %v2391_v51, %v3484_v2 }
 0x365   :  { %v1396_v10 = vpop.f32.mrf.mxu0  ;;  %1736 = vmatprep.mubr.bf16.mxu0 %v3858_v3 }
 0x366   :  { %v1397_v40 = vadd.f32 %v3484_v2, %v1396_v10  ;;  %v1439_v55 = vmax.f32 %v1405_v32, 0.0 }
 0x368   :  { %v1437_v6 = vmax.f32 %v1397_v40, 0.0  ;;  %v1455_v35 = vpack.c.bf16 %v1439_v55, %v1438_v39 }
 0x36a   :  { %v1454_v21 = vpack.c.bf16 %v1437_v6, %v1436_v20 }
 0x36c   :  { %1737 = vmatmul.mubr.bf16.gmra.mxu0 %v1454_v21  ;;  %v3557_v21 = vrot.slane %v1472_v50, %v3262_v36 }
 0x36d   :  { %1746 = vmatprep.mubr.bf16.mxu0 %v3858_v3 }
 0x374   :  { %1747 = vmatmul.mubr.bf16.gmra.mxu0 %v1455_v35 }
 0x3bb   :  { %v1598_v15 = vpop.f32.mrf.mxu0 }
 0x3bc   :  { %v1599_v12 = vadd.f32 %v1598_v15, %v3537_v9 }
 0x3bd   :  { %v1600_v0 = vpop.f32.mrf.mxu0 }
 0x3be   :  { %2600 = vtanh.f32 %v1599_v12 }
 0x3bf   :  { %v1602_v2 = vpop.f32.mrf.mxu0 }
 0x3c0   :  { %v1603_v58 = vadd.f32 %v1602_v2, %v3537_v9  ;;  %v1601_v2 = vadd.f32 %v1600_v0, %v3557_v21 }
 0x3c1   :  { %v1604_v3 = vpop.f32.mrf.mxu0 }
 0x3c2   :  { %2602 = vtanh.f32 %v1603_v58 }
 0x3c3   :  { %v1608_v59 = vpop.f32.mrf.mxu0 }
 0x3c4   :  { %v1609_v11 = vadd.f32 %v1608_v59, %v3537_v9 }
 0x3c5   :  { %v3542_v4 = vpop.f32.mrf.mxu0 }
 0x3c6   :  { %2604 = vtanh.f32 %v1609_v11 }
 0x3c7   :  { %v1612_v63 = vpop.f32.mrf.mxu0 }
 0x3c8   :  { %v1613_v5 = vadd.f32 %v1612_v63, %v3537_v9 }
 0x3c9   :  { %v3545_v60 = vpop.f32.mrf.mxu0 }
 0x3ca   :  { %2606 = vtanh.f32 %v1613_v5 }
 0x3cb   :  { %v2601_v61 = vpop.eup %2600 }
 0x3cc   :  { %v1789_v33 = vmul.f32 1.442695, %v2601_v61  ;;  %v1618_v1 = vpop.f32.mrf.mxu0  ;;  %1917 = vadd.xlane.f32.xlu0 %v2601_v61 }
 0x3cd   :  { %v1619_v26 = vadd.f32 %v1618_v1, %v3537_v9 }
 0x3ce   :  { %2608 = vpow2.f32 %v1789_v33  ;;  %v3548_v41 = vpop.f32.mrf.mxu0  ;;  %v1605_v33 = vadd.f32 %v1604_v3, %v3557_v21 }
 0x3cf   :  { %v2603_v34 = vpop.eup %2602  ;;  %2610 = vtanh.f32 %v1619_v26 }
 0x3d0   :  { %v1791_v62 = vmul.f32 1.442695, %v2603_v34  ;;  %v1622_v14 = vpop.f32.mrf.mxu0  ;;  %1919 = vadd.xlane.f32.xlu1 %v2603_v34 }
 0x3d1   :  { %v1623_v13 = vadd.f32 %v1622_v14, %v3537_v9 }
 0x3d2   :  { %2612 = vpow2.f32 %v1791_v62  ;;  %v3551_v51 = vpop.f32.mrf.mxu0 }
 0x3d3   :  { %v2605_v27 = vpop.eup %2604  ;;  %2614 = vtanh.f32 %v1623_v13 }
 0x3d4   :  { %v1793_v10 = vmul.f32 1.442695, %v2605_v27  ;;  %v1628_v40 = vpop.f32.mrf.mxu0  ;;  %1921 = vadd.xlane.f32.xlu0 %v2605_v27  ;;  %v1611_v27 = vadd.f32 %v3542_v4, %v3557_v21 }
 0x3d5   :  { %v1629_v20 = vadd.f32 %v1628_v40, %v3537_v9 }
 0x3d6   :  { %2616 = vpow2.f32 %v1793_v10  ;;  %v3554_v6 = vpop.f32.mrf.mxu0 }
 0x3d7   :  { %v2607_v32 = vpop.eup %2606  ;;  %2618 = vtanh.f32 %v1629_v20 }
 0x3d8   :  { %v1795_v54 = vmul.f32 1.442695, %v2607_v32  ;;  %v1632_v55 = vpop.f32.mrf.mxu0  ;;  %1923 = vadd.xlane.f32.xlu1 %v2607_v32 }
 0x3d9   :  { %v1633_v39 = vadd.f32 %v1632_v55, %v3537_v9 }
 0x3da   :  { %2620 = vpow2.f32 %v1795_v54  ;;  %v3560_v35 = vpop.f32.mrf.mxu0 }
 0x3db   :  { %v2609_v15 = vpop.eup %2608  ;;  %2622 = vtanh.f32 %v1633_v39  ;;  %v1615_v39 = vadd.f32 %v3545_v60, %v3557_v21  ;;  %v1621_v60 = vadd.f32 %v3548_v41, %v3557_v21 }
 0x3dc   :  { %v2611_v12 = vpop.eup %2610  ;;  %v1853_v58 = vmul.f32 %v2609_v15, %v3032_v16  ;;  %v1638_v59 = vpop.f32.mrf.mxu0 }
 0x3dd   :  { %v1797_v11 = vmul.f32 1.442695, %v2611_v12  ;;  %v1639_v36 = vadd.f32 %v1638_v59, %v3537_v9  ;;  %1925 = vadd.xlane.f32.xlu0 %v2611_v12 }
 0x3de   :  { %v1885_v50 = vadd.f32 %v1853_v58, %v1601_v2  ;;  %v3565_v63 = vpop.f32.mrf.mxu0 }
 0x3df   :  { %v2613_v5 = vpop.eup %2612  ;;  %2624 = vpow2.f32 %v1797_v11 }
 0x3e0   :  { %v2615_v61 = vpop.eup %2614  ;;  %2013 = vst [vmem:[#allocation13 + $0x8] sm:$0xff] %v1885_v50  ;;  %v1854_v1 = vmul.f32 %v2613_v5, %v3035_v17  ;;  %2626 = vtanh.f32 %v1639_v36  ;;  %v1642_v0 = vpop.f32.mrf.mxu0 }
 0x3e1   :  { %v1799_v26 = vmul.f32 1.442695, %v2615_v61  ;;  %v1643_v16 = vadd.f32 %v1642_v0, %v3537_v9  ;;  %1927 = vadd.xlane.f32.xlu0 %v2615_v61 }
 0x3e2   :  { %v1886_v34 = vadd.f32 %v1854_v1, %v1605_v33  ;;  %v3570_v62 = vpop.f32.mrf.mxu0 }
 0x3e3   :  { %v2617_v14 = vpop.eup %2616  ;;  %2628 = vpow2.f32 %v1799_v26 }
 0x3e4   :  { %v2619_v13 = vpop.eup %2618  ;;  %2014 = vst [vmem:[#allocation13 + $0x18] sm:$0xff] %v1886_v34  ;;  %v1855_v3 = vmul.f32 %v2617_v14, %v3044_v37  ;;  %2630 = vtanh.f32 %v1643_v16  ;;  %v1648_v17 = vpop.f32.mrf.mxu0  ;;  %v1625_v16 = vadd.f32 %v3551_v51, %v3557_v21 }
 0x3e5   :  { %v1801_v10 = vmul.f32 1.442695, %v2619_v13  ;;  %v1649_v40 = vadd.f32 %v1648_v17, %v3537_v9  ;;  %1929 = vadd.xlane.f32.xlu0 %v2619_v13 }
 0x3e6   :  { %v1887_v20 = vadd.f32 %v1855_v3, %v1611_v27  ;;  %v3576_v32 = vpop.f32.mrf.mxu0 }
 0x3e7   :  { %v2621_v54 = vpop.eup %2620  ;;  %2632 = vpow2.f32 %v1801_v10  ;;  %v1631_v10 = vadd.f32 %v3554_v6, %v3557_v21 }
 0x3e8   :  { %v2623_v55 = vpop.eup %2622  ;;  %2015 = vst [vmem:[#allocation13 + $0x28] sm:$0xff] %v1887_v20  ;;  %v1856_v4 = vmul.f32 %v2621_v54, %v3047_v38  ;;  %2634 = vtanh.f32 %v1649_v40  ;;  %v1652_v37 = vpop.f32.mrf.mxu0 }
 0x3e9   :  { %v1803_v15 = vmul.f32 1.442695, %v2623_v55  ;;  %v1653_v12 = vadd.f32 %v1652_v37, %v3537_v9  ;;  %1931 = vadd.xlane.f32.xlu0 %v2623_v55  ;;  %v1635_v37 = vadd.f32 %v3560_v35, %v3557_v21  ;;  %v1641_v35 = vadd.f32 %v3565_v63, %v3557_v21 }
 0x3ea   :  { %v1888_v2 = vadd.f32 %v1856_v4, %v1615_v39  ;;  %v3582_v58 = vpop.f32.mrf.mxu0 }
 0x3eb   :  { %2636 = vpow2.f32 %v1803_v15 }
 0x3ec   :  { %v2625_v59 = vpop.eup %2624  ;;  %2016 = vst [vmem:[#allocation13 + $0x38] sm:$0xff] %v1888_v2  ;;  %2638 = vtanh.f32 %v1653_v12  ;;  %v1658_v11 = vpop.f32.mrf.mxu0 }
 0x3ed   :  { %v2627_v36 = vpop.eup %2626  ;;  %v1857_v38 = vmul.f32 %v2625_v59, %v3052_v42  ;;  %v1659_v50 = vadd.f32 %v1658_v11, %v3537_v9 }
 0x3ee   :  { %v1805_v5 = vmul.f32 1.442695, %v2627_v36  ;;  %1933 = vadd.xlane.f32.xlu0 %v2627_v36  ;;  %v3588_v61 = vpop.f32.mrf.mxu0 }
 0x3ef   :  { %v1889_v33 = vadd.f32 %v1857_v38, %v1621_v60  ;;  %2640 = vtanh.f32 %v1659_v50 }
 0x3f0   :  { %v2629_v1 = vpop.eup %2628  ;;  %2642 = vpow2.f32 %v1805_v5  ;;  %v1662_v0 = vpop.f32.mrf.mxu0 }
 0x3f1   :  { %v2631_v26 = vpop.eup %2630  ;;  %2017 = vst [vmem:[#allocation13 + $0x48] sm:$0xff] %v1889_v33  ;;  %v1858_v41 = vmul.f32 %v2629_v1, %v3055_v43  ;;  %v1663_v42 = vadd.f32 %v1662_v0, %v3537_v9 }
 0x3f2   :  { %v1807_v34 = vmul.f32 1.442695, %v2631_v26  ;;  %1935 = vadd.xlane.f32.xlu0 %v2631_v26  ;;  %v3594_v14 = vpop.f32.mrf.mxu0 }
 0x3f3   :  { %v1890_v13 = vadd.f32 %v1858_v41, %v1625_v16  ;;  %2644 = vtanh.f32 %v1663_v42  ;;  %v1645_v41 = vadd.f32 %v3570_v62, %v3557_v21 }
 0x3f4   :  { %v2633_v27 = vpop.eup %2632  ;;  %2646 = vpow2.f32 %v1807_v34  ;;  %v1668_v3 = vpop.f32.mrf.mxu0 }
 0x3f5   :  { %v2635_v17 = vpop.eup %2634  ;;  %2018 = vst [vmem:[#allocation13 + $0x58] sm:$0xff] %v1890_v13  ;;  %v1859_v51 = vmul.f32 %v2633_v27, %v3088_v7  ;;  %v1669_v43 = vadd.f32 %v1668_v3, %v3537_v9 }
 0x3f6   :  { %v1809_v40 = vmul.f32 1.442695, %v2635_v17  ;;  %1937 = vadd.xlane.f32.xlu0 %v2635_v17  ;;  %v3600_v20 = vpop.f32.mrf.mxu0 }
 0x3f7   :  { %v1891_v54 = vadd.f32 %v1859_v51, %v1631_v10  ;;  %2648 = vtanh.f32 %v1669_v43  ;;  %v1651_v10 = vadd.f32 %v3576_v32, %v3557_v21 }
 0x3f8   :  { %v2637_v55 = vpop.eup %2636  ;;  %2650 = vpow2.f32 %v1809_v40  ;;  %v1672_v39 = vpop.f32.mrf.mxu0 }
 0x3f9   :  { %v2639_v4 = vpop.eup %2638  ;;  %2019 = vst [vmem:[#allocation13 + $0x68] sm:$0xff] %v1891_v54  ;;  %v1860_v6 = vmul.f32 %v2637_v55, %v3091_v8  ;;  %v1673_v7 = vadd.f32 %v1672_v39, %v3537_v9 }
 0x3fa   :  { %v1811_v15 = vmul.f32 1.442695, %v2639_v4  ;;  %1939 = vadd.xlane.f32.xlu0 %v2639_v4  ;;  %v3606_v12 = vpop.f32.mrf.mxu0  ;;  %v1655_v4 = vadd.f32 %v3582_v58, %v3557_v21 }
 0x3fb   :  { %v1892_v2 = vadd.f32 %v1860_v6, %v1635_v37  ;;  %2652 = vtanh.f32 %v1673_v7 }
 0x3fc   :  { %v2641_v59 = vpop.eup %2640  ;;  %2654 = vpow2.f32 %v1811_v15  ;;  %v1678_v11 = vpop.f32.mrf.mxu0 }
 0x3fd   :  { %v2643_v36 = vpop.eup %2642  ;;  %2020 = vst [vmem:[#allocation13 + $0x78] sm:$0xff] %v1892_v2  ;;  %v1813_v60 = vmul.f32 1.442695, %v2641_v59  ;;  %v1679_v38 = vadd.f32 %v1678_v11, %v3537_v9  ;;  %v1661_v2 = vadd.f32 %v3588_v61, %v3557_v21 }
 0x3fe   :  { %v1861_v8 = vmul.f32 %v2643_v36, %v3094_v18  ;;  %1941 = vadd.xlane.f32.xlu0 %v2641_v59  ;;  %v3612_v50 = vpop.f32.mrf.mxu0 }
 0x3ff   :  { %2656 = vpow2.f32 %v1813_v60 }
 0x400   :  { %v2645_v5 = vpop.eup %2644  ;;  %v1893_v33 = vadd.f32 %v1861_v8, %v1641_v35  ;;  %2658 = vtanh.f32 %v1679_v38  ;;  %v1682_v1 = vpop.f32.mrf.mxu0  ;;  %v1665_v8 = vadd.f32 %v3594_v14, %v3557_v21  ;;  %v1671_v14 = vadd.f32 %v3600_v20, %v3557_v21 }
 0x401   :  { %v2647_v0 = vpop.eup %2646  ;;  %v1815_v26 = vmul.f32 1.442695, %v2645_v5  ;;  %v1683_v16 = vadd.f32 %v1682_v1, %v3537_v9  ;;  %v3644_v1 = vpop.xlane.xlu0 %1096 }
 0x402   :  { %2021 = vst [vmem:[#allocation13 + $0x88] sm:$0xff] %v1893_v33  ;;  %v1862_v63 = vmul.f32 %v2647_v0, %v3097_v19  ;;  %1943 = vadd.xlane.f32.xlu0 %v2645_v5  ;;  %v3618_v18 = vpop.f32.mrf.mxu0 }
 0x403   :  { %2660 = vpow2.f32 %v1815_v26 }
 0x404   :  { %v2649_v42 = vpop.eup %2648  ;;  %v1894_v34 = vadd.f32 %v1862_v63, %v1645_v41  ;;  %2662 = vtanh.f32 %v1683_v16  ;;  %v1688_v13 = vpop.f32.mrf.mxu0 }
 0x405   :  { %v2651_v27 = vpop.eup %2650  ;;  %v1817_v3 = vmul.f32 1.442695, %v2649_v42  ;;  %v1689_v17 = vadd.f32 %v1688_v13, %v3537_v9  ;;  %v3652_v13 = vpop.xlane.xlu1 %1100 }
 0x406   :  { %2022 = vst [vmem:[#allocation13 + $0x98] sm:$0xff] %v1894_v34  ;;  %v1863_v62 = vmul.f32 %v2651_v27, %v3108_v28  ;;  %1945 = vadd.xlane.f32.xlu0 %v2649_v42  ;;  %v3624_v19 = vpop.f32.mrf.mxu0 }
 0x407   :  { %2664 = vpow2.f32 %v1817_v3 }
 0x408   :  { %v2653_v51 = vpop.eup %2652  ;;  %v1895_v43 = vadd.f32 %v1863_v62, %v1651_v10  ;;  %2666 = vtanh.f32 %v1689_v17  ;;  %v1692_v40 = vpop.f32.mrf.mxu0 }
 0x409   :  { %v2655_v54 = vpop.eup %2654  ;;  %v1819_v55 = vmul.f32 1.442695, %v2653_v51  ;;  %v1693_v39 = vadd.f32 %v1692_v40, %v3537_v9  ;;  %v3654_v62 = vpop.xlane.xlu0 %1098 }
 0x40a   :  { %2023 = vst [vmem:[#allocation13 + $0xa8] sm:$0xff] %v1895_v43  ;;  %v1864_v32 = vmul.f32 %v2655_v54, %v3111_v29  ;;  %1947 = vadd.xlane.f32.xlu0 %v2653_v51  ;;  %v3630_v28 = vpop.f32.mrf.mxu0 }
 0x40b   :  { %2668 = vpow2.f32 %v1819_v55 }
 0x40c   :  { %v2657_v37 = vpop.eup %2656  ;;  %v1896_v6 = vadd.f32 %v1864_v32, %v1655_v4  ;;  %2670 = vtanh.f32 %v1693_v39  ;;  %v1698_v7 = vpop.f32.mrf.mxu0 }
 0x40d   :  { %v2659_v15 = vpop.eup %2658  ;;  %v1865_v59 = vmul.f32 %v2657_v37, %v3114_v30  ;;  %v1699_v11 = vadd.f32 %v1698_v7, %v3537_v9  ;;  %v3662_v32 = vpop.xlane.xlu1 %1102 }
 0x40e   :  { %2024 = vst [vmem:[#allocation13 + $0xb8] sm:$0xff] %v1896_v6  ;;  %v1821_v58 = vmul.f32 1.442695, %v2659_v15  ;;  %1949 = vadd.xlane.f32.xlu0 %v2659_v15  ;;  %v3636_v29 = vpop.f32.mrf.mxu0  ;;  %v3664_v37 = vpop.xlane.xlu0 %1104  ;;  %v1681_v6 = vadd.f32 %v3612_v50, %v3557_v21 }
 0x40f   :  { %v1897_v36 = vadd.f32 %v1865_v59, %v1661_v2  ;;  %2672 = vtanh.f32 %v1699_v11 }
 0x410   :  { %v2661_v60 = vpop.eup %2660  ;;  %2674 = vpow2.f32 %v1821_v58  ;;  %v1702_v38 = vpop.f32.mrf.mxu0 }
 0x411   :  { %v2663_v35 = vpop.eup %2662  ;;  %2025 = vst [vmem:[#allocation13 + $0xc8] sm:$0xff] %v1897_v36  ;;  %v1866_v61 = vmul.f32 %v2661_v60, %v3117_v31  ;;  %v1703_v30 = vadd.f32 %v1702_v38, %v3537_v9  ;;  %v3672_v36 = vpop.xlane.xlu1 %1106 }
 0x412   :  { %v1823_v5 = vmul.f32 1.442695, %v2663_v35  ;;  %1951 = vadd.xlane.f32.xlu1 %v2663_v35  ;;  %v3642_v33 = vpop.f32.mrf.mxu0  ;;  %v3674_v60 = vpop.xlane.xlu0 %1108 }
 0x413   :  { %v1898_v0 = vadd.f32 %v1866_v61, %v1665_v8  ;;  %2676 = vtanh.f32 %v1703_v30 }
 0x414   :  { %v2665_v26 = vpop.eup %2664  ;;  %2678 = vpow2.f32 %v1823_v5  ;;  %v1708_v16 = vpop.f32.mrf.mxu0 }
 0x415   :  { %v2667_v41 = vpop.eup %2666  ;;  %2026 = vst [vmem:[#allocation13 + $0xd8] sm:$0xff] %v1898_v0  ;;  %v1867_v31 = vmul.f32 %v2665_v26, %v3128_v52  ;;  %v1709_v63 = vadd.f32 %v1708_v16, %v3537_v9  ;;  %v1675_v52 = vadd.f32 %v3606_v12, %v3557_v21  ;;  %v3682_v26 = vpop.xlane.xlu1 %1110 }
 0x416   :  { %v1825_v42 = vmul.f32 1.442695, %v2667_v41  ;;  %1953 = vadd.xlane.f32.xlu0 %v2667_v41  ;;  %v3650_v34 = vpop.f32.mrf.mxu0  ;;  %v3684_v16 = vpop.xlane.xlu0 %1112 }
 0x417   :  { %v1899_v27 = vadd.f32 %v1867_v31, %v1671_v14  ;;  %2680 = vtanh.f32 %v1709_v63 }
 0x418   :  { %v2669_v3 = vpop.eup %2668  ;;  %2682 = vpow2.f32 %v1825_v42  ;;  %v1712_v17 = vpop.f32.mrf.mxu0 }
 0x419   :  { %v2671_v10 = vpop.eup %2670  ;;  %2027 = vst [vmem:[#allocation13 + $0xe8] sm:$0xff] %v1899_v27  ;;  %v1868_v20 = vmul.f32 %v2669_v3, %v3131_v53  ;;  %v1713_v51 = vadd.f32 %v1712_v17, %v3537_v9  ;;  %v3692_v17 = vpop.xlane.xlu1 %1114 }
 0x41a   :  { %v1827_v43 = vmul.f32 1.442695, %v2671_v10  ;;  %1955 = vadd.xlane.f32.xlu1 %v2671_v10  ;;  %v3660_v40 = vpop.f32.mrf.mxu0  ;;  %v3694_v10 = vpop.xlane.xlu0 %1116 }
 0x41b   :  { %v1900_v54 = vadd.f32 %v1868_v20, %v1675_v52  ;;  %2684 = vtanh.f32 %v1713_v51 }
 0x41c   :  { %v2673_v55 = vpop.eup %2672  ;;  %2686 = vpow2.f32 %v1827_v43  ;;  %v1718_v39 = vpop.f32.mrf.mxu0 }
 0x41d   :  { %v2675_v4 = vpop.eup %2674  ;;  %2028 = vst [vmem:[#allocation13 + $0xf8] sm:$0xff] %v1900_v54  ;;  %v1829_v12 = vmul.f32 1.442695, %v2673_v55  ;;  %v1719_v53 = vadd.f32 %v1718_v39, %v3537_v9 }
 0x41e   :  { %v1869_v7 = vmul.f32 %v2675_v4, %v3134_v56  ;;  %1957 = vadd.xlane.f32.xlu1 %v2673_v55  ;;  %v3670_v15 = vpop.f32.mrf.mxu0  ;;  %v1685_v56 = vadd.f32 %v3618_v18, %v3557_v21  ;;  %v3702_v4 = vpop.xlane.xlu1 %1118 }
 0x41f   :  { %2688 = vpow2.f32 %v1829_v12  ;;  %v3704_v12 = vpop.xlane.xlu0 %1120 }
 0x420   :  { %v2677_v2 = vpop.eup %2676  ;;  %v1901_v59 = vadd.f32 %v1869_v7, %v1681_v6  ;;  %2690 = vtanh.f32 %v1719_v53  ;;  %v1722_v11 = vpop.f32.mrf.mxu0  ;;  %v1701_v53 = vadd.f32 %v3636_v29, %v3557_v21 }
 0x421   :  { %v2679_v58 = vpop.eup %2678  ;;  %v1831_v38 = vmul.f32 1.442695, %v2677_v2  ;;  %v1723_v35 = vadd.f32 %v1722_v11, %v3537_v9 }
 0x422   :  { %2029 = vst [vmem:[#allocation13 + $0x108] sm:$0xff] %v1901_v59  ;;  %v1870_v50 = vmul.f32 %v2679_v58, %v3137_v57  ;;  %1959 = vadd.xlane.f32.xlu1 %v2677_v2  ;;  %v3680_v8 = vpop.f32.mrf.mxu0  ;;  %v1691_v57 = vadd.f32 %v3624_v19, %v3557_v21 }
 0x423   :  { %2692 = vpow2.f32 %v1831_v38  ;;  %v3712_v38 = vpop.xlane.xlu1 %1122 }
 0x424   :  { %v2681_v61 = vpop.eup %2680  ;;  %v1902_v30 = vadd.f32 %v1870_v50, %v1685_v56  ;;  %2694 = vtanh.f32 %v1723_v35  ;;  %v1728_v5 = vpop.f32.mrf.mxu0 }
 0x425   :  { %v2683_v0 = vpop.eup %2682  ;;  %v1833_v41 = vmul.f32 1.442695, %v2681_v61  ;;  %v1729_v14 = vadd.f32 %v1728_v5, %v3537_v9  ;;  %v3714_v35 = vpop.xlane.xlu0 %1124 }
 0x426   :  { %2030 = vst [vmem:[#allocation13 + $0x118] sm:$0xff] %v1902_v30  ;;  %v1871_v18 = vmul.f32 %v2683_v0, %v3148_v22  ;;  %1961 = vadd.xlane.f32.xlu1 %v2681_v61  ;;  %v3690_v31 = vpop.f32.mrf.mxu0  ;;  %v1695_v22 = vadd.f32 %v3630_v28, %v3557_v21 }
 0x427   :  { %2696 = vpow2.f32 %v1833_v41 }
 0x428   :  { %v2685_v63 = vpop.eup %2684  ;;  %v1903_v42 = vadd.f32 %v1871_v18, %v1691_v57  ;;  %2698 = vtanh.f32 %v1729_v14  ;;  %v1732_v27 = vpop.f32.mrf.mxu0 }
 0x429   :  { %v2687_v3 = vpop.eup %2686  ;;  %v1835_v52 = vmul.f32 1.442695, %v2685_v63  ;;  %v1733_v20 = vadd.f32 %v1732_v27, %v3537_v9  ;;  %v3722_v14 = vpop.xlane.xlu1 %1126 }
 0x42a   :  { %2031 = vst [vmem:[#allocation13 + $0x128] sm:$0xff] %v1903_v42  ;;  %v1872_v19 = vmul.f32 %v2687_v3, %v3151_v23  ;;  %1963 = vadd.xlane.f32.xlu1 %v2685_v63  ;;  %v3700_v51 = vpop.f32.mrf.mxu0  ;;  %v3724_v57 = vpop.xlane.xlu0 %1128 }
 0x42b   :  { %2700 = vpow2.f32 %v1835_v52 }
 0x42c   :  { %v2689_v43 = vpop.eup %2688  ;;  %v1904_v54 = vadd.f32 %v1872_v19, %v1695_v22  ;;  %2702 = vtanh.f32 %v1733_v20  ;;  %v1738_v55 = vpop.f32.mrf.mxu0 }
 0x42d   :  { %v2691_v39 = vpop.eup %2690  ;;  %v1873_v28 = vmul.f32 %v2689_v43, %v3154_v24  ;;  %v1739_v23 = vadd.f32 %v1738_v55, %v3537_v9  ;;  %v1705_v24 = vadd.f32 %v3642_v33, %v3557_v21  ;;  %v3732_v22 = vpop.xlane.xlu1 %1130 }
 0x42e   :  { %2032 = vst [vmem:[#allocation13 + $0x138] sm:$0xff] %v1904_v54  ;;  %v1837_v6 = vmul.f32 1.442695, %v2691_v39  ;;  %1965 = vadd.xlane.f32.xlu1 %v2691_v39  ;;  %v3710_v7 = vpop.f32.mrf.mxu0  ;;  %v3734_v19 = vpop.xlane.xlu0 %1132 }
 0x42f   :  { %v1905_v2 = vadd.f32 %v1873_v28, %v1701_v53  ;;  %2704 = vtanh.f32 %v1739_v23 }
 0x430   :  { %v2693_v59 = vpop.eup %2692  ;;  %2706 = vpow2.f32 %v1837_v6  ;;  %v1742_v11 = vpop.f32.mrf.mxu0 }
 0x431   :  { %v2695_v58 = vpop.eup %2694  ;;  %2033 = vst [vmem:[#allocation13 + $0x148] sm:$0xff] %v1905_v2  ;;  %v1874_v29 = vmul.f32 %v2693_v59, %v3157_v25  ;;  %v1743_v56 = vadd.f32 %v1742_v11, %v3537_v9  ;;  %v1711_v25 = vadd.f32 %v3650_v34, %v3557_v21  ;;  %v3740_v28 = vpop.xlane.xlu1 %1134 }
 0x432   :  { %v1839_v50 = vmul.f32 1.442695, %v2695_v58  ;;  %1967 = vadd.xlane.f32.xlu1 %v2695_v58  ;;  %v3720_v61 = vpop.f32.mrf.mxu0  ;;  %v3742_v23 = vpop.xlane.xlu0 %1136 }
 0x433   :  { %v1906_v30 = vadd.f32 %v1874_v29, %v1705_v24  ;;  %2708 = vtanh.f32 %v1743_v56  ;;  %v1725_v29 = vadd.f32 %v3680_v8, %v3557_v21 }
 0x434   :  { %v2697_v5 = vpop.eup %2696  ;;  %2710 = vpow2.f32 %v1839_v50  ;;  %v1748_v0 = vpop.f32.mrf.mxu0 }
 0x435   :  { %v2699_v41 = vpop.eup %2698  ;;  %2034 = vst [vmem:[#allocation13 + $0x158] sm:$0xff] %v1906_v30  ;;  %v1875_v33 = vmul.f32 %v2697_v5, %v3168_v44  ;;  %v1749_v18 = vadd.f32 %v1748_v0, %v3537_v9  ;;  %v1715_v44 = vadd.f32 %v3660_v40, %v3557_v21  ;;  %v1721_v40 = vadd.f32 %v3670_v15, %v3557_v21  ;;  %v3747_v11 = vpop.xlane.xlu1 %1138 }
 0x436   :  { %v1841_v63 = vmul.f32 1.442695, %v2699_v41  ;;  %1969 = vadd.xlane.f32.xlu1 %v2699_v41  ;;  %v3730_v42 = vpop.f32.mrf.mxu0  ;;  %v3749_v58 = vpop.xlane.xlu0 %1140  ;;  %v1731_v41 = vadd.f32 %v3690_v31, %v3557_v21 }
 0x437   :  { %v1907_v27 = vadd.f32 %v1875_v33, %v1711_v25  ;;  %2712 = vtanh.f32 %v1749_v18 }
 0x438   :  { %v2701_v3 = vpop.eup %2700  ;;  %2714 = vpow2.f32 %v1841_v63  ;;  %v1752_v52 = vpop.f32.mrf.mxu0 }
 0x439   :  { %v2703_v20 = vpop.eup %2702  ;;  %2035 = vst [vmem:[#allocation13 + $0x168] sm:$0xff] %v1907_v27  ;;  %v1876_v34 = vmul.f32 %v2701_v3, %v3171_v45  ;;  %v1753_v43 = vadd.f32 %v1752_v52, %v3537_v9  ;;  %v3754_v30 = vpop.xlane.xlu1 %1142  ;;  %v1735_v3 = vadd.f32 %v3700_v51, %v3557_v21 }
 0x43a   :  { %v1843_v54 = vmul.f32 1.442695, %v2703_v20  ;;  %1971 = vadd.xlane.f32.xlu1 %v2703_v20  ;;  %v3756_v5 = vpop.xlane.xlu0 %1144 }
 0x43b   :  { %v1908_v55 = vadd.f32 %v1876_v34, %v1715_v44  ;;  %2716 = vtanh.f32 %v1753_v43  ;;  %v1741_v34 = vadd.f32 %v3710_v7, %v3557_v21  ;;  %v3859_v43 = vld [vmem:[#allocation23_spill] sm:$0xff]  ;;  %v1751_v7 = vadd.f32 %v3730_v42, %v3557_v21 }
 0x43c   :  { %v2705_v39 = vpop.eup %2704  ;;  %2718 = vpow2.f32 %v1843_v54 }
 0x43d   :  { %v2707_v53 = vpop.eup %2706  ;;  %2036 = vst [vmem:[#allocation13 + $0x178] sm:$0xff] %v1908_v55  ;;  %v1845_v6 = vmul.f32 1.442695, %v2705_v39  ;;  %v3761_v18 = vpop.xlane.xlu1 %1146 }
 0x43e   :  { %v1877_v45 = vmul.f32 %v2707_v53, %v3174_v46  ;;  %1973 = vadd.xlane.f32.xlu1 %v2705_v39  ;;  %v3763_v63 = vpop.xlane.xlu0 %1148 }
 0x43f   :  { %2720 = vpow2.f32 %v1845_v6  ;;  %v3860_v6 = vld [vmem:[#allocation24_spill] sm:$0xff] }
 0x440   :  { %v2709_v9 = vpop.eup %2708  ;;  %v1909_v2 = vadd.f32 %v1877_v45, %v1721_v40 }
 0x441   :  { %v2711_v59 = vpop.eup %2710  ;;  %v1847_v24 = vmul.f32 1.442695, %v2709_v9  ;;  %v3768_v20 = vpop.xlane.xlu1 %1150 }
 0x442   :  { %2037 = vst [vmem:[#allocation13 + $0x188] sm:$0xff] %v1909_v2  ;;  %v1878_v56 = vmul.f32 %v2711_v59, %v3177_v47  ;;  %1975 = vadd.xlane.f32.xlu1 %v2709_v9  ;;  %v3770_v44 = vpop.xlane.xlu0 %1152  ;;  %v3861_v59 = vld [vmem:[#allocation25_spill] sm:$0xff] }
 0x443   :  { %2722 = vpow2.f32 %v1847_v24 }
 0x444   :  { %v2713_v15 = vpop.eup %2712  ;;  %v1910_v46 = vadd.f32 %v1878_v56, %v1725_v29  ;;  %v1754_v56 = vpop.f32.mrf.mxu0 }
 0x445   :  { %v2715_v50 = vpop.eup %2714  ;;  %v1849_v0 = vmul.f32 1.442695, %v2713_v15  ;;  %v3775_v53 = vpop.xlane.xlu1 %1154 }
 0x446   :  { %2038 = vst [vmem:[#allocation13 + $0x198] sm:$0xff] %v1910_v46  ;;  %v1879_v25 = vmul.f32 %v2715_v50, %v3060_v48  ;;  %1977 = vadd.xlane.f32.xlu1 %v2713_v15  ;;  %v3777_v51 = vpop.xlane.xlu0 %1156 }
 0x447   :  { %2724 = vpow2.f32 %v1849_v0  ;;  %v3862_v0 = vld [vmem:[#allocation26_spill] sm:$0xff] }
 0x448   :  { %v2717_v8 = vpop.eup %2716  ;;  %v1911_v47 = vadd.f32 %v1879_v25, %v1731_v41 }
 0x449   :  { %v2719_v33 = vpop.eup %2718  ;;  %v1851_v27 = vmul.f32 1.442695, %v2717_v8  ;;  %v3782_v2 = vpop.xlane.xlu1 %1158 }
 0x44a   :  { %2039 = vst [vmem:[#allocation13 + $0x1a8] sm:$0xff] %v1911_v47  ;;  %v1880_v52 = vmul.f32 %v2719_v33, %v3063_v49  ;;  %1979 = vadd.xlane.f32.xlu1 %v2717_v8  ;;  %v1745_v49 = vadd.f32 %v3720_v61, %v3557_v21  ;;  %v1755_v61 = vadd.f32 %v1754_v56, %v3557_v21 }
 0x44b   :  { %2726 = vpow2.f32 %v1851_v27 }
 0x44c   :  { %v2721_v31 = vpop.eup %2720  ;;  %v1912_v48 = vadd.f32 %v1880_v52, %v1735_v3 }
 0x44d   :  { %v1881_v54 = vmul.f32 %v2721_v31, %v3859_v43 }
 0x44e   :  { %2040 = vst [vmem:[#allocation13 + $0x1b8] sm:$0xff] %v1912_v48 }
 0x44f   :  { %v1913_v55 = vadd.f32 %v1881_v54, %v1741_v34 }
 0x450   :  { %v2723_v39 = vpop.eup %2722 }
 0x451   :  { %2041 = vst [vmem:[#allocation13 + $0x1c8] sm:$0xff] %v1913_v55  ;;  %v1882_v40 = vmul.f32 %v2723_v39, %v3860_v6 }
 0x453   :  { %v1914_v45 = vadd.f32 %v1882_v40, %v1745_v49 }
 0x454   :  { %v2725_v9 = vpop.eup %2724 }
 0x455   :  { %2042 = vst [vmem:[#allocation13 + $0x1d8] sm:$0xff] %v1914_v45  ;;  %v1883_v24 = vmul.f32 %v2725_v9, %v3861_v59  ;;  %v1918_v29 = vpop.xlane.xlu0 %1917 }
 0x456   :  { %v2045_v15 = vadd.f32 %v1918_v29, %v3644_v1 }
 0x457   :  { %v1915_v46 = vadd.f32 %v1883_v24, %v1751_v7 }
 0x458   :  { %v2727_v50 = vpop.eup %2726  ;;  %2077 = vxpose.xlu0.b32.start [1/16] (narrow) %v2045_v15, 8 }
 0x459   :  { %2043 = vst [vmem:[#allocation13 + $0x1e8] sm:$0xff] %v1915_v46  ;;  %v1884_v41 = vmul.f32 %v2727_v50, %v3862_v0  ;;  %v1920_v25 = vpop.xlane.xlu1 %1919 }
 0x45a   :  { %v2046_v8 = vadd.f32 %v1920_v25, %v3654_v62 }
 0x45b   :  { %v1916_v47 = vadd.f32 %v1884_v41, %v1755_v61 }
 0x45c   :  { %2078 = vxpose.xlu0.b32.cont [2/16] (narrow) %v2046_v8, 8 }
 0x45d   :  { %2044 = vst [vmem:[#allocation13 + $0x1f8] sm:$0xff] %v1916_v47  ;;  %v1922_v42 = vpop.xlane.xlu0 %1921 }
 0x45e   :  { %v2047_v33 = vadd.f32 %v1922_v42, %v3652_v13 }
 0x460   :  { %2079 = vxpose.xlu0.b32.cont [3/16] (narrow) %v2047_v33, 8 }
 0x461   :  { %v1924_v27 = vpop.xlane.xlu1 %1923 }
 0x462   :  { %v2048_v1 = vadd.f32 %v1924_v27, %v3662_v32 }
 0x464   :  { %2080 = vxpose.xlu0.b32.cont [4/16] (narrow) %v2048_v1, 8 }
 0x466   :  { %v1926_v3 = vpop.xlane.xlu0 %1925 }
 0x467   :  { %v2049_v52 = vadd.f32 %v1926_v3, %v3664_v37 }
 0x469   :  { %2081 = vxpose.xlu0.b32.cont [5/16] (narrow) %v2049_v52, 8 }
 0x46a   :  { %v1928_v21 = vpop.xlane.xlu0 %1927 }
 0x46b   :  { %v2050_v31 = vadd.f32 %v1928_v21, %v3672_v36 }
 0x46d   :  { %2082 = vxpose.xlu0.b32.cont [6/16] (narrow) %v2050_v31, 8 }
 0x46e   :  { %v1930_v62 = vpop.xlane.xlu0 %1929 }
 0x46f   :  { %v2051_v48 = vadd.f32 %v1930_v62, %v3674_v60 }
 0x471   :  { %2083 = vxpose.xlu0.b32.cont [7/16] (narrow) %v2051_v48, 8 }
 0x472   :  { %v1932_v34 = vpop.xlane.xlu0 %1931 }
 0x473   :  { %v2052_v13 = vadd.f32 %v1932_v34, %v3682_v26 }
 0x475   :  { %2084 = vxpose.xlu0.b32.cont [8/16] (narrow) %v2052_v13, 8 }
 0x477   :  { %v1934_v43 = vpop.xlane.xlu0 %1933 }
 0x478   :  { %v2053_v32 = vadd.f32 %v1934_v43, %v3684_v16 }
 0x47a   :  { %2085 = vxpose.xlu0.b32.cont [9/16] (narrow) %v2053_v32, 8 }
 0x47b   :  { %v1936_v54 = vpop.xlane.xlu0 %1935 }
 0x47c   :  { %v2054_v37 = vadd.f32 %v1936_v54, %v3692_v17 }
 0x47e   :  { %2086 = vxpose.xlu0.b32.cont [10/16] (narrow) %v2054_v37, 8 }
 0x47f   :  { %v1938_v55 = vpop.xlane.xlu0 %1937 }
 0x480   :  { %v2055_v36 = vadd.f32 %v1938_v55, %v3694_v10 }
 0x482   :  { %2087 = vxpose.xlu0.b32.cont [11/16] (narrow) %v2055_v36, 8 }
 0x483   :  { %v1940_v39 = vpop.xlane.xlu0 %1939 }
 0x484   :  { %v2056_v60 = vadd.f32 %v1940_v39, %v3702_v4 }
 0x486   :  { %2088 = vxpose.xlu0.b32.cont [12/16] (narrow) %v2056_v60, 8 }
 0x487   :  { %v1942_v49 = vpop.xlane.xlu0 %1941 }
 0x488   :  { %v2057_v26 = vadd.f32 %v1942_v49, %v3704_v12 }
 0x48a   :  { %2089 = vxpose.xlu0.b32.cont [13/16] (narrow) %v2057_v26, 8 }
 0x48b   :  { %v1944_v6 = vpop.xlane.xlu0 %1943 }
 0x48c   :  { %v2058_v16 = vadd.f32 %v1944_v6, %v3712_v38 }
 0x48e   :  { %2090 = vxpose.xlu0.b32.cont [14/16] (narrow) %v2058_v16, 8 }
 0x48f   :  { %v1946_v40 = vpop.xlane.xlu0 %1945 }
 0x490   :  { %v2059_v17 = vadd.f32 %v1946_v40, %v3714_v35 }
 0x492   :  { %2091 = vxpose.xlu0.b32.cont [15/16] (narrow) %v2059_v17, 8 }
 0x493   :  { %v1948_v45 = vpop.xlane.xlu0 %1947 }
 0x494   :  { %v2060_v10 = vadd.f32 %v1948_v45, %v3722_v14 }
 0x496   :  { %2092 = vxpose.xlu0.b32.end [16/16] (narrow) %v2060_v10, 8 }
 0x497   :  { %v1950_v9 = vpop.xlane.xlu0 %1949 }
 0x498   :  { %v2061_v4 = vadd.f32 %v1950_v9, %v3724_v57 }
 0x49a   :  { %2109 = vxpose.xlu1.b32.start [1/16] (narrow) %v2061_v4, 8 }
 0x49b   :  { %v1952_v7 = vpop.xlane.xlu1 %1951 }
 0x49c   :  { %v2062_v12 = vadd.f32 %v1952_v7, %v3732_v22 }
 0x49e   :  { %2110 = vxpose.xlu1.b32.cont [2/16] (narrow) %v2062_v12, 8 }
 0x49f   :  { %2859 = shalt.err (!%p2856_p6)
}
 0x4a0   :  { %2175 = dma.vmem_to_hbm [thread:$0]  %s2170_s21, 8192, %s3843_s11, [#allocation4], %s2905_s17, %s2905_s17, %s2906_s18   ;;  %v1954_v38 = vpop.xlane.xlu0 %1953  ;;  %v2914_v33 = vmov 1966171168   ;;  %v3863_v3 = vld [vmem:[#allocation22_spill] sm:$0xff]  ;;  %v3864_v31 = vlaneseq }
 0x4a1   :  { %v2063_v35 = vadd.f32 %v1954_v38, %v3734_v19  ;;  %v2145_v27 = vunpack.c.l.s4 %v2914_v33  ;;  %s2915_s11 = smov [#allocation14]  }
 0x4a2   :  { %s2182_s17 = sshll.u32 %s2915_s11, 4  ;;  %vm2161_vm0 = vcmp.lt.s32.totalorder %v3864_v31, 256  ;;  %s2183_s17 = int_to_ptr.vmem [resolvable:$true] %s2182_s17 }
 0x4a3   :  { %2111 = vxpose.xlu1.b32.cont [3/16] (narrow) %v2063_v35, 8  ;;  %v1956_v14 = vpop.xlane.xlu1 %1955  ;;  %s2868_s18 = scalar_lea.vmem %s2183_s17, 32  ;;  %p2873_p8 = scmp.lt.s32.totalorder %s2183_s17, %s2183_s17 }
 0x4a4   :  { %v2064_v57 = vadd.f32 %v1956_v14, %v3740_v28  ;;  %p2869_p7 = scmp.ne.s32.totalorder %s2183_s17, %s2868_s18  ;;  %p2874_p9 = scmp.lt.s32.totalorder %s2868_s18, %s2868_s18 }
 0x4a6   :  { %p2875_p10 = por %p2874_p9, %p2873_p8 }
 0x4a7   :  { %2112 = vxpose.xlu1.b32.cont [4/16] (narrow) %v2064_v57, 8  ;;  %v1958_v22 = vpop.xlane.xlu1 %1957 }
 0x4a8   :  { %v2065_v59 = vadd.f32 %v1958_v22, %v3742_v23  ;;  %p2876_p11 = pnand %p2875_p10, %p2869_p7 }
 0x4ab   :  { %2113 = vxpose.xlu1.b32.cont [5/16] (narrow) %v2065_v59, 8  ;;  %v1960_v24 = vpop.xlane.xlu1 %1959 }
 0x4ac   :  { %v2066_v29 = vadd.f32 %v1960_v24, %v3747_v11 }
 0x4af   :  { %2114 = vxpose.xlu1.b32.cont [6/16] (narrow) %v2066_v29, 8  ;;  %v1962_v56 = vpop.xlane.xlu1 %1961 }
 0x4b0   :  { %v2067_v15 = vadd.f32 %v1962_v56, %v3749_v58 }
 0x4b3   :  { %2115 = vxpose.xlu1.b32.cont [7/16] (narrow) %v2067_v15, 8  ;;  %v1964_v46 = vpop.xlane.xlu1 %1963 }
 0x4b4   :  { %v2068_v19 = vadd.f32 %v1964_v46, %v3754_v30 }
 0x4b7   :  { %2116 = vxpose.xlu1.b32.cont [8/16] (narrow) %v2068_v19, 8  ;;  %v1966_v50 = vpop.xlane.xlu1 %1965 }
 0x4b8   :  { %v2069_v28 = vadd.f32 %v1966_v50, %v3756_v5 }
 0x4bb   :  { %2117 = vxpose.xlu1.b32.cont [9/16] (narrow) %v2069_v28, 8  ;;  %v1968_v61 = vpop.xlane.xlu1 %1967 }
 0x4bc   :  { %v2070_v23 = vadd.f32 %v1968_v61, %v3761_v18 }
 0x4bf   :  { %2118 = vxpose.xlu1.b32.cont [10/16] (narrow) %v2070_v23, 8  ;;  %v1970_v0 = vpop.xlane.xlu1 %1969 }
 0x4c0   :  { %v2071_v11 = vadd.f32 %v1970_v0, %v3763_v63 }
 0x4c3   :  { %2119 = vxpose.xlu1.b32.cont [11/16] (narrow) %v2071_v11, 8  ;;  %v1972_v41 = vpop.xlane.xlu1 %1971 }
 0x4c4   :  { %v2072_v58 = vadd.f32 %v1972_v41, %v3768_v20  ;;  %v2146_v20 = vunpack.c.0.s8 %v2145_v27 }
 0x4c6   :  { %v2149_v52 = vsub.s32 %v2146_v20, %v3863_v3 }
 0x4c7   :  { %2120 = vxpose.xlu1.b32.cont [12/16] (narrow) %v2072_v58, 8  ;;  %v1974_v25 = vpop.xlane.xlu1 %1973 }
 0x4c8   :  { %v2073_v30 = vadd.f32 %v1974_v25, %v3770_v44 }
 0x4cb   :  { %2121 = vxpose.xlu1.b32.cont [13/16] (narrow) %v2073_v30, 8  ;;  %v1976_v8 = vpop.xlane.xlu1 %1975 }
 0x4cc   :  { %v2074_v5 = vadd.f32 %v1976_v8, %v3775_v53 }
 0x4cf   :  { %2122 = vxpose.xlu1.b32.cont [14/16] (narrow) %v2074_v5, 8  ;;  %v1978_v47 = vpop.xlane.xlu1 %1977 }
 0x4d0   :  { %v2075_v18 = vadd.f32 %v1978_v47, %v3777_v51 }
 0x4d3   :  { %2123 = vxpose.xlu1.b32.cont [15/16] (narrow) %v2075_v18, 8  ;;  %v1980_v42 = vpop.xlane.xlu1 %1979 }
 0x4d4   :  { %v2076_v63 = vadd.f32 %v1980_v42, %v3782_v2 }
 0x4d6   :  { %v2093_v1 = vpop.trf.xlu0 }
 0x4d7   :  { %2124 = vxpose.xlu1.b32.end [16/16] (narrow) %v2076_v63, 8 }
 0x517   :  { %v2125_v44 = vpop.trf.xlu1 }
 0x518   :  { %v2143_v21 = vcombine.low %v2093_v1, %v2125_v44 }
 0x51a   :  { %v2150_v53 = vrot.slane %v2143_v21, %v2149_v52 }
 0x51c   :  { %v2157_v62 = vrot.slane %v2150_v53, %v2149_v52 }
 0x51e   :  { %2163 = vst.msk [vmem:[#allocation14] sm:$0x3] %vm2161_vm0, %v2157_v62 }
 0x51f   :  { %2879 = shalt.err (!%p2876_p11)
}
 0x520   :  { %2185 = dma.vmem_to_hbm [thread:$0]  %s2183_s17, 32, %s3844_s12, [#allocation15]  }
 0x521   :  { %2896 = dma.done.wait [#allocation4], 8192  }
 0x522   :  { %2897 = vsyncadd [#allocation4], 4294959104 }
 0x523   :  { %2898 = dma.done.wait [#allocation15], 32  }
 0x524   :  { %2899 = vsyncadd [#allocation15], 4294967264 }
 0x525   :  { %2192 = vsyncpa [#allocation3], 1 }
 0x526   :  { %2193 = vsyncpa [#allocation6], 1 }
 0x527   :  { %2194 = vsyncpa [#allocation9], 1 }
 0x528   :  { %2195 = vsyncpa [#allocation12], 1 }
 0x529   :  { %2196 = vsyncpa [#allocation4], 1 }
 0x52a   :  { %2197 = vsyncpa [#allocation15], 1 }

// kernel: tpu_custom_call.1
= control target key start
LH: loop header
LB: loop body
LE: loop exit
PB: predicated region body
PF: predicated region fallthrough
CT: control target
= control target key end

     0   :  { %18 = vsyncpa [#allocation3], 0  ;;  %s3832_s0 = inlined_call_operand.hbm [shape: f32[256,256], index: 0, kind: input, shape index: {}]   ;;  %s3833_s1 = inlined_call_operand.hbm [shape: f32[1,256], index: 1, kind: input, shape index: {}]   ;;  %s3834_s2 = inlined_call_operand.vmem [shape: f32[1,256], index: 2, kind: input, shape index: {}]   ;;  %s3835_s3 = inlined_call_operand.hbm [shape: bf16[128,128], index: 3, kind: input, shape index: {}]   ;;  %s3836_s4 = inlined_call_operand.vmem [shape: f32[1,128], index: 4, kind: input, shape index: {}]   ;;  %s3837_s5 = inlined_call_operand.hbm [shape: bf16[128,256], index: 5, kind: input, shape index: {}]   ;;  %s3838_s6 = inlined_call_operand.vmem [shape: f32[1,256], index: 6, kind: input, shape index: {}]   ;;  %s3839_s7 = inlined_call_operand.hbm [shape: bf16[128,128], index: 7, kind: input, shape index: {}]   ;;  %s3840_s8 = inlined_call_operand.vmem [shape: f32[1,128], index: 8, kind: input, shape index: {}]   ;;  %s3841_s9 = inlined_call_operand.hbm [shape: bf16[128,256], index: 9, kind: input, shape index: {}]   ;;  %s3842_s10 = inlined_call_operand.vmem [shape: f32[1,256], index: 10, kind: input, shape index: {}]   ;;  %s3843_s11 = inlined_call_operand.hbm [shape: f32[256,256], index: 11, kind: output, shape index: {0}]   ;;  %s3844_s12 = inlined_call_operand.hbm [shape: f32[1,256], index: 12, kind: output, shape index: {1}]  }
   0x1   :  { %19 = vsyncpa [#allocation6], 0 }
   0x2   :  { %20 = vsyncpa [#allocation9], 0 }
   0x3   :  { %21 = vsyncpa [#allocation12], 0 }
   0x4   :  { %22 = vsyncpa [#allocation4], 0 }
   0x5   :  { %23 = vsyncpa [#allocation15], 0  ;;  %s2900_s21 = smov [#allocation5]   ;;  %s2901_s23 = smov [#allocation8]  }
   0x6   :  { %s42_s22 = sshll.u32 %s2900_s21, 4  ;;  %s67_s24 = sshll.u32 %s2901_s23, 4  ;;  %s43_s22 = int_to_ptr.vmem [resolvable:$true] %s42_s22  ;;  %s68_s24 = int_to_ptr.vmem [resolvable:$true] %s67_s24 }
   0x7   :  { %s2736_s25 = scalar_lea.vmem %s43_s22, 32  ;;  %p2741_p1 = scmp.lt.s32.totalorder %s43_s22, %s43_s22 }
   0x8   :  { %p2737_p0 = scmp.ne.s32.totalorder %s43_s22, %s2736_s25  ;;  %p2742_p2 = scmp.lt.s32.totalorder %s2736_s25, %s2736_s25 }
   0xa   :  { %p2743_p3 = por %p2742_p2, %p2741_p1 }
   0xc   :  { %p2744_p4 = pnand %p2743_p3, %p2737_p0 }
   0xe   :  { %2747 = shalt.err (!%p2744_p4)
}
   0xf   :  { %45 = dma.hbm_to_vmem [thread:$0]  %s3833_s1, 32, %s43_s22, [#allocation6]  }
  0x10   :  { %s2756_s28 = scalar_lea.vmem %s68_s24, 2048  ;;  %p2761_p6 = scmp.lt.s32.totalorder %s68_s24, %s68_s24 }
  0x11   :  { %p2757_p5 = scmp.ne.s32.totalorder %s68_s24, %s2756_s28  ;;  %p2762_p7 = scmp.lt.s32.totalorder %s2756_s28, %s2756_s28 }
  0x13   :  { %p2763_p8 = por %p2762_p7, %p2761_p6 }
  0x15   :  { %p2764_p9 = pnand %p2763_p8, %p2757_p5 }
  0x17   :  { %2767 = shalt.err (!%p2764_p9)
}
  0x18   :  { %s2902_s29 = smov 128   ;;  %s2903_s30 = smov 8  }
  0x19   :  { %73 = dma.hbm_to_vmem [thread:$0]  %s3837_s5, 2048, %s68_s24, [#allocation9], %s2902_s29, %s2902_s29, %s2903_s30  }
  0x1a   :  { %s2904_s15 = smov [#allocation2]  }
  0x1b   :  { %s29_s16 = sshll.u32 %s2904_s15, 4  ;;  %s30_s16 = int_to_ptr.vmem [resolvable:$true] %s29_s16 }
  0x1c   :  { %s2776_s1 = scalar_lea.vmem %s30_s16, 8192  ;;  %p2781_p11 = scmp.lt.s32.totalorder %s30_s16, %s30_s16 }
  0x1d   :  { %p2777_p10 = scmp.ne.s32.totalorder %s30_s16, %s2776_s1  ;;  %p2782_p12 = scmp.lt.s32.totalorder %s2776_s1, %s2776_s1 }
  0x1f   :  { %p2783_p13 = por %p2782_p12, %p2781_p11 }
  0x21   :  { %p2784_p0 = pnand %p2783_p13, %p2777_p10 }
  0x23   :  { %2787 = shalt.err (!%p2784_p0)
}
  0x24   :  { %s2905_s17 = smov 256   ;;  %s2906_s18 = smov 16  }
  0x25   :  { %35 = dma.hbm_to_vmem [thread:$0]  %s3832_s0, 8192, %s30_s16, [#allocation3], %s2905_s17, %s2905_s17, %s2906_s18  }
  0x26   :  { %s2907_s5 = smov [#allocation7]  }
  0x27   :  { %s53_s21 = sshll.u32 %s2907_s5, 4  ;;  %s54_s21 = int_to_ptr.vmem [resolvable:$true] %s53_s21 }
  0x28   :  { %s2796_s22 = scalar_lea.vmem %s54_s21, 1024  ;;  %p2801_p2 = scmp.lt.s32.totalorder %s54_s21, %s54_s21 }
  0x29   :  { %p2797_p1 = scmp.ne.s32.totalorder %s54_s21, %s2796_s22  ;;  %p2802_p3 = scmp.lt.s32.totalorder %s2796_s22, %s2796_s22 }
  0x2b   :  { %p2803_p4 = por %p2802_p3, %p2801_p2 }
  0x2d   :  { %p2804_p5 = pnand %p2803_p4, %p2797_p1 }
  0x2f   :  { %2807 = shalt.err (!%p2804_p5)
}
  0x30   :  { %s2908_s23 = smov 64   ;;  %s2909_s24 = smov 4  }
  0x31   :  { %59 = dma.hbm_to_vmem [thread:$0]  %s3835_s3, 1024, %s54_s21, [#allocation6], %s2908_s23, %s2908_s23, %s2909_s24  }
  0x32   :  { %s2910_s27 = smov [#allocation10]   ;;  %s2911_s13 = smov [#allocation11]  }
  0x33   :  { %s81_s28 = sshll.u32 %s2910_s27, 4  ;;  %s95_s0 = sshll.u32 %s2911_s13, 4  ;;  %s82_s28 = int_to_ptr.vmem [resolvable:$true] %s81_s28  ;;  %s96_s0 = int_to_ptr.vmem [resolvable:$true] %s95_s0 }
  0x34   :  { %s2816_s14 = scalar_lea.vmem %s82_s28, 1024  ;;  %p2821_p7 = scmp.lt.s32.totalorder %s82_s28, %s82_s28 }
  0x35   :  { %p2817_p6 = scmp.ne.s32.totalorder %s82_s28, %s2816_s14  ;;  %p2822_p8 = scmp.lt.s32.totalorder %s2816_s14, %s2816_s14 }
  0x37   :  { %p2823_p9 = por %p2822_p8, %p2821_p7 }
  0x39   :  { %p2824_p10 = pnand %p2823_p9, %p2817_p6 }
  0x3b   :  { %2827 = shalt.err (!%p2824_p10)
}
  0x3c   :  { %87 = dma.hbm_to_vmem [thread:$0]  %s3839_s7, 1024, %s82_s28, [#allocation9], %s2908_s23, %s2908_s23, %s2909_s24  }
  0x3d   :  { %s2836_s1 = scalar_lea.vmem %s96_s0, 2048  ;;  %p2841_p12 = scmp.lt.s32.totalorder %s96_s0, %s96_s0 }
  0x3e   :  { %p2837_p11 = scmp.ne.s32.totalorder %s96_s0, %s2836_s1  ;;  %p2842_p13 = scmp.lt.s32.totalorder %s2836_s1, %s2836_s1 }
  0x40   :  { %p2843_p0 = por %p2842_p13, %p2841_p12 }
  0x42   :  { %p2844_p1 = pnand %p2843_p0, %p2837_p11 }
  0x44   :  { %2847 = shalt.err (!%p2844_p1)
}
  0x45   :  { %101 = dma.hbm_to_vmem [thread:$0]  %s3841_s9, 2048, %s96_s0, [#allocation12], %s2902_s29, %s2902_s29, %s2903_s30  }
  0x46   :  { %2888 = dma.done.wait [#allocation3], 8192  }
  0x47   :  { %2889 = vsyncadd [#allocation3], 4294959104 }
  0x48   :  { %2890 = dma.done.wait [#allocation6], 1056  }
  0x49   :  { %2891 = vsyncadd [#allocation6], 4294966240 }
  0x4a   :  { %2892 = dma.done.wait [#allocation9], 3072  }
  0x4b   :  { %2893 = vsyncadd [#allocation9], 4294964224 }
  0x4c   :  { %2894 = dma.done.wait [#allocation12], 2048  }
  0x4d   :  { %2895 = vsyncadd [#allocation12], 4294965248  ;;  %v3845_v0 = vlaneseq  ;;  %v2408_v1 = vld [vmem:[#allocation7 + $0x38] sm:$0xff]   ;;  %v2409_v2 = vld [vmem:[#allocation7 + $0x30] sm:$0xff]  }
  0x4e   :  { %2296 = vmatprep.subr.bf16.mxu1 %v2408_v1  ;;  %v2410_v4 = vld [vmem:[#allocation7 + $0x28] sm:$0xff]   ;;  %v2411_v6 = vld [vmem:[#allocation7 + $0x20] sm:$0xff]   ;;  %v3014_v9 = vld [vmem:[#allocation5] sm:$0x3] }
  0x4f   :  { %v3009_v3 = vshrl.u32 %v3845_v0, 7  ;;  %2297 = vmatpush3.bf16.msra.mxu1 %v2408_v1  ;;  %v123_v7 = vld [vmem:[#allocation2] sm:$0xff]  ;;  %v125_v8 = vld [vmem:[#allocation2 + $0x10] sm:$0xff] }
  0x50   :  { %2298 = vmatprep.subr.bf16.mxu1 %v2409_v2  ;;  %v3023_v11 = vld [vmem:[%s3834_s2] sm:$0x3]  ;;  %v2413_v19 = vld [vmem:[#allocation7 + $0x10] sm:$0xff]   ;;  %v2414_v20 = vld [vmem:[#allocation7 + $0x8] sm:$0xff]  }
  0x51   :  { %3853 = vst [vmem:[#allocation22_spill] sm:$0xff] %v3009_v3  ;;  %v3012_v5 = vsub.s32 0, %v3009_v3  ;;  %v2412_v15 = vld [vmem:[#allocation7 + $0x18] sm:$0xff]   ;;  %v129_v22 = vld [vmem:[#allocation2 + $0x30] sm:$0xff]  ;;  %v2415_v25 = vld [vmem:[#allocation7] sm:$0xff]  }
  0x52   :  { %v127_v21 = vld [vmem:[#allocation2 + $0x20] sm:$0xff]  ;;  %v133_v24 = vld [vmem:[#allocation2 + $0x50] sm:$0xff] }
  0x53   :  { %2299 = vmatpush3.bf16.msra.mxu1 %v2409_v2  ;;  %v3018_v10 = vrot.slane %v3014_v9, %v3012_v5  ;;  %v3027_v12 = vrot.slane %v3023_v11, %v3012_v5  ;;  %v131_v23 = vld [vmem:[#allocation2 + $0x40] sm:$0xff]  ;;  %v177_v31 = vld [vmem:[#allocation2 + $0x1b0] sm:$0xff] }
  0x54   :  { %2300 = vmatprep.subr.bf16.mxu1 %v2410_v4  ;;  %v175_v28 = vld [vmem:[#allocation2 + $0x1a0] sm:$0xff]  ;;  %v181_v34 = vld [vmem:[#allocation2 + $0x1d0] sm:$0xff] }
  0x55   :  { %v199_v13 = vmul.f32 %v3018_v10, %v123_v7  ;;  %v201_v14 = vmul.f32 %v3018_v10, %v125_v8  ;;  %v203_v26 = vmul.f32 %v3018_v10, %v127_v21  ;;  %v205_v27 = vmul.f32 %v3018_v10, %v129_v22  ;;  %v135_v32 = vld [vmem:[#allocation2 + $0x60] sm:$0xff]  ;;  %v185_v36 = vld [vmem:[#allocation2 + $0x1f0] sm:$0xff] }
  0x56   :  { %v207_v29 = vmul.f32 %v3018_v10, %v131_v23  ;;  %v209_v30 = vmul.f32 %v3018_v10, %v133_v24  ;;  %v179_v33 = vld [vmem:[#allocation2 + $0x1c0] sm:$0xff]  ;;  %v137_v39 = vld [vmem:[#allocation2 + $0x70] sm:$0xff]  ;;  %v251_v40 = vmul.f32 %v3018_v10, %v175_v28  ;;  %v253_v41 = vmul.f32 %v3018_v10, %v177_v31 }
  0x57   :  { %2301 = vmatpush3.bf16.msra.mxu1 %v2410_v4  ;;  %v3032_v16 = vadd.f32 %v3027_v12, %v199_v13  ;;  %v3035_v17 = vadd.f32 %v3027_v12, %v201_v14  ;;  %v183_v35 = vld [vmem:[#allocation2 + $0x1e0] sm:$0xff]  ;;  %v3044_v37 = vadd.f32 %v3027_v12, %v203_v26  ;;  %v3047_v38 = vadd.f32 %v3027_v12, %v205_v27  ;;  %v141_v47 = vld [vmem:[#allocation2 + $0x90] sm:$0xff] }
  0x58   :  { %2302 = vmatprep.subr.bf16.mxu1 %v2411_v6  ;;  %v3052_v42 = vadd.f32 %v3027_v12, %v207_v29  ;;  %v3055_v43 = vadd.f32 %v3027_v12, %v209_v30  ;;  %v139_v44 = vld [vmem:[#allocation2 + $0x80] sm:$0xff]  ;;  %v255_v45 = vmul.f32 %v3018_v10, %v179_v33  ;;  %v257_v46 = vmul.f32 %v3018_v10, %v181_v34  ;;  %v2416_v56 = vld [vmem:[#allocation8 + $0x70] ss:$8 sps:$4 sm:$0xff]  }
  0x59   :  { %v339_v18 = vpack.c.bf16 %v3035_v17, %v3032_v16  ;;  %v3060_v48 = vadd.f32 %v3027_v12, %v251_v40  ;;  %v3063_v49 = vadd.f32 %v3027_v12, %v253_v41  ;;  %v259_v50 = vmul.f32 %v3018_v10, %v183_v35  ;;  %v2418_v52 = vld [vmem:[#allocation8 + $0x74] ss:$8 sps:$4 sm:$0xff]   ;;  %v2421_v61 = vld [vmem:[#allocation8 + $0x64] ss:$8 sps:$4 sm:$0xff]   ;;  %v2425_v34 = vld [vmem:[#allocation8 + $0x40] ss:$8 sps:$4 sm:$0xff]  }
  0x5a   :  { %v261_v51 = vmul.f32 %v3018_v10, %v185_v36  ;;  %v211_v53 = vmul.f32 %v3018_v10, %v135_v32  ;;  %v3069_v54 = vadd.f32 %v3027_v12, %v255_v45  ;;  %v3072_v55 = vadd.f32 %v3027_v12, %v257_v46  ;;  %v143_v2 = vld [vmem:[#allocation2 + $0xa0] sm:$0xff]  ;;  %v145_v4 = vld [vmem:[#allocation2 + $0xb0] sm:$0xff] }
  0x5b   :  { %2303 = vmatpush3.bf16.msra.mxu1 %v2411_v6  ;;  %2312 = vmatprep.mubr.bf16.mxu1 %v339_v18  ;;  %v340_v57 = vpack.c.bf16 %v3047_v38, %v3044_v37  ;;  %v213_v58 = vmul.f32 %v3018_v10, %v137_v39  ;;  %v3078_v59 = vadd.f32 %v3027_v12, %v259_v50  ;;  %v2419_v6 = vld [vmem:[#allocation8 + $0x60] ss:$8 sps:$4 sm:$0xff]   ;;  %v149_v14 = vld [vmem:[#allocation2 + $0xd0] sm:$0xff] }
  0x5c   :  { %2304 = vmatprep.subr.bf16.mxu1 %v2412_v15  ;;  %3854 = vst [vmem:[#allocation23_spill] sm:$0xff] %v3069_v54  ;;  %3855 = vst [vmem:[#allocation24_spill] sm:$0xff] %v3072_v55  ;;  %v3081_v60 = vadd.f32 %v3027_v12, %v261_v51  ;;  %v341_v62 = vpack.c.bf16 %v3055_v43, %v3052_v42  ;;  %v215_v63 = vmul.f32 %v3018_v10, %v139_v44  ;;  %v147_v13 = vld [vmem:[#allocation2 + $0xc0] sm:$0xff]  ;;  %v153_v33 = vld [vmem:[#allocation2 + $0xf0] sm:$0xff] }
  0x5d   :  { %3856 = vst [vmem:[#allocation25_spill] sm:$0xff] %v3078_v59  ;;  %v217_v1 = vmul.f32 %v3018_v10, %v141_v47  ;;  %v3088_v7 = vadd.f32 %v3027_v12, %v211_v53  ;;  %v3091_v8 = vadd.f32 %v3027_v12, %v213_v58  ;;  %v219_v22 = vmul.f32 %v3018_v10, %v143_v2  ;;  %v2427_v27 = vld [vmem:[#allocation8 + $0x44] ss:$8 sps:$4 sm:$0xff]   ;;  %v2430_v39 = vld [vmem:[#allocation8 + $0x34] ss:$8 sps:$4 sm:$0xff]  }
  0x5e   :  { %3857 = vst [vmem:[#allocation26_spill] sm:$0xff] %v3081_v60  ;;  %v3094_v18 = vadd.f32 %v3027_v12, %v215_v63  ;;  %v221_v23 = vmul.f32 %v3018_v10, %v145_v4  ;;  %v225_v26 = vmul.f32 %v3018_v10, %v149_v14  ;;  %v151_v32 = vld [vmem:[#allocation2 + $0xe0] sm:$0xff]  ;;  %v157_v36 = vld [vmem:[#allocation2 + $0x110] sm:$0xff]  ;;  %v229_v44 = vmul.f32 %v3018_v10, %v153_v33 }
  0x5f   :  { %2305 = vmatpush3.bf16.msra.mxu1 %v2412_v15  ;;  %v2424_v15 = vld [vmem:[#allocation8 + $0x54] ss:$8 sps:$4 sm:$0xff]   ;;  %v342_v21 = vpack.c.bf16 %v3091_v8, %v3088_v7  ;;  %v3108_v28 = vadd.f32 %v3027_v12, %v219_v22  ;;  %v227_v41 = vmul.f32 %v3018_v10, %v151_v32  ;;  %v233_v47 = vmul.f32 %v3018_v10, %v157_v36  ;;  %v2428_v50 = vld [vmem:[#allocation8 + $0x30] ss:$8 sps:$4 sm:$0xff]   ;;  %v2433_v51 = vld [vmem:[#allocation8 + $0x24] ss:$8 sps:$4 sm:$0xff]  }
  0x60   :  { %2306 = vmatprep.subr.bf16.mxu1 %v2413_v19  ;;  %v3111_v29 = vadd.f32 %v3027_v12, %v221_v23  ;;  %v3117_v31 = vadd.f32 %v3027_v12, %v225_v26  ;;  %v155_v35 = vld [vmem:[#allocation2 + $0x100] sm:$0xff]  ;;  %v3131_v53 = vadd.f32 %v3027_v12, %v229_v44  ;;  %v173_v33 = vld [vmem:[#allocation2 + $0x190] sm:$0xff] }
  0x61   :  { %v231_v46 = vmul.f32 %v3018_v10, %v155_v35  ;;  %v159_v58 = vld [vmem:[#allocation2 + $0x120] sm:$0xff] }
  0x62   :  { %v344_v40 = vpack.c.bf16 %v3111_v29, %v3108_v28  ;;  %v163_v63 = vld [vmem:[#allocation2 + $0x140] sm:$0xff] }
  0x63   :  { %2307 = vmatpush3.bf16.msra.mxu1 %v2413_v19  ;;  %v3097_v19 = vadd.f32 %v3027_v12, %v217_v1  ;;  %v165_v1 = vld [vmem:[#allocation2 + $0x150] sm:$0xff]  ;;  %v167_v26 = vld [vmem:[#allocation2 + $0x160] sm:$0xff] }
  0x64   :  { %2308 = vmatprep.subr.bf16.mxu1 %v2414_v20  ;;  %v2436_v2 = vld [vmem:[#allocation8 + $0x14] ss:$8 sps:$4 sm:$0xff]   ;;  %v243_v35 = vmul.f32 %v3018_v10, %v167_v26 }
  0x65   :  { %v343_v24 = vpack.c.bf16 %v3097_v19, %v3094_v18  ;;  %v171_v32 = vld [vmem:[#allocation2 + $0x180] sm:$0xff] }
  0x66   :  { %v3168_v44 = vadd.f32 %v3027_v12, %v243_v35 }
  0x67   :  { %2309 = vmatpush3.bf16.msra.mxu1 %v2414_v20  ;;  %v2422_v20 = vld [vmem:[#allocation8 + $0x50] ss:$8 sps:$4 sm:$0xff]  }
  0x68   :  { %2310 = vmatprep.subr.bf16.mxu1 %v2415_v25 }
  0x6b   :  { %2311 = vmatpush3.bf16.msra.mxu1 %v2415_v25  ;;  %v223_v25 = vmul.f32 %v3018_v10, %v147_v13 }
  0x6c   :  { %743 = vmatprep.subr.bf16.mxu1 %v2418_v52  ;;  %v3128_v52 = vadd.f32 %v3027_v12, %v227_v41  ;;  %v249_v41 = vmul.f32 %v3018_v10, %v173_v33 }
  0x6d   :  { %v3114_v30 = vadd.f32 %v3027_v12, %v223_v25 }
  0x6e   :  { %2313 = vmatmul.mubr.bf16.vlgmr.msra.gmra.mxu1 %v340_v57  ;;  %v3137_v57 = vadd.f32 %v3027_v12, %v233_v47  ;;  %v346_v4 = vpack.c.bf16 %v3131_v53, %v3128_v52  ;;  %v3177_v47 = vadd.f32 %v3027_v12, %v249_v41 }
  0x6f   :  { %2316 = vmatprep.mubr.bf16.mxu1 %v341_v62  ;;  %744 = vmatpush1.bf16.msra.mxu1 %v2416_v56  ;;  %v345_v45 = vpack.c.bf16 %v3117_v31, %v3114_v30  ;;  %v3134_v56 = vadd.f32 %v3027_v12, %v231_v46  ;;  %v2431_v62 = vld [vmem:[#allocation8 + $0x20] ss:$8 sps:$4 sm:$0xff]  }
  0x70   :  { %745 = vmatprep.subr.bf16.mxu1 %v2421_v61  ;;  %v161_v61 = vld [vmem:[#allocation2 + $0x130] sm:$0xff] }
  0x71   :  { %v237_v13 = vmul.f32 %v3018_v10, %v161_v61  ;;  %v347_v14 = vpack.c.bf16 %v3137_v57, %v3134_v56  ;;  %v2439_v61 = vld [vmem:[#allocation8 + $0x4] ss:$8 sps:$4 sm:$0xff]  }
  0x73   :  { %746 = vmatpush1.bf16.msra.mxu1 %v2419_v6  ;;  %v235_v6 = vmul.f32 %v3018_v10, %v159_v58  ;;  %v3151_v23 = vadd.f32 %v3027_v12, %v237_v13  ;;  %v353_v58 = vpack.c.bf16 %v3072_v55, %v3069_v54 }
  0x74   :  { %747 = vmatprep.subr.bf16.mxu1 %v2424_v15  ;;  %v239_v15 = vmul.f32 %v3018_v10, %v163_v63  ;;  %v3846_v63 = vmov 0  }
  0x75   :  { %v3148_v22 = vadd.f32 %v3027_v12, %v235_v6 }
  0x76   :  { %2317 = vmatmul.mubr.bf16.gmra.mxu1 %v342_v21  ;;  %v2434_v21 = vld [vmem:[#allocation8 + $0x10] ss:$8 sps:$4 sm:$0xff]  }
  0x77   :  { %2320 = vmatprep.mubr.bf16.mxu1 %v343_v24  ;;  %748 = vmatpush1.bf16.msra.mxu1 %v2422_v20  ;;  %v241_v20 = vmul.f32 %v3018_v10, %v165_v1  ;;  %v3154_v24 = vadd.f32 %v3027_v12, %v239_v15 }
  0x78   :  { %749 = vmatprep.subr.bf16.mxu1 %v2427_v27  ;;  %v169_v27 = vld [vmem:[#allocation2 + $0x170] sm:$0xff] }
  0x79   :  { %v3157_v25 = vadd.f32 %v3027_v12, %v241_v20  ;;  %v245_v36 = vmul.f32 %v3018_v10, %v169_v27 }
  0x7b   :  { %750 = vmatpush1.bf16.msra.mxu1 %v2425_v34  ;;  %v348_v34 = vpack.c.bf16 %v3151_v23, %v3148_v22 }
  0x7c   :  { %751 = vmatprep.subr.bf16.mxu1 %v2430_v39  ;;  %v349_v39 = vpack.c.bf16 %v3157_v25, %v3154_v24 }
  0x7e   :  { %2321 = vmatmul.mubr.bf16.gmra.mxu1 %v344_v40  ;;  %v247_v40 = vmul.f32 %v3018_v10, %v171_v32 }
  0x7f   :  { %2324 = vmatprep.mubr.bf16.mxu1 %v345_v45  ;;  %752 = vmatpush1.bf16.msra.mxu1 %v2428_v50  ;;  %v3171_v45 = vadd.f32 %v3027_v12, %v245_v36 }
  0x80   :  { %753 = vmatprep.subr.bf16.mxu1 %v2433_v51  ;;  %v3174_v46 = vadd.f32 %v3027_v12, %v247_v40  ;;  %v352_v51 = vpack.c.bf16 %v3063_v49, %v3060_v48  ;;  %v354_v12 = vpack.c.bf16 %v3081_v60, %v3078_v59 }
  0x81   :  { %v350_v50 = vpack.c.bf16 %v3171_v45, %v3168_v44 }
  0x82   :  { %v351_v10 = vpack.c.bf16 %v3177_v47, %v3174_v46 }
  0x83   :  { %754 = vmatpush1.bf16.msra.mxu1 %v2431_v62  ;;  %v2437_v62 = vld [vmem:[#allocation8] ss:$8 sps:$4 sm:$0xff]  }
  0x84   :  { %755 = vmatprep.subr.bf16.mxu1 %v2436_v2 }
  0x86   :  { %2325 = vmatmul.mubr.bf16.gmra.mxu1 %v346_v4  ;;  %v3193_v4 = vld [vmem:[%s3836_s4] ss:$0 sm:$0xff] }
  0x87   :  { %2328 = vmatprep.mubr.bf16.mxu1 %v347_v14  ;;  %756 = vmatpush1.bf16.msra.mxu1 %v2434_v21 }
  0x88   :  { %757 = vmatprep.subr.bf16.mxu1 %v2439_v61 }
  0x8b   :  { %758 = vmatpush1.bf16.msra.mxu1 %v2437_v62 }
  0x8e   :  { %2329 = vmatmul.mubr.bf16.gmra.mxu1 %v348_v34 }
  0x8f   :  { %2332 = vmatprep.mubr.bf16.mxu1 %v349_v39 }
  0x96   :  { %2333 = vmatmul.mubr.bf16.gmra.mxu1 %v350_v50 }
  0x97   :  { %2336 = vmatprep.mubr.bf16.mxu1 %v351_v10 }
  0x9e   :  { %2337 = vmatmul.mubr.bf16.gmra.mxu1 %v352_v51 }
  0x9f   :  { %2340 = vmatprep.mubr.bf16.mxu1 %v353_v58 }
  0xa6   :  { %2341 = vmatmul.mubr.bf16.gmra.mxu1 %v354_v12 }
  0xa7   :  { %775 = vmatprep.mubr.bf16.mxu1 %v3846_v63 }
 0x12e   :  { %v2314_v1 = vpop.f32.mrf.mxu1 }
 0x12f   :  { %v469_v35 = vadd.f32 %v2314_v1, %v3193_v4 }
 0x130   :  { %v460_v2 = vpop.f32.mrf.mxu1 }
 0x131   :  { %v461_v13 = vadd.f32 %v3193_v4, %v460_v2  ;;  %v589_v40 = vmax.f32 %v469_v35, 0.0 }
 0x132   :  { %v2315_v6 = vpop.f32.mrf.mxu1 }
 0x133   :  { %v587_v21 = vmax.f32 %v461_v13, 0.0  ;;  %v472_v32 = vadd.f32 %v2315_v6, %v3193_v4 }
 0x134   :  { %v463_v14 = vpop.f32.mrf.mxu1 }
 0x135   :  { %v464_v15 = vadd.f32 %v3193_v4, %v463_v14  ;;  %v590_v36 = vmax.f32 %v472_v32, 0.0 }
 0x136   :  { %v2318_v20 = vpop.f32.mrf.mxu1 }
 0x137   :  { %v588_v26 = vmax.f32 %v464_v15, 0.0  ;;  %v620_v41 = vpack.c.bf16 %v590_v36, %v589_v40  ;;  %v485_v62 = vadd.f32 %v2318_v20, %v3193_v4 }
 0x138   :  { %v476_v27 = vpop.f32.mrf.mxu1 }
 0x139   :  { %v619_v33 = vpack.c.bf16 %v588_v26, %v587_v21  ;;  %v477_v50 = vadd.f32 %v3193_v4, %v476_v27  ;;  %v593_v13 = vmax.f32 %v485_v62, 0.0 }
 0x13a   :  { %v2319_v34 = vpop.f32.mrf.mxu1 }
 0x13b   :  { %776 = vmatmul.mubr.bf16.vlgmr.msra.gmra.mxu1 %v619_v33  ;;  %v591_v58 = vmax.f32 %v477_v50, 0.0  ;;  %v488_v1 = vadd.f32 %v2319_v34, %v3193_v4 }
 0x13c   :  { %785 = vmatprep.mubr.bf16.mxu1 %v3846_v63  ;;  %v479_v39 = vpop.f32.mrf.mxu1 }
 0x13d   :  { %v480_v10 = vadd.f32 %v3193_v4, %v479_v39  ;;  %v594_v14 = vmax.f32 %v488_v1, 0.0 }
 0x13e   :  { %v2322_v51 = vpop.f32.mrf.mxu1 }
 0x13f   :  { %v592_v12 = vmax.f32 %v480_v10, 0.0  ;;  %v622_v21 = vpack.c.bf16 %v594_v14, %v593_v13  ;;  %v501_v35 = vadd.f32 %v2322_v51, %v3193_v4 }
 0x140   :  { %v492_v61 = vpop.f32.mrf.mxu1 }
 0x141   :  { %v621_v2 = vpack.c.bf16 %v592_v12, %v591_v58  ;;  %v493_v26 = vadd.f32 %v3193_v4, %v492_v61 }
 0x142   :  { %v2323_v6 = vpop.f32.mrf.mxu1 }
 0x143   :  { %786 = vmatmul.mubr.bf16.gmra.mxu1 %v620_v41  ;;  %v595_v20 = vmax.f32 %v493_v26, 0.0  ;;  %v504_v36 = vadd.f32 %v2323_v6, %v3193_v4  ;;  %v597_v41 = vmax.f32 %v501_v35, 0.0 }
 0x144   :  { %795 = vmatprep.mubr.bf16.mxu1 %v3846_v63  ;;  %v495_v15 = vpop.f32.mrf.mxu1 }
 0x145   :  { %v496_v27 = vadd.f32 %v3193_v4, %v495_v15  ;;  %v598_v50 = vmax.f32 %v504_v36, 0.0 }
 0x146   :  { %v2326_v32 = vpop.f32.mrf.mxu1 }
 0x147   :  { %v596_v33 = vmax.f32 %v496_v27, 0.0  ;;  %v624_v58 = vpack.c.bf16 %v598_v50, %v597_v41  ;;  %v517_v6 = vadd.f32 %v2326_v32, %v3193_v4 }
 0x148   :  { %v508_v34 = vpop.f32.mrf.mxu1 }
 0x149   :  { %v623_v39 = vpack.c.bf16 %v596_v33, %v595_v20  ;;  %v509_v12 = vadd.f32 %v3193_v4, %v508_v34 }
 0x14a   :  { %v2327_v40 = vpop.f32.mrf.mxu1 }
 0x14b   :  { %796 = vmatmul.mubr.bf16.gmra.mxu1 %v621_v2  ;;  %v599_v51 = vmax.f32 %v509_v12, 0.0  ;;  %v520_v13 = vadd.f32 %v2327_v40, %v3193_v4 }
 0x14c   :  { %805 = vmatprep.mubr.bf16.mxu1 %v3846_v63  ;;  %v511_v10 = vpop.f32.mrf.mxu1 }
 0x14d   :  { %v512_v61 = vadd.f32 %v3193_v4, %v511_v10  ;;  %v602_v26 = vmax.f32 %v520_v13, 0.0 }
 0x14e   :  { %v2330_v62 = vpop.f32.mrf.mxu1 }
 0x14f   :  { %v600_v1 = vmax.f32 %v512_v61, 0.0  ;;  %v533_v40 = vadd.f32 %v2330_v62, %v3193_v4 }
 0x150   :  { %v524_v2 = vpop.f32.mrf.mxu1 }
 0x151   :  { %v625_v14 = vpack.c.bf16 %v600_v1, %v599_v51  ;;  %v525_v33 = vadd.f32 %v3193_v4, %v524_v2 }
 0x152   :  { %v2331_v15 = vpop.f32.mrf.mxu1 }
 0x153   :  { %806 = vmatmul.mubr.bf16.gmra.mxu1 %v622_v21  ;;  %v601_v21 = vmax.f32 %v517_v6, 0.0  ;;  %v603_v32 = vmax.f32 %v525_v33, 0.0  ;;  %v536_v41 = vadd.f32 %v2331_v15, %v3193_v4 }
 0x154   :  { %815 = vmatprep.mubr.bf16.mxu1 %v3846_v63  ;;  %v527_v27 = vpop.f32.mrf.mxu1 }
 0x155   :  { %v626_v20 = vpack.c.bf16 %v602_v26, %v601_v21  ;;  %v528_v34 = vadd.f32 %v3193_v4, %v527_v27  ;;  %v606_v12 = vmax.f32 %v536_v41, 0.0  ;;  %v2441_v41 = vld [vmem:[#allocation10 + $0x30] sm:$0xff]  }
 0x156   :  { %v2334_v35 = vpop.f32.mrf.mxu1 }
 0x157   :  { %v604_v36 = vmax.f32 %v528_v34, 0.0  ;;  %v549_v15 = vadd.f32 %v2334_v35, %v3193_v4  ;;  %v2440_v34 = vld [vmem:[#allocation10 + $0x38] sm:$0xff]  }
 0x158   :  { %2344 = vmatprep.subr.bf16.mxu0 %v2440_v34 }
 0x159   :  { %v627_v50 = vpack.c.bf16 %v604_v36, %v603_v32  ;;  %2345 = vmatpush3.bf16.msra.mxu0 %v2440_v34 }
 0x15a   :  { %2346 = vmatprep.subr.bf16.mxu0 %v2441_v41 }
 0x15b   :  { %816 = vmatmul.mubr.bf16.gmra.mxu1 %v623_v39  ;;  %v540_v39 = vpop.f32.mrf.mxu1 }
 0x15c   :  { %825 = vmatprep.mubr.bf16.mxu1 %v3846_v63  ;;  %v541_v1 = vadd.f32 %v3193_v4, %v540_v39 }
 0x15d   :  { %v2335_v10 = vpop.f32.mrf.mxu1  ;;  %2347 = vmatpush3.bf16.msra.mxu0 %v2441_v41  ;;  %v2447_v41 = vld [vmem:[#allocation10] sm:$0xff]  }
 0x15e   :  { %v607_v62 = vmax.f32 %v541_v1, 0.0  ;;  %v552_v21 = vadd.f32 %v2335_v10, %v3193_v4 }
 0x15f   :  { %v543_v61 = vpop.f32.mrf.mxu1 }
 0x160   :  { %v544_v2 = vadd.f32 %v3193_v4, %v543_v61  ;;  %v610_v33 = vmax.f32 %v552_v21, 0.0 }
 0x161   :  { %v2338_v6 = vpop.f32.mrf.mxu1 }
 0x162   :  { %v608_v13 = vmax.f32 %v544_v2, 0.0  ;;  %v565_v61 = vadd.f32 %v2338_v6, %v3193_v4  ;;  %v2443_v2 = vld [vmem:[#allocation10 + $0x20] sm:$0xff]  }
 0x163   :  { %826 = vmatmul.mubr.bf16.gmra.mxu1 %v624_v58  ;;  %v605_v58 = vmax.f32 %v533_v40, 0.0 }
 0x164   :  { %835 = vmatprep.mubr.bf16.mxu1 %v3846_v63  ;;  %v629_v26 = vpack.c.bf16 %v608_v13, %v607_v62  ;;  %v613_v13 = vmax.f32 %v565_v61, 0.0 }
 0x165   :  { %v628_v51 = vpack.c.bf16 %v606_v12, %v605_v58  ;;  %v2442_v58 = vld [vmem:[#allocation10 + $0x28] sm:$0xff]  }
 0x166   :  { %2348 = vmatprep.subr.bf16.mxu0 %v2442_v58 }
 0x167   :  { %2349 = vmatpush3.bf16.msra.mxu0 %v2442_v58 }
 0x168   :  { %2350 = vmatprep.subr.bf16.mxu0 %v2443_v2 }
 0x16b   :  { %836 = vmatmul.mubr.bf16.gmra.mxu1 %v625_v14  ;;  %v556_v14 = vpop.f32.mrf.mxu1  ;;  %2351 = vmatpush3.bf16.msra.mxu0 %v2443_v2 }
 0x16c   :  { %845 = vmatprep.mubr.bf16.mxu1 %v3846_v63  ;;  %v557_v39 = vadd.f32 %v3193_v4, %v556_v14 }
 0x16d   :  { %v2339_v27 = vpop.f32.mrf.mxu1 }
 0x16f   :  { %v559_v32 = vpop.f32.mrf.mxu1 }
 0x170   :  { %v560_v40 = vadd.f32 %v3193_v4, %v559_v32  ;;  %v2446_v32 = vld [vmem:[#allocation10 + $0x8] sm:$0xff]  }
 0x171   :  { %v2342_v35 = vpop.f32.mrf.mxu1 }
 0x172   :  { %v612_v10 = vmax.f32 %v560_v40, 0.0 }
 0x173   :  { %846 = vmatmul.mubr.bf16.gmra.mxu1 %v626_v20  ;;  %v609_v20 = vmax.f32 %v549_v15, 0.0  ;;  %v572_v12 = vpop.f32.mrf.mxu1  ;;  %v2444_v15 = vld [vmem:[#allocation10 + $0x18] sm:$0xff]  }
 0x174   :  { %855 = vmatprep.mubr.bf16.mxu1 %v3846_v63  ;;  %2352 = vmatprep.subr.bf16.mxu0 %v2444_v15 }
 0x175   :  { %v630_v36 = vpack.c.bf16 %v610_v33, %v609_v20  ;;  %v2343_v62 = vpop.f32.mrf.mxu1  ;;  %2353 = vmatpush3.bf16.msra.mxu0 %v2444_v15  ;;  %v573_v20 = vadd.f32 %v3193_v4, %v572_v12  ;;  %v651_v12 = vld [vmem:[%s3838_s6] sm:$0x3] }
 0x176   :  { %v3246_v61 = vrot.slane %v651_v12, %v3012_v5 }
 0x177   :  { %v575_v21 = vpop.f32.mrf.mxu1  ;;  %v615_v33 = vmax.f32 %v573_v20, 0.0 }
 0x178   :  { %v576_v6 = vadd.f32 %v3193_v4, %v575_v21 }
 0x17a   :  { %v616_v34 = vmax.f32 %v576_v6, 0.0 }
 0x17b   :  { %856 = vmatmul.mubr.bf16.gmra.mxu1 %v627_v50  ;;  %v611_v50 = vmax.f32 %v557_v39, 0.0  ;;  %v584_v39 = vadd.f32 %v2343_v62, %v3193_v4 }
 0x17c   :  { %865 = vmatprep.mubr.bf16.mxu1 %v3846_v63  ;;  %v633_v40 = vpack.c.bf16 %v616_v34, %v615_v33 }
 0x17d   :  { %v631_v1 = vpack.c.bf16 %v612_v10, %v611_v50  ;;  %v618_v10 = vmax.f32 %v584_v39, 0.0 }
 0x183   :  { %866 = vmatmul.mubr.bf16.gmra.mxu1 %v628_v51  ;;  %v568_v51 = vadd.f32 %v2339_v27, %v3193_v4  ;;  %v2445_v27 = vld [vmem:[#allocation10 + $0x10] sm:$0xff]  }
 0x184   :  { %875 = vmatprep.mubr.bf16.mxu1 %v3846_v63  ;;  %2354 = vmatprep.subr.bf16.mxu0 %v2445_v27 }
 0x185   :  { %v614_v14 = vmax.f32 %v568_v51, 0.0  ;;  %2355 = vmatpush3.bf16.msra.mxu0 %v2445_v27 }
 0x186   :  { %2356 = vmatprep.subr.bf16.mxu0 %v2446_v32 }
 0x189   :  { %2357 = vmatpush3.bf16.msra.mxu0 %v2446_v32 }
 0x18a   :  { %2358 = vmatprep.subr.bf16.mxu0 %v2447_v41 }
 0x18b   :  { %876 = vmatmul.mubr.bf16.gmra.mxu1 %v629_v26  ;;  %v632_v26 = vpack.c.bf16 %v614_v14, %v613_v13 }
 0x18c   :  { %885 = vmatprep.mubr.bf16.mxu1 %v3846_v63 }
 0x18d   :  { %2359 = vmatpush3.bf16.msra.mxu0 %v2447_v41 }
 0x193   :  { %886 = vmatmul.mubr.bf16.gmra.mxu1 %v630_v36  ;;  %v581_v36 = vadd.f32 %v2342_v35, %v3193_v4 }
 0x194   :  { %895 = vmatprep.mubr.bf16.mxu1 %v3846_v63 }
 0x195   :  { %v617_v50 = vmax.f32 %v581_v36, 0.0  ;;  %v3262_v36 = vsub.s32 1, %v3009_v3 }
 0x197   :  { %v634_v58 = vpack.c.bf16 %v618_v10, %v617_v50  ;;  %v3266_v41 = vrot.slane %v3014_v9, %v3262_v36 }
 0x19b   :  { %896 = vmatmul.mubr.bf16.gmra.mxu1 %v631_v1 }
 0x19c   :  { %905 = vmatprep.mubr.bf16.mxu1 %v3846_v63 }
 0x1a3   :  { %906 = vmatmul.mubr.bf16.gmra.mxu1 %v632_v26 }
 0x1a4   :  { %915 = vmatprep.mubr.bf16.mxu1 %v3846_v63 }
 0x1ab   :  { %916 = vmatmul.mubr.bf16.gmra.mxu1 %v633_v40 }
 0x1ac   :  { %925 = vmatprep.mubr.bf16.mxu1 %v3846_v63 }
 0x1b3   :  { %926 = vmatmul.mubr.bf16.gmra.mxu1 %v634_v58 }
 0x1fb   :  { %v777_v35 = vpop.f32.mrf.mxu1 }
 0x1fc   :  { %v778_v4 = vadd.f32 %v777_v35, %v3246_v61  ;;  %v124_v35 = vld [vmem:[#allocation2 + $0x8] sm:$0xff] }
 0x1fd   :  { %v779_v51 = vpop.f32.mrf.mxu1  ;;  %v200_v9 = vmul.f32 %v3266_v41, %v124_v35 }
 0x1fe   :  { %2472 = vtanh.f32 %v778_v4 }
 0x1ff   :  { %v781_v1 = vpop.f32.mrf.mxu1 }
 0x200   :  { %v782_v2 = vadd.f32 %v781_v1, %v3246_v61 }
 0x201   :  { %v3250_v62 = vpop.f32.mrf.mxu1 }
 0x202   :  { %2474 = vtanh.f32 %v782_v2  ;;  %v3273_v2 = vrot.slane %v3023_v11, %v3262_v36 }
 0x203   :  { %v787_v13 = vpop.f32.mrf.mxu1 }
 0x204   :  { %v788_v14 = vadd.f32 %v787_v13, %v3246_v61 }
 0x205   :  { %v3253_v15 = vpop.f32.mrf.mxu1 }
 0x206   :  { %2476 = vtanh.f32 %v788_v14 }
 0x207   :  { %v791_v21 = vpop.f32.mrf.mxu1 }
 0x208   :  { %v792_v26 = vadd.f32 %v791_v21, %v3246_v61 }
 0x209   :  { %v3256_v20 = vpop.f32.mrf.mxu1 }
 0x20a   :  { %2478 = vtanh.f32 %v792_v26  ;;  %v126_v26 = vld [vmem:[#allocation2 + $0x18] sm:$0xff] }
 0x20b   :  { %v2473_v6 = vpop.eup %2472  ;;  %v797_v27 = vpop.f32.mrf.mxu1 }
 0x20c   :  { %v968_v33 = vmul.f32 1.442695, %v2473_v6  ;;  %v798_v34 = vadd.f32 %v797_v27, %v3246_v61  ;;  %1096 = vadd.xlane.f32.xlu0 %v2473_v6  ;;  %v3280_v27 = vrot.slane %v651_v12, %v3262_v36 }
 0x20d   :  { %v3259_v32 = vpop.f32.mrf.mxu1 }
 0x20e   :  { %2480 = vpow2.f32 %v968_v33 }
 0x20f   :  { %v2475_v39 = vpop.eup %2474  ;;  %2482 = vtanh.f32 %v798_v34  ;;  %v801_v40 = vpop.f32.mrf.mxu1  ;;  %v128_v34 = vld [vmem:[#allocation2 + $0x28] sm:$0xff] }
 0x210   :  { %v970_v50 = vmul.f32 1.442695, %v2475_v39  ;;  %v802_v10 = vadd.f32 %v801_v40, %v3246_v61  ;;  %1098 = vadd.xlane.f32.xlu0 %v2475_v39  ;;  %v202_v40 = vmul.f32 %v3266_v41, %v126_v26 }
 0x211   :  { %v3269_v58 = vpop.f32.mrf.mxu1 }
 0x212   :  { %2484 = vpow2.f32 %v970_v50  ;;  %v276_v50 = vadd.f32 %v3273_v2, %v200_v9 }
 0x213   :  { %v2477_v4 = vpop.eup %2476  ;;  %2486 = vtanh.f32 %v802_v10  ;;  %v807_v1 = vpop.f32.mrf.mxu1 }
 0x214   :  { %v972_v13 = vmul.f32 1.442695, %v2477_v4  ;;  %v808_v14 = vadd.f32 %v807_v1, %v3246_v61  ;;  %1100 = vadd.xlane.f32.xlu1 %v2477_v4  ;;  %v204_v4 = vmul.f32 %v3266_v41, %v128_v34 }
 0x215   :  { %v3277_v21 = vpop.f32.mrf.mxu1 }
 0x216   :  { %2488 = vpow2.f32 %v972_v13  ;;  %v780_v13 = vadd.f32 %v779_v51, %v3280_v27  ;;  %v784_v51 = vadd.f32 %v3250_v62, %v3280_v27  ;;  %v790_v62 = vadd.f32 %v3253_v15, %v3280_v27 }
 0x217   :  { %v2479_v6 = vpop.eup %2478  ;;  %2490 = vtanh.f32 %v808_v14  ;;  %v811_v33 = vpop.f32.mrf.mxu1  ;;  %v130_v14 = vld [vmem:[#allocation2 + $0x38] sm:$0xff]  ;;  %v794_v15 = vadd.f32 %v3256_v20, %v3280_v27 }
 0x218   :  { %v974_v39 = vmul.f32 1.442695, %v2479_v6  ;;  %v812_v11 = vadd.f32 %v811_v33, %v3246_v61  ;;  %1102 = vadd.xlane.f32.xlu1 %v2479_v6  ;;  %v278_v6 = vadd.f32 %v3273_v2, %v202_v40  ;;  %v206_v34 = vmul.f32 %v3266_v41, %v130_v14 }
 0x219   :  { %v3285_v10 = vpop.f32.mrf.mxu1 }
 0x21a   :  { %2492 = vpow2.f32 %v974_v39 }
 0x21b   :  { %v2481_v35 = vpop.eup %2480  ;;  %2494 = vtanh.f32 %v812_v11  ;;  %v817_v12 = vpop.f32.mrf.mxu1 }
 0x21c   :  { %v2483_v1 = vpop.eup %2482  ;;  %v818_v0 = vadd.f32 %v817_v12, %v3246_v61  ;;  %v1032_v33 = vmul.f32 %v2481_v35, %v276_v50  ;;  %v280_v12 = vadd.f32 %v3273_v2, %v204_v4 }
 0x21d   :  { %v976_v26 = vmul.f32 1.442695, %v2483_v1  ;;  %1104 = vadd.xlane.f32.xlu0 %v2483_v1  ;;  %v3291_v9 = vpop.f32.mrf.mxu1 }
 0x21e   :  { %2496 = vtanh.f32 %v818_v0  ;;  %v1064_v39 = vadd.f32 %v1032_v33, %v780_v13  ;;  %v132_v0 = vld [vmem:[#allocation2 + $0x48] sm:$0xff]  ;;  %v282_v33 = vadd.f32 %v3273_v2, %v206_v34 }
 0x21f   :  { %v2485_v63 = vpop.eup %2484  ;;  %2498 = vpow2.f32 %v976_v26  ;;  %v821_v11 = vpop.f32.mrf.mxu1 }
 0x220   :  { %v2487_v3 = vpop.eup %2486  ;;  %v822_v40 = vadd.f32 %v821_v11, %v3246_v61  ;;  %v1033_v50 = vmul.f32 %v2485_v63, %v278_v6  ;;  %1981 = vst [vmem:[#allocation13] sm:$0xff] %v1064_v39 }
 0x221   :  { %v978_v35 = vmul.f32 1.442695, %v2487_v3  ;;  %1106 = vadd.xlane.f32.xlu1 %v2487_v3  ;;  %v3298_v1 = vpop.f32.mrf.mxu1  ;;  %v208_v3 = vmul.f32 %v3266_v41, %v132_v0 }
 0x222   :  { %2500 = vtanh.f32 %v822_v40  ;;  %v1065_v13 = vadd.f32 %v1033_v50, %v784_v51  ;;  %v134_v50 = vld [vmem:[#allocation2 + $0x58] sm:$0xff] }
 0x223   :  { %v2489_v14 = vpop.eup %2488  ;;  %2502 = vpow2.f32 %v978_v35  ;;  %v827_v26 = vpop.f32.mrf.mxu1  ;;  %v284_v0 = vadd.f32 %v3273_v2, %v208_v3  ;;  %v800_v3 = vadd.f32 %v3259_v32, %v3280_v27  ;;  %v804_v32 = vadd.f32 %v3269_v58, %v3280_v27 }
 0x224   :  { %v2491_v60 = vpop.eup %2490  ;;  %v1034_v4 = vmul.f32 %v2489_v14, %v280_v12  ;;  %v828_v63 = vadd.f32 %v827_v26, %v3246_v61  ;;  %v1160_v6 = vpack.c.bf16 %v1065_v13, %v1064_v39  ;;  %1982 = vst [vmem:[#allocation13 + $0x10] sm:$0xff] %v1065_v13 }
 0x225   :  { %v980_v11 = vmul.f32 1.442695, %v2491_v60  ;;  %1108 = vadd.xlane.f32.xlu0 %v2491_v60  ;;  %v3305_v40 = vpop.f32.mrf.mxu1  ;;  %v210_v60 = vmul.f32 %v3266_v41, %v134_v50 }
 0x226   :  { %v1066_v51 = vadd.f32 %v1034_v4, %v790_v62  ;;  %2504 = vtanh.f32 %v828_v63  ;;  %2360 = vmatprep.mubr.bf16.mxu0 %v1160_v6  ;;  %v136_v62 = vld [vmem:[#allocation2 + $0x68] sm:$0xff] }
 0x227   :  { %v2493_v34 = vpop.eup %2492  ;;  %2506 = vpow2.f32 %v980_v11  ;;  %v831_v35 = vpop.f32.mrf.mxu1 }
 0x228   :  { %v2495_v59 = vpop.eup %2494  ;;  %1983 = vst [vmem:[#allocation13 + $0x20] sm:$0xff] %v1066_v51  ;;  %v1035_v39 = vmul.f32 %v2493_v34, %v282_v33  ;;  %v832_v12 = vadd.f32 %v831_v35, %v3246_v61  ;;  %v212_v34 = vmul.f32 %v3266_v41, %v136_v62  ;;  %v140_v62 = vld [vmem:[#allocation2 + $0x88] sm:$0xff] }
 0x229   :  { %v982_v13 = vmul.f32 1.442695, %v2495_v59  ;;  %1110 = vadd.xlane.f32.xlu1 %v2495_v59  ;;  %v3312_v14 = vpop.f32.mrf.mxu1  ;;  %v286_v59 = vadd.f32 %v3273_v2, %v210_v60 }
 0x22a   :  { %v1067_v26 = vadd.f32 %v1035_v39, %v794_v15  ;;  %2508 = vtanh.f32 %v832_v12  ;;  %v138_v15 = vld [vmem:[#allocation2 + $0x78] sm:$0xff]  ;;  %v288_v60 = vadd.f32 %v3273_v2, %v212_v34 }
 0x22b   :  { %v2497_v4 = vpop.eup %2496  ;;  %2510 = vpow2.f32 %v982_v13  ;;  %v837_v63 = vpop.f32.mrf.mxu1 }
 0x22c   :  { %v2499_v6 = vpop.eup %2498  ;;  %1984 = vst [vmem:[#allocation13 + $0x30] sm:$0xff] %v1067_v26  ;;  %v984_v20 = vmul.f32 1.442695, %v2497_v4  ;;  %v838_v33 = vadd.f32 %v837_v63, %v3246_v61  ;;  %1112 = vadd.xlane.f32.xlu0 %v2497_v4  ;;  %v1161_v11 = vpack.c.bf16 %v1067_v26, %v1066_v51  ;;  %v214_v26 = vmul.f32 %v3266_v41, %v138_v15 }
 0x22d   :  { %v1036_v50 = vmul.f32 %v2499_v6, %v284_v0  ;;  %v3319_v35 = vpop.f32.mrf.mxu1 }
 0x22e   :  { %2512 = vpow2.f32 %v984_v20  ;;  %2361 = vmatmul.mubr.bf16.vlgmr.msra.gmra.mxu0 %v1161_v11  ;;  %v290_v15 = vadd.f32 %v3273_v2, %v214_v26  ;;  %v144_v26 = vld [vmem:[#allocation2 + $0xa8] sm:$0xff] }
 0x22f   :  { %v2501_v39 = vpop.eup %2500  ;;  %v1068_v12 = vadd.f32 %v1036_v50, %v800_v3  ;;  %2514 = vtanh.f32 %v838_v33  ;;  %v841_v13 = vpop.f32.mrf.mxu1  ;;  %v216_v50 = vmul.f32 %v3266_v41, %v140_v62 }
 0x230   :  { %v2503_v63 = vpop.eup %2502  ;;  %v986_v4 = vmul.f32 1.442695, %v2501_v39  ;;  %v842_v51 = vadd.f32 %v841_v13, %v3246_v61  ;;  %1114 = vadd.xlane.f32.xlu1 %v2501_v39  ;;  %v142_v39 = vld [vmem:[#allocation2 + $0x98] sm:$0xff] }
 0x231   :  { %1985 = vst [vmem:[#allocation13 + $0x40] sm:$0xff] %v1068_v12  ;;  %v1037_v0 = vmul.f32 %v2503_v63, %v286_v59  ;;  %v3326_v6 = vpop.f32.mrf.mxu1  ;;  %v810_v59 = vadd.f32 %v3277_v21, %v3280_v27 }
 0x232   :  { %2516 = vpow2.f32 %v986_v4 }
 0x233   :  { %v2505_v20 = vpop.eup %2504  ;;  %v1069_v33 = vadd.f32 %v1037_v0, %v804_v32  ;;  %2518 = vtanh.f32 %v842_v51  ;;  %v847_v11 = vpop.f32.mrf.mxu1  ;;  %v218_v0 = vmul.f32 %v3266_v41, %v142_v39  ;;  %v2450_v39 = vld [vmem:[#allocation11 + $0x74] ss:$8 sps:$4 sm:$0xff]  }
 0x234   :  { %v2507_v3 = vpop.eup %2506  ;;  %v988_v13 = vmul.f32 1.442695, %v2505_v20  ;;  %v848_v58 = vadd.f32 %v847_v11, %v3246_v61  ;;  %1116 = vadd.xlane.f32.xlu0 %v2505_v20  ;;  %v292_v20 = vadd.f32 %v3273_v2, %v216_v50  ;;  %1564 = vmatprep.subr.bf16.mxu0 %v2450_v39 }
 0x235   :  { %1986 = vst [vmem:[#allocation13 + $0x50] sm:$0xff] %v1069_v33  ;;  %v1038_v34 = vmul.f32 %v2507_v3, %v288_v60  ;;  %v3333_v63 = vpop.f32.mrf.mxu1  ;;  %v1162_v4 = vpack.c.bf16 %v1069_v33, %v1068_v12  ;;  %v814_v60 = vadd.f32 %v3285_v10, %v3280_v27  ;;  %v2448_v3 = vld [vmem:[#allocation11 + $0x70] ss:$8 sps:$4 sm:$0xff]   ;;  %v220_v10 = vmul.f32 %v3266_v41, %v144_v26 }
 0x236   :  { %2520 = vpow2.f32 %v988_v13  ;;  %1565 = vmatpush1.bf16.msra.mxu0 %v2448_v3  ;;  %v824_v26 = vadd.f32 %v3298_v1, %v3280_v27 }
 0x237   :  { %v2509_v51 = vpop.eup %2508  ;;  %v1070_v32 = vadd.f32 %v1038_v34, %v810_v59  ;;  %2522 = vtanh.f32 %v848_v58  ;;  %2364 = vmatprep.mubr.bf16.mxu0 %v1162_v4  ;;  %v851_v62 = vpop.f32.mrf.mxu1  ;;  %v294_v59 = vadd.f32 %v3273_v2, %v218_v0  ;;  %v820_v4 = vadd.f32 %v3291_v9, %v3280_v27 }
 0x238   :  { %v2511_v11 = vpop.eup %2510  ;;  %v990_v55 = vmul.f32 1.442695, %v2509_v51  ;;  %v852_v21 = vadd.f32 %v851_v62, %v3246_v61  ;;  %1118 = vadd.xlane.f32.xlu1 %v2509_v51  ;;  %v296_v39 = vadd.f32 %v3273_v2, %v220_v10 }
 0x239   :  { %1987 = vst [vmem:[#allocation13 + $0x60] sm:$0xff] %v1070_v32  ;;  %v1039_v12 = vmul.f32 %v2511_v11, %v290_v15  ;;  %v3340_v33 = vpop.f32.mrf.mxu1  ;;  %v146_v15 = vld [vmem:[#allocation2 + $0xb8] sm:$0xff] }
 0x23a   :  { %2524 = vpow2.f32 %v990_v55 }
 0x23b   :  { %v2513_v13 = vpop.eup %2512  ;;  %v1071_v58 = vadd.f32 %v1039_v12, %v814_v60  ;;  %2526 = vtanh.f32 %v852_v21  ;;  %v857_v50 = vpop.f32.mrf.mxu1  ;;  %v222_v12 = vmul.f32 %v3266_v41, %v146_v15 }
 0x23c   :  { %v2515_v34 = vpop.eup %2514  ;;  %v1040_v51 = vmul.f32 %v2513_v13, %v292_v20  ;;  %v858_v62 = vadd.f32 %v857_v50, %v3246_v61 }
 0x23d   :  { %1988 = vst [vmem:[#allocation13 + $0x70] sm:$0xff] %v1071_v58  ;;  %v992_v55 = vmul.f32 1.442695, %v2515_v34  ;;  %1120 = vadd.xlane.f32.xlu0 %v2515_v34  ;;  %v3347_v11 = vpop.f32.mrf.mxu1  ;;  %v1163_v0 = vpack.c.bf16 %v1071_v58, %v1070_v32  ;;  %v2451_v58 = vld [vmem:[#allocation11 + $0x60] ss:$8 sps:$4 sm:$0xff]  }
 0x23e   :  { %v1072_v21 = vadd.f32 %v1040_v51, %v820_v4  ;;  %2528 = vtanh.f32 %v858_v62  ;;  %v2453_v34 = vld [vmem:[#allocation11 + $0x64] ss:$8 sps:$4 sm:$0xff]   ;;  %v298_v62 = vadd.f32 %v3273_v2, %v222_v12 }
 0x23f   :  { %v2517_v60 = vpop.eup %2516  ;;  %2530 = vpow2.f32 %v992_v55  ;;  %2365 = vmatmul.mubr.bf16.gmra.mxu0 %v1163_v0  ;;  %v861_v9 = vpop.f32.mrf.mxu1  ;;  %v148_v51 = vld [vmem:[#allocation2 + $0xc8] sm:$0xff]  ;;  %1566 = vmatprep.subr.bf16.mxu0 %v2453_v34 }
 0x240   :  { %v2519_v20 = vpop.eup %2518  ;;  %1989 = vst [vmem:[#allocation13 + $0x80] sm:$0xff] %v1072_v21  ;;  %v1041_v3 = vmul.f32 %v2517_v60, %v294_v59  ;;  %v862_v13 = vadd.f32 %v861_v9, %v3246_v61  ;;  %v830_v59 = vadd.f32 %v3305_v40, %v3280_v27  ;;  %1567 = vmatpush1.bf16.msra.mxu0 %v2451_v58 }
 0x241   :  { %v994_v50 = vmul.f32 1.442695, %v2519_v20  ;;  %1122 = vadd.xlane.f32.xlu1 %v2519_v20  ;;  %v3354_v32 = vpop.f32.mrf.mxu1  ;;  %v224_v9 = vmul.f32 %v3266_v41, %v148_v51  ;;  %v834_v40 = vadd.f32 %v3312_v14, %v3280_v27 }
 0x242   :  { %v1073_v4 = vadd.f32 %v1041_v3, %v824_v26  ;;  %2532 = vtanh.f32 %v862_v13  ;;  %v150_v3 = vld [vmem:[#allocation2 + $0xd8] sm:$0xff] }
 0x243   :  { %v2521_v15 = vpop.eup %2520  ;;  %2534 = vpow2.f32 %v994_v50  ;;  %v867_v55 = vpop.f32.mrf.mxu1  ;;  %v300_v58 = vadd.f32 %v3273_v2, %v224_v9 }
 0x244   :  { %v2523_v1 = vpop.eup %2522  ;;  %1990 = vst [vmem:[#allocation13 + $0x90] sm:$0xff] %v1073_v4  ;;  %v1042_v10 = vmul.f32 %v2521_v15, %v296_v39  ;;  %v868_v0 = vadd.f32 %v867_v55, %v3246_v61  ;;  %v1164_v60 = vpack.c.bf16 %v1073_v4, %v1072_v21  ;;  %v226_v4 = vmul.f32 %v3266_v41, %v150_v3 }
 0x245   :  { %v996_v20 = vmul.f32 1.442695, %v2523_v1  ;;  %1124 = vadd.xlane.f32.xlu0 %v2523_v1  ;;  %v3361_v26 = vpop.f32.mrf.mxu1  ;;  %v152_v1 = vld [vmem:[#allocation2 + $0xe8] sm:$0xff]  ;;  %v840_v3 = vadd.f32 %v3319_v35, %v3280_v27  ;;  %v844_v35 = vadd.f32 %v3326_v6, %v3280_v27 }
 0x246   :  { %v1074_v12 = vadd.f32 %v1042_v10, %v830_v59  ;;  %2536 = vtanh.f32 %v868_v0  ;;  %2368 = vmatprep.mubr.bf16.mxu0 %v1164_v60  ;;  %v2454_v59 = vld [vmem:[#allocation11 + $0x50] ss:$8 sps:$4 sm:$0xff]   ;;  %v2456_v10 = vld [vmem:[#allocation11 + $0x54] ss:$8 sps:$4 sm:$0xff]  }
 0x247   :  { %v2525_v13 = vpop.eup %2524  ;;  %2538 = vpow2.f32 %v996_v20  ;;  %v871_v50 = vpop.f32.mrf.mxu1  ;;  %1568 = vmatprep.subr.bf16.mxu0 %v2456_v10 }
 0x248   :  { %v2527_v34 = vpop.eup %2526  ;;  %1991 = vst [vmem:[#allocation13 + $0xa0] sm:$0xff] %v1074_v12  ;;  %v1043_v21 = vmul.f32 %v2525_v13, %v298_v62  ;;  %v872_v39 = vadd.f32 %v871_v50, %v3246_v61  ;;  %v302_v50 = vadd.f32 %v3273_v2, %v226_v4  ;;  %1569 = vmatpush1.bf16.msra.mxu0 %v2454_v59  ;;  %v156_v59 = vld [vmem:[#allocation2 + $0x108] sm:$0xff] }
 0x249   :  { %v998_v51 = vmul.f32 1.442695, %v2527_v34  ;;  %1126 = vadd.xlane.f32.xlu1 %v2527_v34  ;;  %v3368_v15 = vpop.f32.mrf.mxu1  ;;  %v228_v34 = vmul.f32 %v3266_v41, %v152_v1 }
 0x24a   :  { %v1075_v55 = vadd.f32 %v1043_v21, %v834_v40  ;;  %2540 = vtanh.f32 %v872_v39  ;;  %v154_v21 = vld [vmem:[#allocation2 + $0xf8] sm:$0xff] }
 0x24b   :  { %v2529_v0 = vpop.eup %2528  ;;  %2542 = vpow2.f32 %v998_v51  ;;  %v877_v60 = vpop.f32.mrf.mxu1  ;;  %v304_v4 = vadd.f32 %v3273_v2, %v228_v34  ;;  %v230_v1 = vmul.f32 %v3266_v41, %v154_v21  ;;  %v850_v34 = vadd.f32 %v3333_v63, %v3280_v27 }
 0x24c   :  { %v2531_v14 = vpop.eup %2530  ;;  %1992 = vst [vmem:[#allocation13 + $0xb0] sm:$0xff] %v1075_v55  ;;  %v1000_v62 = vmul.f32 1.442695, %v2529_v0  ;;  %v878_v20 = vadd.f32 %v877_v60, %v3246_v61  ;;  %1128 = vadd.xlane.f32.xlu0 %v2529_v0  ;;  %v1165_v9 = vpack.c.bf16 %v1075_v55, %v1074_v12 }
 0x24d   :  { %v1044_v13 = vmul.f32 %v2531_v14, %v300_v58  ;;  %v3375_v40 = vpop.f32.mrf.mxu1  ;;  %v2457_v14 = vld [vmem:[#allocation11 + $0x40] ss:$8 sps:$4 sm:$0xff]  }
 0x24e   :  { %2544 = vpow2.f32 %v1000_v62  ;;  %2369 = vmatmul.mubr.bf16.gmra.mxu0 %v1165_v9  ;;  %v2459_v62 = vld [vmem:[#allocation11 + $0x44] ss:$8 sps:$4 sm:$0xff]  }
 0x24f   :  { %v2533_v39 = vpop.eup %2532  ;;  %v1076_v51 = vadd.f32 %v1044_v13, %v840_v3  ;;  %2546 = vtanh.f32 %v878_v20  ;;  %v881_v0 = vpop.f32.mrf.mxu1  ;;  %1570 = vmatprep.subr.bf16.mxu0 %v2459_v62 }
 0x250   :  { %v2535_v12 = vpop.eup %2534  ;;  %v1002_v55 = vmul.f32 1.442695, %v2533_v39  ;;  %v882_v10 = vadd.f32 %v881_v0, %v3246_v61  ;;  %1130 = vadd.xlane.f32.xlu1 %v2533_v39  ;;  %v232_v39 = vmul.f32 %v3266_v41, %v156_v59  ;;  %v158_v0 = vld [vmem:[#allocation2 + $0x118] sm:$0xff]  ;;  %1571 = vmatpush1.bf16.msra.mxu0 %v2457_v14 }
 0x251   :  { %1993 = vst [vmem:[#allocation13 + $0xc0] sm:$0xff] %v1076_v51  ;;  %v1045_v58 = vmul.f32 %v2535_v12, %v302_v50  ;;  %v3382_v60 = vpop.f32.mrf.mxu1  ;;  %v306_v12 = vadd.f32 %v3273_v2, %v230_v1  ;;  %v234_v59 = vmul.f32 %v3266_v41, %v158_v0  ;;  %v160_v1 = vld [vmem:[#allocation2 + $0x128] sm:$0xff] }
 0x252   :  { %2548 = vpow2.f32 %v1002_v55 }
 0x253   :  { %v2537_v20 = vpop.eup %2536  ;;  %v1077_v9 = vadd.f32 %v1045_v58, %v844_v35  ;;  %2550 = vtanh.f32 %v882_v10  ;;  %v887_v3 = vpop.f32.mrf.mxu1 }
 0x254   :  { %v2539_v13 = vpop.eup %2538  ;;  %v1004_v6 = vmul.f32 1.442695, %v2537_v20  ;;  %v888_v50 = vadd.f32 %v887_v3, %v3246_v61  ;;  %1132 = vadd.xlane.f32.xlu0 %v2537_v20  ;;  %v308_v3 = vadd.f32 %v3273_v2, %v232_v39 }
 0x255   :  { %1994 = vst [vmem:[#allocation13 + $0xd0] sm:$0xff] %v1077_v9  ;;  %v1046_v21 = vmul.f32 %v2539_v13, %v304_v4  ;;  %v3389_v55 = vpop.f32.mrf.mxu1  ;;  %v1166_v10 = vpack.c.bf16 %v1077_v9, %v1076_v51  ;;  %v854_v51 = vadd.f32 %v3340_v33, %v3280_v27  ;;  %v2460_v9 = vld [vmem:[#allocation11 + $0x30] ss:$8 sps:$4 sm:$0xff]   ;;  %v2462_v13 = vld [vmem:[#allocation11 + $0x34] ss:$8 sps:$4 sm:$0xff]   ;;  %v236_v33 = vmul.f32 %v3266_v41, %v160_v1 }
 0x256   :  { %2552 = vpow2.f32 %v1004_v6  ;;  %1572 = vmatprep.subr.bf16.mxu0 %v2462_v13 }
 0x257   :  { %v2541_v35 = vpop.eup %2540  ;;  %v1078_v58 = vadd.f32 %v1046_v21, %v850_v34  ;;  %2554 = vtanh.f32 %v888_v50  ;;  %2372 = vmatprep.mubr.bf16.mxu0 %v1166_v10  ;;  %v891_v20 = vpop.f32.mrf.mxu1  ;;  %v310_v50 = vadd.f32 %v3273_v2, %v234_v59  ;;  %v860_v21 = vadd.f32 %v3347_v11, %v3280_v27  ;;  %1573 = vmatpush1.bf16.msra.mxu0 %v2460_v9 }
 0x258   :  { %v2543_v62 = vpop.eup %2542  ;;  %v1006_v54 = vmul.f32 1.442695, %v2541_v35  ;;  %v892_v63 = vadd.f32 %v891_v20, %v3246_v61  ;;  %1134 = vadd.xlane.f32.xlu1 %v2541_v35  ;;  %v312_v9 = vadd.f32 %v3273_v2, %v236_v33 }
 0x259   :  { %1995 = vst [vmem:[#allocation13 + $0xe0] sm:$0xff] %v1078_v58  ;;  %v1047_v4 = vmul.f32 %v2543_v62, %v306_v12  ;;  %v3396_v14 = vpop.f32.mrf.mxu1  ;;  %v162_v12 = vld [vmem:[#allocation2 + $0x138] sm:$0xff] }
 0x25a   :  { %2556 = vpow2.f32 %v1006_v54 }
 0x25b   :  { %v2545_v0 = vpop.eup %2544  ;;  %v1079_v6 = vadd.f32 %v1047_v4, %v854_v51  ;;  %2558 = vtanh.f32 %v892_v63  ;;  %v897_v39 = vpop.f32.mrf.mxu1  ;;  %v238_v51 = vmul.f32 %v3266_v41, %v162_v12  ;;  %v864_v4 = vadd.f32 %v3354_v32, %v3280_v27 }
 0x25c   :  { %v2547_v34 = vpop.eup %2546  ;;  %v1048_v10 = vmul.f32 %v2545_v0, %v308_v3  ;;  %v898_v35 = vadd.f32 %v897_v39, %v3246_v61  ;;  %v2465_v39 = vld [vmem:[#allocation11 + $0x24] ss:$8 sps:$4 sm:$0xff]  }
 0x25d   :  { %1996 = vst [vmem:[#allocation13 + $0xf0] sm:$0xff] %v1079_v6  ;;  %v1008_v54 = vmul.f32 1.442695, %v2547_v34  ;;  %1136 = vadd.xlane.f32.xlu0 %v2547_v34  ;;  %v3403_v20 = vpop.f32.mrf.mxu1  ;;  %v1167_v59 = vpack.c.bf16 %v1079_v6, %v1078_v58  ;;  %v2463_v6 = vld [vmem:[#allocation11 + $0x20] ss:$8 sps:$4 sm:$0xff]   ;;  %v314_v12 = vadd.f32 %v3273_v2, %v238_v51  ;;  %1574 = vmatprep.subr.bf16.mxu0 %v2465_v39 }
 0x25e   :  { %v1080_v62 = vadd.f32 %v1048_v10, %v860_v21  ;;  %2560 = vtanh.f32 %v898_v35  ;;  %v164_v21 = vld [vmem:[#allocation2 + $0x148] sm:$0xff]  ;;  %1575 = vmatpush1.bf16.msra.mxu0 %v2463_v6 }
 0x25f   :  { %v2549_v63 = vpop.eup %2548  ;;  %2562 = vpow2.f32 %v1008_v54  ;;  %2373 = vmatmul.mubr.bf16.gmra.mxu0 %v1167_v59  ;;  %v901_v11 = vpop.f32.mrf.mxu1 }
 0x260   :  { %v2551_v3 = vpop.eup %2550  ;;  %1997 = vst [vmem:[#allocation13 + $0x100] sm:$0xff] %v1080_v62  ;;  %v1049_v1 = vmul.f32 %v2549_v63, %v310_v50  ;;  %v902_v13 = vadd.f32 %v901_v11, %v3246_v61  ;;  %v870_v50 = vadd.f32 %v3361_v26, %v3280_v27  ;;  %v240_v63 = vmul.f32 %v3266_v41, %v164_v21 }
 0x261   :  { %v1010_v0 = vmul.f32 1.442695, %v2551_v3  ;;  %1138 = vadd.xlane.f32.xlu1 %v2551_v3  ;;  %v3410_v58 = vpop.f32.mrf.mxu1  ;;  %v874_v26 = vadd.f32 %v3368_v15, %v3280_v27 }
 0x262   :  { %v1081_v34 = vadd.f32 %v1049_v1, %v864_v4  ;;  %2564 = vtanh.f32 %v902_v13  ;;  %v166_v4 = vld [vmem:[#allocation2 + $0x158] sm:$0xff]  ;;  %v316_v6 = vadd.f32 %v3273_v2, %v240_v63 }
 0x263   :  { %v2553_v10 = vpop.eup %2552  ;;  %2566 = vpow2.f32 %v1010_v0  ;;  %v907_v35 = vpop.f32.mrf.mxu1  ;;  %v242_v39 = vmul.f32 %v3266_v41, %v166_v4 }
 0x264   :  { %v2555_v32 = vpop.eup %2554  ;;  %1998 = vst [vmem:[#allocation13 + $0x110] sm:$0xff] %v1081_v34  ;;  %v1050_v33 = vmul.f32 %v2553_v10, %v312_v9  ;;  %v908_v54 = vadd.f32 %v907_v35, %v3246_v61  ;;  %v1168_v59 = vpack.c.bf16 %v1081_v34, %v1080_v62  ;;  %v168_v35 = vld [vmem:[#allocation2 + $0x168] sm:$0xff] }
 0x265   :  { %v1012_v11 = vmul.f32 1.442695, %v2555_v32  ;;  %1140 = vadd.xlane.f32.xlu0 %v2555_v32  ;;  %v3417_v3 = vpop.f32.mrf.mxu1  ;;  %v2466_v32 = vld [vmem:[#allocation11 + $0x10] ss:$8 sps:$4 sm:$0xff]  }
 0x266   :  { %v1082_v51 = vadd.f32 %v1050_v33, %v870_v50  ;;  %2568 = vtanh.f32 %v908_v54  ;;  %2376 = vmatprep.mubr.bf16.mxu0 %v1168_v59  ;;  %v2468_v50 = vld [vmem:[#allocation11 + $0x14] ss:$8 sps:$4 sm:$0xff]  }
 0x267   :  { %v2557_v1 = vpop.eup %2556  ;;  %2570 = vpow2.f32 %v1012_v11  ;;  %v911_v13 = vpop.f32.mrf.mxu1  ;;  %1576 = vmatprep.subr.bf16.mxu0 %v2468_v50  ;;  %v880_v11 = vadd.f32 %v3375_v40, %v3280_v27  ;;  %v884_v40 = vadd.f32 %v3382_v60, %v3280_v27  ;;  %v890_v60 = vadd.f32 %v3389_v55, %v3280_v27 }
 0x268   :  { %v2559_v0 = vpop.eup %2558  ;;  %1999 = vst [vmem:[#allocation13 + $0x120] sm:$0xff] %v1082_v51  ;;  %v1051_v62 = vmul.f32 %v2557_v1, %v314_v12  ;;  %v912_v9 = vadd.f32 %v911_v13, %v3246_v61  ;;  %v318_v1 = vadd.f32 %v3273_v2, %v242_v39  ;;  %v244_v13 = vmul.f32 %v3266_v41, %v168_v35 }
 0x269   :  { %v1014_v34 = vmul.f32 1.442695, %v2559_v0  ;;  %1142 = vadd.xlane.f32.xlu1 %v2559_v0  ;;  %v3424_v21 = vpop.f32.mrf.mxu1  ;;  %1577 = vmatpush1.bf16.msra.mxu0 %v2466_v32  ;;  %v172_v32 = vld [vmem:[#allocation2 + $0x188] sm:$0xff] }
 0x26a   :  { %v1083_v10 = vadd.f32 %v1051_v62, %v874_v26  ;;  %2572 = vtanh.f32 %v912_v9  ;;  %v170_v26 = vld [vmem:[#allocation2 + $0x178] sm:$0xff]  ;;  %v320_v39 = vadd.f32 %v3273_v2, %v244_v13 }
 0x26b   :  { %v2561_v33 = vpop.eup %2560  ;;  %2574 = vpow2.f32 %v1014_v34  ;;  %v917_v54 = vpop.f32.mrf.mxu1  ;;  %v246_v35 = vmul.f32 %v3266_v41, %v170_v26  ;;  %v174_v26 = vld [vmem:[#allocation2 + $0x198] sm:$0xff] }
 0x26c   :  { %v2563_v15 = vpop.eup %2562  ;;  %2000 = vst [vmem:[#allocation13 + $0x130] sm:$0xff] %v1083_v10  ;;  %v1016_v12 = vmul.f32 1.442695, %v2561_v33  ;;  %v918_v59 = vadd.f32 %v917_v54, %v3246_v61  ;;  %1144 = vadd.xlane.f32.xlu0 %v2561_v33  ;;  %v1169_v63 = vpack.c.bf16 %v1083_v10, %v1082_v51  ;;  %v250_v55 = vmul.f32 %v3266_v41, %v174_v26  ;;  %v178_v26 = vld [vmem:[#allocation2 + $0x1b8] sm:$0xff] }
 0x26d   :  { %v1052_v4 = vmul.f32 %v2563_v15, %v316_v6  ;;  %v3431_v0 = vpop.f32.mrf.mxu1  ;;  %v322_v13 = vadd.f32 %v3273_v2, %v246_v35 }
 0x26e   :  { %2576 = vpow2.f32 %v1016_v12  ;;  %2377 = vmatmul.mubr.bf16.gmra.mxu0 %v1169_v63  ;;  %v248_v63 = vmul.f32 %v3266_v41, %v172_v32 }
 0x26f   :  { %v2565_v62 = vpop.eup %2564  ;;  %v1084_v9 = vadd.f32 %v1052_v4, %v880_v11  ;;  %2578 = vtanh.f32 %v918_v59  ;;  %v921_v34 = vpop.f32.mrf.mxu1 }
 0x270   :  { %v2567_v51 = vpop.eup %2566  ;;  %v1018_v10 = vmul.f32 1.442695, %v2565_v62  ;;  %v922_v50 = vadd.f32 %v921_v34, %v3246_v61  ;;  %1146 = vadd.xlane.f32.xlu1 %v2565_v62 }
 0x271   :  { %2001 = vst [vmem:[#allocation13 + $0x140] sm:$0xff] %v1084_v9  ;;  %v1053_v6 = vmul.f32 %v2567_v51, %v318_v1  ;;  %v3438_v33 = vpop.f32.mrf.mxu1  ;;  %v2471_v51 = vld [vmem:[#allocation11 + $0x4] ss:$8 sps:$4 sm:$0xff]  }
 0x272   :  { %2580 = vpow2.f32 %v1018_v10  ;;  %1578 = vmatprep.subr.bf16.mxu0 %v2471_v51 }
 0x273   :  { %v2569_v54 = vpop.eup %2568  ;;  %v1085_v15 = vadd.f32 %v1053_v6, %v884_v40  ;;  %2582 = vtanh.f32 %v922_v50  ;;  %v927_v12 = vpop.f32.mrf.mxu1  ;;  %v2469_v6 = vld [vmem:[#allocation11] ss:$8 sps:$4 sm:$0xff]  }
 0x274   :  { %v2571_v59 = vpop.eup %2570  ;;  %v1020_v11 = vmul.f32 1.442695, %v2569_v54  ;;  %v928_v4 = vadd.f32 %v927_v12, %v3246_v61  ;;  %1148 = vadd.xlane.f32.xlu0 %v2569_v54  ;;  %v324_v54 = vadd.f32 %v3273_v2, %v248_v63  ;;  %v176_v12 = vld [vmem:[#allocation2 + $0x1a8] sm:$0xff]  ;;  %1579 = vmatpush1.bf16.msra.mxu0 %v2469_v6  ;;  %v900_v63 = vadd.f32 %v3403_v20, %v3280_v27 }
 0x275   :  { %2002 = vst [vmem:[#allocation13 + $0x150] sm:$0xff] %v1085_v15  ;;  %v1054_v1 = vmul.f32 %v2571_v59, %v320_v39  ;;  %v3445_v62 = vpop.f32.mrf.mxu1  ;;  %v1170_v34 = vpack.c.bf16 %v1085_v15, %v1084_v9  ;;  %v894_v9 = vadd.f32 %v3396_v14, %v3280_v27 }
 0x276   :  { %2584 = vpow2.f32 %v1020_v11 }
 0x277   :  { %v2573_v10 = vpop.eup %2572  ;;  %v1086_v50 = vadd.f32 %v1054_v1, %v890_v60  ;;  %2586 = vtanh.f32 %v928_v4  ;;  %2380 = vmatprep.mubr.bf16.mxu0 %v1170_v34  ;;  %v931_v40 = vpop.f32.mrf.mxu1  ;;  %v252_v1 = vmul.f32 %v3266_v41, %v176_v12 }
 0x278   :  { %v2575_v32 = vpop.eup %2574  ;;  %v1022_v39 = vmul.f32 1.442695, %v2573_v10  ;;  %v932_v35 = vadd.f32 %v931_v40, %v3246_v61  ;;  %1150 = vadd.xlane.f32.xlu1 %v2573_v10  ;;  %v326_v61 = vadd.f32 %v3273_v2, %v250_v55  ;;  %v904_v40 = vadd.f32 %v3410_v58, %v3280_v27 }
 0x279   :  { %2003 = vst [vmem:[#allocation13 + $0x160] sm:$0xff] %v1086_v50  ;;  %v1055_v15 = vmul.f32 %v2575_v32, %v322_v13  ;;  %v328_v6 = vadd.f32 %v3273_v2, %v252_v1  ;;  %v254_v32 = vmul.f32 %v3266_v41, %v178_v26  ;;  %v914_v1 = vadd.f32 %v3424_v21, %v3280_v27 }
 0x27a   :  { %2588 = vpow2.f32 %v1022_v39  ;;  %v180_v39 = vld [vmem:[#allocation2 + $0x1c8] sm:$0xff] }
 0x27b   :  { %v2577_v59 = vpop.eup %2576  ;;  %v1087_v11 = vadd.f32 %v1055_v15, %v894_v9  ;;  %2590 = vtanh.f32 %v932_v35  ;;  %v910_v9 = vadd.f32 %v3417_v3, %v3280_v27  ;;  %v330_v12 = vadd.f32 %v3273_v2, %v254_v32 }
 0x27c   :  { %v2579_v4 = vpop.eup %2578  ;;  %v1056_v60 = vmul.f32 %v2577_v59, %v324_v54  ;;  %v256_v59 = vmul.f32 %v3266_v41, %v180_v39 }
 0x27d   :  { %2004 = vst [vmem:[#allocation13 + $0x170] sm:$0xff] %v1087_v11  ;;  %v1024_v34 = vmul.f32 1.442695, %v2579_v4  ;;  %1152 = vadd.xlane.f32.xlu0 %v2579_v4  ;;  %v1171_v14 = vpack.c.bf16 %v1087_v11, %v1086_v50 }
 0x27e   :  { %v1088_v13 = vadd.f32 %v1056_v60, %v900_v63  ;;  %v182_v63 = vld [vmem:[#allocation2 + $0x1d8] sm:$0xff]  ;;  %v332_v3 = vadd.f32 %v3273_v2, %v256_v59 }
 0x27f   :  { %v2581_v51 = vpop.eup %2580  ;;  %2592 = vpow2.f32 %v1024_v34  ;;  %2381 = vmatmul.mubr.bf16.gmra.mxu0 %v1171_v14  ;;  %v258_v34 = vmul.f32 %v3266_v41, %v182_v63  ;;  %v933_v63 = vpop.f32.mrf.mxu1 }
 0x280   :  { %v2583_v10 = vpop.eup %2582  ;;  %2005 = vst [vmem:[#allocation13 + $0x180] sm:$0xff] %v1088_v13  ;;  %v1057_v20 = vmul.f32 %v2581_v51, %v326_v61  ;;  %v184_v51 = vld [vmem:[#allocation2 + $0x1e8] sm:$0xff] }
 0x281   :  { %v1026_v54 = vmul.f32 1.442695, %v2583_v10  ;;  %1154 = vadd.xlane.f32.xlu1 %v2583_v10  ;;  %v334_v32 = vadd.f32 %v3273_v2, %v258_v34  ;;  %v260_v21 = vmul.f32 %v3266_v41, %v184_v51 }
 0x282   :  { %v1089_v55 = vadd.f32 %v1057_v20, %v904_v40  ;;  %v920_v20 = vadd.f32 %v3431_v0, %v3280_v27 }
 0x283   :  { %v2585_v35 = vpop.eup %2584  ;;  %2594 = vpow2.f32 %v1026_v54  ;;  %v186_v54 = vld [vmem:[#allocation2 + $0x1f8] sm:$0xff] }
 0x284   :  { %v2587_v50 = vpop.eup %2586  ;;  %2006 = vst [vmem:[#allocation13 + $0x190] sm:$0xff] %v1089_v55  ;;  %v1058_v15 = vmul.f32 %v2585_v35, %v328_v6  ;;  %v1172_v58 = vpack.c.bf16 %v1089_v55, %v1088_v13  ;;  %v924_v35 = vadd.f32 %v3438_v33, %v3280_v27  ;;  %v934_v33 = vadd.f32 %v933_v63, %v3280_v27 }
 0x285   :  { %v1028_v11 = vmul.f32 1.442695, %v2587_v50  ;;  %1156 = vadd.xlane.f32.xlu0 %v2587_v50 }
 0x286   :  { %v1090_v4 = vadd.f32 %v1058_v15, %v910_v9  ;;  %2384 = vmatprep.mubr.bf16.mxu0 %v1172_v58  ;;  %v336_v9 = vadd.f32 %v3273_v2, %v260_v21  ;;  %v262_v15 = vmul.f32 %v3266_v41, %v186_v54  ;;  %v930_v58 = vadd.f32 %v3445_v62, %v3280_v27 }
 0x287   :  { %v2589_v60 = vpop.eup %2588  ;;  %2596 = vpow2.f32 %v1028_v11 }
 0x288   :  { %v2591_v61 = vpop.eup %2590  ;;  %2007 = vst [vmem:[#allocation13 + $0x1a0] sm:$0xff] %v1090_v4  ;;  %v1059_v26 = vmul.f32 %v2589_v60, %v330_v12  ;;  %v338_v11 = vadd.f32 %v3273_v2, %v262_v15  ;;  %v3484_v2 = vld [vmem:[%s3840_s8] ss:$0 sm:$0xff] }
 0x289   :  { %v1030_v14 = vmul.f32 1.442695, %v2591_v61  ;;  %1158 = vadd.xlane.f32.xlu1 %v2591_v61 }
 0x28a   :  { %v1091_v13 = vadd.f32 %v1059_v26, %v914_v1 }
 0x28b   :  { %2598 = vpow2.f32 %v1030_v14 }
 0x28c   :  { %v2593_v10 = vpop.eup %2592  ;;  %2008 = vst [vmem:[#allocation13 + $0x1b0] sm:$0xff] %v1091_v13  ;;  %v1173_v40 = vpack.c.bf16 %v1091_v13, %v1090_v4 }
 0x28d   :  { %v1060_v6 = vmul.f32 %v2593_v10, %v332_v3  ;;  %v3858_v3 = vmov 0  }
 0x28e   :  { %2385 = vmatmul.mubr.bf16.gmra.mxu0 %v1173_v40 }
 0x28f   :  { %v1092_v55 = vadd.f32 %v1060_v6, %v920_v20 }
 0x290   :  { %v2595_v39 = vpop.eup %2594 }
 0x291   :  { %2009 = vst [vmem:[#allocation13 + $0x1c0] sm:$0xff] %v1092_v55  ;;  %v1061_v50 = vmul.f32 %v2595_v39, %v334_v32 }
 0x293   :  { %v1093_v12 = vadd.f32 %v1061_v50, %v924_v35 }
 0x294   :  { %v2597_v0 = vpop.eup %2596 }
 0x295   :  { %2010 = vst [vmem:[#allocation13 + $0x1d0] sm:$0xff] %v1093_v12  ;;  %v1062_v59 = vmul.f32 %v2597_v0, %v336_v9  ;;  %v1174_v4 = vpack.c.bf16 %v1093_v12, %v1092_v55 }
 0x297   :  { %v1094_v60 = vadd.f32 %v1062_v59, %v930_v58  ;;  %2388 = vmatprep.mubr.bf16.mxu0 %v1174_v4 }
 0x298   :  { %v2599_v61 = vpop.eup %2598 }
 0x299   :  { %2011 = vst [vmem:[#allocation13 + $0x1e0] sm:$0xff] %v1094_v60  ;;  %v1063_v1 = vmul.f32 %v2599_v61, %v338_v11 }
 0x29b   :  { %v1095_v26 = vadd.f32 %v1063_v1, %v934_v33 }
 0x29d   :  { %2012 = vst [vmem:[#allocation13 + $0x1f0] sm:$0xff] %v1095_v26  ;;  %v1175_v41 = vpack.c.bf16 %v1095_v26, %v1094_v60 }
 0x29f   :  { %2389 = vmatmul.mubr.bf16.gmra.mxu0 %v1175_v41 }
 0x2a0   :  { %1596 = vmatprep.mubr.bf16.mxu0 %v3858_v3 }
 0x2ee   :  { %v2362_v34 = vpop.f32.mrf.mxu0 }
 0x2ef   :  { %v1290_v32 = vadd.f32 %v2362_v34, %v3484_v2 }
 0x2f0   :  { %v1281_v62 = vpop.f32.mrf.mxu0 }
 0x2f1   :  { %v1282_v13 = vadd.f32 %v3484_v2, %v1281_v62  ;;  %v1410_v54 = vmax.f32 %v1290_v32, 0.0 }
 0x2f2   :  { %v2363_v14 = vpop.f32.mrf.mxu0 }
 0x2f3   :  { %v1408_v10 = vmax.f32 %v1282_v13, 0.0  ;;  %v1293_v20 = vadd.f32 %v2363_v14, %v3484_v2 }
 0x2f4   :  { %v1284_v51 = vpop.f32.mrf.mxu0 }
 0x2f5   :  { %v1285_v27 = vadd.f32 %v3484_v2, %v1284_v51  ;;  %v1411_v21 = vmax.f32 %v1293_v20, 0.0 }
 0x2f7   :  { %v1409_v40 = vmax.f32 %v1285_v27, 0.0  ;;  %v1441_v39 = vpack.c.bf16 %v1411_v21, %v1410_v54 }
 0x2f9   :  { %v1440_v6 = vpack.c.bf16 %v1409_v40, %v1408_v10 }
 0x2fb   :  { %1597 = vmatmul.mubr.bf16.vlgmr.msra.gmra.mxu0 %v1440_v6 }
 0x2fc   :  { %1606 = vmatprep.mubr.bf16.mxu0 %v3858_v3 }
 0x2ff   :  { %v2366_v55 = vpop.f32.mrf.mxu0 }
 0x300   :  { %v1306_v4 = vadd.f32 %v2366_v55, %v3484_v2 }
 0x301   :  { %v1297_v35 = vpop.f32.mrf.mxu0 }
 0x302   :  { %v1298_v9 = vadd.f32 %v3484_v2, %v1297_v35  ;;  %v1414_v61 = vmax.f32 %v1306_v4, 0.0 }
 0x303   :  { %v2367_v50 = vpop.f32.mrf.mxu0  ;;  %1607 = vmatmul.mubr.bf16.gmra.mxu0 %v1441_v39 }
 0x304   :  { %1616 = vmatprep.mubr.bf16.mxu0 %v3858_v3  ;;  %v1412_v0 = vmax.f32 %v1298_v9, 0.0  ;;  %v1309_v59 = vadd.f32 %v2367_v50, %v3484_v2 }
 0x305   :  { %v1300_v15 = vpop.f32.mrf.mxu0 }
 0x306   :  { %v1301_v12 = vadd.f32 %v3484_v2, %v1300_v15  ;;  %v1415_v63 = vmax.f32 %v1309_v59, 0.0 }
 0x308   :  { %v1413_v58 = vmax.f32 %v1301_v12, 0.0  ;;  %v1443_v1 = vpack.c.bf16 %v1415_v63, %v1414_v61 }
 0x30a   :  { %v1442_v11 = vpack.c.bf16 %v1413_v58, %v1412_v0 }
 0x30c   :  { %1617 = vmatmul.mubr.bf16.gmra.mxu0 %v1442_v11 }
 0x30d   :  { %1626 = vmatprep.mubr.bf16.mxu0 %v3858_v3 }
 0x30e   :  { %v2370_v60 = vpop.f32.mrf.mxu0 }
 0x30f   :  { %v1322_v10 = vadd.f32 %v2370_v60, %v3484_v2 }
 0x310   :  { %v1313_v33 = vpop.f32.mrf.mxu0 }
 0x311   :  { %v1314_v41 = vadd.f32 %v3484_v2, %v1313_v33  ;;  %v1418_v6 = vmax.f32 %v1322_v10, 0.0 }
 0x312   :  { %v2371_v26 = vpop.f32.mrf.mxu0 }
 0x313   :  { %v1416_v14 = vmax.f32 %v1314_v41, 0.0  ;;  %v1325_v27 = vadd.f32 %v2371_v26, %v3484_v2 }
 0x314   :  { %1627 = vmatmul.mubr.bf16.gmra.mxu0 %v1443_v1  ;;  %v1316_v34 = vpop.f32.mrf.mxu0 }
 0x315   :  { %v1317_v62 = vadd.f32 %v3484_v2, %v1316_v34  ;;  %1636 = vmatprep.mubr.bf16.mxu0 %v3858_v3  ;;  %v1419_v40 = vmax.f32 %v1325_v27, 0.0 }
 0x317   :  { %v1417_v13 = vmax.f32 %v1317_v62, 0.0  ;;  %v1445_v21 = vpack.c.bf16 %v1419_v40, %v1418_v6 }
 0x319   :  { %v1444_v51 = vpack.c.bf16 %v1417_v13, %v1416_v14 }
 0x31c   :  { %1637 = vmatmul.mubr.bf16.gmra.mxu0 %v1444_v51 }
 0x31d   :  { %1646 = vmatprep.mubr.bf16.mxu0 %v3858_v3 }
 0x31f   :  { %v2374_v20 = vpop.f32.mrf.mxu0 }
 0x320   :  { %v1338_v0 = vadd.f32 %v2374_v20, %v3484_v2 }
 0x321   :  { %v1329_v32 = vpop.f32.mrf.mxu0 }
 0x322   :  { %v1330_v55 = vadd.f32 %v3484_v2, %v1329_v32  ;;  %v1422_v11 = vmax.f32 %v1338_v0, 0.0 }
 0x323   :  { %v2375_v54 = vpop.f32.mrf.mxu0 }
 0x324   :  { %1647 = vmatmul.mubr.bf16.gmra.mxu0 %v1445_v21  ;;  %v1420_v50 = vmax.f32 %v1330_v55, 0.0  ;;  %v1341_v15 = vadd.f32 %v2375_v54, %v3484_v2 }
 0x325   :  { %v1332_v39 = vpop.f32.mrf.mxu0  ;;  %1656 = vmatprep.mubr.bf16.mxu0 %v3858_v3 }
 0x326   :  { %v1333_v35 = vadd.f32 %v3484_v2, %v1332_v39  ;;  %v1423_v58 = vmax.f32 %v1341_v15, 0.0 }
 0x328   :  { %v1421_v9 = vmax.f32 %v1333_v35, 0.0  ;;  %v1447_v63 = vpack.c.bf16 %v1423_v58, %v1422_v11 }
 0x32a   :  { %v1446_v12 = vpack.c.bf16 %v1421_v9, %v1420_v50 }
 0x32c   :  { %1657 = vmatmul.mubr.bf16.gmra.mxu0 %v1446_v12 }
 0x32d   :  { %1666 = vmatprep.mubr.bf16.mxu0 %v3858_v3 }
 0x32e   :  { %v2378_v59 = vpop.f32.mrf.mxu0 }
 0x32f   :  { %v1354_v14 = vadd.f32 %v2378_v59, %v3484_v2 }
 0x330   :  { %v1345_v4 = vpop.f32.mrf.mxu0 }
 0x331   :  { %v1346_v61 = vadd.f32 %v3484_v2, %v1345_v4  ;;  %v1426_v27 = vmax.f32 %v1354_v14, 0.0 }
 0x332   :  { %v2379_v60 = vpop.f32.mrf.mxu0 }
 0x333   :  { %v1424_v26 = vmax.f32 %v1346_v61, 0.0  ;;  %v1357_v62 = vadd.f32 %v2379_v60, %v3484_v2 }
 0x334   :  { %1667 = vmatmul.mubr.bf16.gmra.mxu0 %v1447_v63  ;;  %v1348_v33 = vpop.f32.mrf.mxu0 }
 0x335   :  { %v1349_v1 = vadd.f32 %v3484_v2, %v1348_v33  ;;  %1676 = vmatprep.mubr.bf16.mxu0 %v3858_v3  ;;  %v1427_v13 = vmax.f32 %v1357_v62, 0.0 }
 0x337   :  { %v1425_v41 = vmax.f32 %v1349_v1, 0.0  ;;  %v1449_v40 = vpack.c.bf16 %v1427_v13, %v1426_v27 }
 0x339   :  { %v1448_v34 = vpack.c.bf16 %v1425_v41, %v1424_v26 }
 0x33c   :  { %1677 = vmatmul.mubr.bf16.gmra.mxu0 %v1448_v34 }
 0x33d   :  { %1686 = vmatprep.mubr.bf16.mxu0 %v3858_v3 }
 0x33f   :  { %v2382_v51 = vpop.f32.mrf.mxu0 }
 0x340   :  { %v1370_v50 = vadd.f32 %v2382_v51, %v3484_v2 }
 0x341   :  { %v1361_v10 = vpop.f32.mrf.mxu0 }
 0x342   :  { %v1362_v6 = vadd.f32 %v3484_v2, %v1361_v10  ;;  %v1430_v12 = vmax.f32 %v1370_v50, 0.0  ;;  %v1472_v50 = vld [vmem:[%s3842_s10] sm:$0x3]  ;;  %s2913_s10 = smov [#allocation13]  }
 0x343   :  { %v2383_v20 = vpop.f32.mrf.mxu0  ;;  %s2169_s21 = sshll.u32 %s2913_s10, 4  ;;  %s2170_s21 = int_to_ptr.vmem [resolvable:$true] %s2169_s21 }
 0x344   :  { %1687 = vmatmul.mubr.bf16.gmra.mxu0 %v1449_v40  ;;  %v1428_v54 = vmax.f32 %v1362_v6, 0.0  ;;  %v1373_v39 = vadd.f32 %v2383_v20, %v3484_v2  ;;  %s2848_s22 = scalar_lea.vmem %s2170_s21, 8192  ;;  %p2853_p3 = scmp.lt.s32.totalorder %s2170_s21, %s2170_s21 }
 0x345   :  { %v1364_v32 = vpop.f32.mrf.mxu0  ;;  %1696 = vmatprep.mubr.bf16.mxu0 %v3858_v3  ;;  %p2849_p2 = scmp.ne.s32.totalorder %s2170_s21, %s2848_s22  ;;  %p2854_p4 = scmp.lt.s32.totalorder %s2848_s22, %s2848_s22 }
 0x346   :  { %v1365_v21 = vadd.f32 %v3484_v2, %v1364_v32  ;;  %v1431_v9 = vmax.f32 %v1373_v39, 0.0 }
 0x347   :  { %p2855_p5 = por %p2854_p4, %p2853_p3 }
 0x348   :  { %v1429_v55 = vmax.f32 %v1365_v21, 0.0  ;;  %v1451_v58 = vpack.c.bf16 %v1431_v9, %v1430_v12  ;;  %v3537_v9 = vrot.slane %v1472_v50, %v3012_v5 }
 0x349   :  { %p2856_p6 = pnand %p2855_p5, %p2849_p2 }
 0x34a   :  { %v1450_v35 = vpack.c.bf16 %v1429_v55, %v1428_v54 }
 0x34c   :  { %1697 = vmatmul.mubr.bf16.gmra.mxu0 %v1450_v35 }
 0x34d   :  { %1706 = vmatprep.mubr.bf16.mxu0 %v3858_v3 }
 0x34e   :  { %v2386_v15 = vpop.f32.mrf.mxu0 }
 0x34f   :  { %v1386_v26 = vadd.f32 %v2386_v15, %v3484_v2 }
 0x350   :  { %v1377_v0 = vpop.f32.mrf.mxu0 }
 0x351   :  { %v1378_v11 = vadd.f32 %v3484_v2, %v1377_v0  ;;  %v1434_v62 = vmax.f32 %v1386_v26, 0.0 }
 0x352   :  { %v2387_v59 = vpop.f32.mrf.mxu0 }
 0x353   :  { %v1432_v60 = vmax.f32 %v1378_v11, 0.0  ;;  %v1389_v1 = vadd.f32 %v2387_v59, %v3484_v2 }
 0x354   :  { %1707 = vmatmul.mubr.bf16.gmra.mxu0 %v1451_v58  ;;  %v1380_v4 = vpop.f32.mrf.mxu0 }
 0x355   :  { %v1381_v63 = vadd.f32 %v3484_v2, %v1380_v4  ;;  %1716 = vmatprep.mubr.bf16.mxu0 %v3858_v3  ;;  %v1435_v41 = vmax.f32 %v1389_v1, 0.0 }
 0x357   :  { %v1433_v61 = vmax.f32 %v1381_v63, 0.0  ;;  %v1453_v13 = vpack.c.bf16 %v1435_v41, %v1434_v62 }
 0x359   :  { %v1452_v33 = vpack.c.bf16 %v1433_v61, %v1432_v60 }
 0x35c   :  { %1717 = vmatmul.mubr.bf16.gmra.mxu0 %v1452_v33 }
 0x35d   :  { %1726 = vmatprep.mubr.bf16.mxu0 %v3858_v3 }
 0x35f   :  { %v2390_v34 = vpop.f32.mrf.mxu0 }
 0x360   :  { %v1402_v54 = vadd.f32 %v2390_v34, %v3484_v2 }
 0x361   :  { %v1393_v14 = vpop.f32.mrf.mxu0 }
 0x362   :  { %v1394_v27 = vadd.f32 %v3484_v2, %v1393_v14  ;;  %v1438_v39 = vmax.f32 %v1402_v54, 0.0 }
 0x363   :  { %v2391_v51 = vpop.f32.mrf.mxu0 }
 0x364   :  { %1727 = vmatmul.mubr.bf16.gmra.mxu0 %v1453_v13  ;;  %v1436_v20 = vmax.f32 %v1394_v27, 0.0  ;;  %v1405_v32 = vadd.f32 %v2391_v51, %v3484_v2 }
 0x365   :  { %v1396_v10 = vpop.f32.mrf.mxu0  ;;  %1736 = vmatprep.mubr.bf16.mxu0 %v3858_v3 }
 0x366   :  { %v1397_v40 = vadd.f32 %v3484_v2, %v1396_v10  ;;  %v1439_v55 = vmax.f32 %v1405_v32, 0.0 }
 0x368   :  { %v1437_v6 = vmax.f32 %v1397_v40, 0.0  ;;  %v1455_v35 = vpack.c.bf16 %v1439_v55, %v1438_v39 }
 0x36a   :  { %v1454_v21 = vpack.c.bf16 %v1437_v6, %v1436_v20 }
 0x36c   :  { %1737 = vmatmul.mubr.bf16.gmra.mxu0 %v1454_v21  ;;  %v3557_v21 = vrot.slane %v1472_v50, %v3262_v36 }
 0x36d   :  { %1746 = vmatprep.mubr.bf16.mxu0 %v3858_v3 }
 0x374   :  { %1747 = vmatmul.mubr.bf16.gmra.mxu0 %v1455_v35 }
 0x3bb   :  { %v1598_v15 = vpop.f32.mrf.mxu0 }
 0x3bc   :  { %v1599_v12 = vadd.f32 %v1598_v15, %v3537_v9 }
 0x3bd   :  { %v1600_v0 = vpop.f32.mrf.mxu0 }
 0x3be   :  { %2600 = vtanh.f32 %v1599_v12 }
 0x3bf   :  { %v1602_v2 = vpop.f32.mrf.mxu0 }
 0x3c0   :  { %v1603_v58 = vadd.f32 %v1602_v2, %v3537_v9  ;;  %v1601_v2 = vadd.f32 %v1600_v0, %v3557_v21 }
 0x3c1   :  { %v1604_v3 = vpop.f32.mrf.mxu0 }
 0x3c2   :  { %2602 = vtanh.f32 %v1603_v58 }
 0x3c3   :  { %v1608_v59 = vpop.f32.mrf.mxu0 }
 0x3c4   :  { %v1609_v11 = vadd.f32 %v1608_v59, %v3537_v9 }
 0x3c5   :  { %v3542_v4 = vpop.f32.mrf.mxu0 }
 0x3c6   :  { %2604 = vtanh.f32 %v1609_v11 }
 0x3c7   :  { %v1612_v63 = vpop.f32.mrf.mxu0 }
 0x3c8   :  { %v1613_v5 = vadd.f32 %v1612_v63, %v3537_v9 }
 0x3c9   :  { %v3545_v60 = vpop.f32.mrf.mxu0 }
 0x3ca   :  { %2606 = vtanh.f32 %v1613_v5 }
 0x3cb   :  { %v2601_v61 = vpop.eup %2600 }
 0x3cc   :  { %v1789_v33 = vmul.f32 1.442695, %v2601_v61  ;;  %v1618_v1 = vpop.f32.mrf.mxu0  ;;  %1917 = vadd.xlane.f32.xlu0 %v2601_v61 }
 0x3cd   :  { %v1619_v26 = vadd.f32 %v1618_v1, %v3537_v9 }
 0x3ce   :  { %2608 = vpow2.f32 %v1789_v33  ;;  %v3548_v41 = vpop.f32.mrf.mxu0  ;;  %v1605_v33 = vadd.f32 %v1604_v3, %v3557_v21 }
 0x3cf   :  { %v2603_v34 = vpop.eup %2602  ;;  %2610 = vtanh.f32 %v1619_v26 }
 0x3d0   :  { %v1791_v62 = vmul.f32 1.442695, %v2603_v34  ;;  %v1622_v14 = vpop.f32.mrf.mxu0  ;;  %1919 = vadd.xlane.f32.xlu1 %v2603_v34 }
 0x3d1   :  { %v1623_v13 = vadd.f32 %v1622_v14, %v3537_v9 }
 0x3d2   :  { %2612 = vpow2.f32 %v1791_v62  ;;  %v3551_v51 = vpop.f32.mrf.mxu0 }
 0x3d3   :  { %v2605_v27 = vpop.eup %2604  ;;  %2614 = vtanh.f32 %v1623_v13 }
 0x3d4   :  { %v1793_v10 = vmul.f32 1.442695, %v2605_v27  ;;  %v1628_v40 = vpop.f32.mrf.mxu0  ;;  %1921 = vadd.xlane.f32.xlu0 %v2605_v27  ;;  %v1611_v27 = vadd.f32 %v3542_v4, %v3557_v21 }
 0x3d5   :  { %v1629_v20 = vadd.f32 %v1628_v40, %v3537_v9 }
 0x3d6   :  { %2616 = vpow2.f32 %v1793_v10  ;;  %v3554_v6 = vpop.f32.mrf.mxu0 }
 0x3d7   :  { %v2607_v32 = vpop.eup %2606  ;;  %2618 = vtanh.f32 %v1629_v20 }
 0x3d8   :  { %v1795_v54 = vmul.f32 1.442695, %v2607_v32  ;;  %v1632_v55 = vpop.f32.mrf.mxu0  ;;  %1923 = vadd.xlane.f32.xlu1 %v2607_v32 }
 0x3d9   :  { %v1633_v39 = vadd.f32 %v1632_v55, %v3537_v9 }
 0x3da   :  { %2620 = vpow2.f32 %v1795_v54  ;;  %v3560_v35 = vpop.f32.mrf.mxu0 }
 0x3db   :  { %v2609_v15 = vpop.eup %2608  ;;  %2622 = vtanh.f32 %v1633_v39  ;;  %v1615_v39 = vadd.f32 %v3545_v60, %v3557_v21  ;;  %v1621_v60 = vadd.f32 %v3548_v41, %v3557_v21 }
 0x3dc   :  { %v2611_v12 = vpop.eup %2610  ;;  %v1853_v58 = vmul.f32 %v2609_v15, %v3032_v16  ;;  %v1638_v59 = vpop.f32.mrf.mxu0 }
 0x3dd   :  { %v1797_v11 = vmul.f32 1.442695, %v2611_v12  ;;  %v1639_v36 = vadd.f32 %v1638_v59, %v3537_v9  ;;  %1925 = vadd.xlane.f32.xlu0 %v2611_v12 }
 0x3de   :  { %v1885_v50 = vadd.f32 %v1853_v58, %v1601_v2  ;;  %v3565_v63 = vpop.f32.mrf.mxu0 }
 0x3df   :  { %v2613_v5 = vpop.eup %2612  ;;  %2624 = vpow2.f32 %v1797_v11 }
 0x3e0   :  { %v2615_v61 = vpop.eup %2614  ;;  %2013 = vst [vmem:[#allocation13 + $0x8] sm:$0xff] %v1885_v50  ;;  %v1854_v1 = vmul.f32 %v2613_v5, %v3035_v17  ;;  %2626 = vtanh.f32 %v1639_v36  ;;  %v1642_v0 = vpop.f32.mrf.mxu0 }
 0x3e1   :  { %v1799_v26 = vmul.f32 1.442695, %v2615_v61  ;;  %v1643_v16 = vadd.f32 %v1642_v0, %v3537_v9  ;;  %1927 = vadd.xlane.f32.xlu0 %v2615_v61 }
 0x3e2   :  { %v1886_v34 = vadd.f32 %v1854_v1, %v1605_v33  ;;  %v3570_v62 = vpop.f32.mrf.mxu0 }
 0x3e3   :  { %v2617_v14 = vpop.eup %2616  ;;  %2628 = vpow2.f32 %v1799_v26 }
 0x3e4   :  { %v2619_v13 = vpop.eup %2618  ;;  %2014 = vst [vmem:[#allocation13 + $0x18] sm:$0xff] %v1886_v34  ;;  %v1855_v3 = vmul.f32 %v2617_v14, %v3044_v37  ;;  %2630 = vtanh.f32 %v1643_v16  ;;  %v1648_v17 = vpop.f32.mrf.mxu0  ;;  %v1625_v16 = vadd.f32 %v3551_v51, %v3557_v21 }
 0x3e5   :  { %v1801_v10 = vmul.f32 1.442695, %v2619_v13  ;;  %v1649_v40 = vadd.f32 %v1648_v17, %v3537_v9  ;;  %1929 = vadd.xlane.f32.xlu0 %v2619_v13 }
 0x3e6   :  { %v1887_v20 = vadd.f32 %v1855_v3, %v1611_v27  ;;  %v3576_v32 = vpop.f32.mrf.mxu0 }
 0x3e7   :  { %v2621_v54 = vpop.eup %2620  ;;  %2632 = vpow2.f32 %v1801_v10  ;;  %v1631_v10 = vadd.f32 %v3554_v6, %v3557_v21 }
 0x3e8   :  { %v2623_v55 = vpop.eup %2622  ;;  %2015 = vst [vmem:[#allocation13 + $0x28] sm:$0xff] %v1887_v20  ;;  %v1856_v4 = vmul.f32 %v2621_v54, %v3047_v38  ;;  %2634 = vtanh.f32 %v1649_v40  ;;  %v1652_v37 = vpop.f32.mrf.mxu0 }
 0x3e9   :  { %v1803_v15 = vmul.f32 1.442695, %v2623_v55  ;;  %v1653_v12 = vadd.f32 %v1652_v37, %v3537_v9  ;;  %1931 = vadd.xlane.f32.xlu0 %v2623_v55  ;;  %v1635_v37 = vadd.f32 %v3560_v35, %v3557_v21  ;;  %v1641_v35 = vadd.f32 %v3565_v63, %v3557_v21 }
 0x3ea   :  { %v1888_v2 = vadd.f32 %v1856_v4, %v1615_v39  ;;  %v3582_v58 = vpop.f32.mrf.mxu0 }
 0x3eb   :  { %2636 = vpow2.f32 %v1803_v15 }
 0x3ec   :  { %v2625_v59 = vpop.eup %2624  ;;  %2016 = vst [vmem:[#allocation13 + $0x38] sm:$0xff] %v1888_v2  ;;  %2638 = vtanh.f32 %v1653_v12  ;;  %v1658_v11 = vpop.f32.mrf.mxu0 }
 0x3ed   :  { %v2627_v36 = vpop.eup %2626  ;;  %v1857_v38 = vmul.f32 %v2625_v59, %v3052_v42  ;;  %v1659_v50 = vadd.f32 %v1658_v11, %v3537_v9 }
 0x3ee   :  { %v1805_v5 = vmul.f32 1.442695, %v2627_v36  ;;  %1933 = vadd.xlane.f32.xlu0 %v2627_v36  ;;  %v3588_v61 = vpop.f32.mrf.mxu0 }
 0x3ef   :  { %v1889_v33 = vadd.f32 %v1857_v38, %v1621_v60  ;;  %2640 = vtanh.f32 %v1659_v50 }
 0x3f0   :  { %v2629_v1 = vpop.eup %2628  ;;  %2642 = vpow2.f32 %v1805_v5  ;;  %v1662_v0 = vpop.f32.mrf.mxu0 }
 0x3f1   :  { %v2631_v26 = vpop.eup %2630  ;;  %2017 = vst [vmem:[#allocation13 + $0x48] sm:$0xff] %v1889_v33  ;;  %v1858_v41 = vmul.f32 %v2629_v1, %v3055_v43  ;;  %v1663_v42 = vadd.f32 %v1662_v0, %v3537_v9 }
 0x3f2   :  { %v1807_v34 = vmul.f32 1.442695, %v2631_v26  ;;  %1935 = vadd.xlane.f32.xlu0 %v2631_v26  ;;  %v3594_v14 = vpop.f32.mrf.mxu0 }
 0x3f3   :  { %v1890_v13 = vadd.f32 %v1858_v41, %v1625_v16  ;;  %2644 = vtanh.f32 %v1663_v42  ;;  %v1645_v41 = vadd.f32 %v3570_v62, %v3557_v21 }
 0x3f4   :  { %v2633_v27 = vpop.eup %2632  ;;  %2646 = vpow2.f32 %v1807_v34  ;;  %v1668_v3 = vpop.f32.mrf.mxu0 }
 0x3f5   :  { %v2635_v17 = vpop.eup %2634  ;;  %2018 = vst [vmem:[#allocation13 + $0x58] sm:$0xff] %v1890_v13  ;;  %v1859_v51 = vmul.f32 %v2633_v27, %v3088_v7  ;;  %v1669_v43 = vadd.f32 %v1668_v3, %v3537_v9 }
 0x3f6   :  { %v1809_v40 = vmul.f32 1.442695, %v2635_v17  ;;  %1937 = vadd.xlane.f32.xlu0 %v2635_v17  ;;  %v3600_v20 = vpop.f32.mrf.mxu0 }
 0x3f7   :  { %v1891_v54 = vadd.f32 %v1859_v51, %v1631_v10  ;;  %2648 = vtanh.f32 %v1669_v43  ;;  %v1651_v10 = vadd.f32 %v3576_v32, %v3557_v21 }
 0x3f8   :  { %v2637_v55 = vpop.eup %2636  ;;  %2650 = vpow2.f32 %v1809_v40  ;;  %v1672_v39 = vpop.f32.mrf.mxu0 }
 0x3f9   :  { %v2639_v4 = vpop.eup %2638  ;;  %2019 = vst [vmem:[#allocation13 + $0x68] sm:$0xff] %v1891_v54  ;;  %v1860_v6 = vmul.f32 %v2637_v55, %v3091_v8  ;;  %v1673_v7 = vadd.f32 %v1672_v39, %v3537_v9 }
 0x3fa   :  { %v1811_v15 = vmul.f32 1.442695, %v2639_v4  ;;  %1939 = vadd.xlane.f32.xlu0 %v2639_v4  ;;  %v3606_v12 = vpop.f32.mrf.mxu0  ;;  %v1655_v4 = vadd.f32 %v3582_v58, %v3557_v21 }
 0x3fb   :  { %v1892_v2 = vadd.f32 %v1860_v6, %v1635_v37  ;;  %2652 = vtanh.f32 %v1673_v7 }
 0x3fc   :  { %v2641_v59 = vpop.eup %2640  ;;  %2654 = vpow2.f32 %v1811_v15  ;;  %v1678_v11 = vpop.f32.mrf.mxu0 }
 0x3fd   :  { %v2643_v36 = vpop.eup %2642  ;;  %2020 = vst [vmem:[#allocation13 + $0x78] sm:$0xff] %v1892_v2  ;;  %v1813_v60 = vmul.f32 1.442695, %v2641_v59  ;;  %v1679_v38 = vadd.f32 %v1678_v11, %v3537_v9  ;;  %v1661_v2 = vadd.f32 %v3588_v61, %v3557_v21 }
 0x3fe   :  { %v1861_v8 = vmul.f32 %v2643_v36, %v3094_v18  ;;  %1941 = vadd.xlane.f32.xlu0 %v2641_v59  ;;  %v3612_v50 = vpop.f32.mrf.mxu0 }
 0x3ff   :  { %2656 = vpow2.f32 %v1813_v60 }
 0x400   :  { %v2645_v5 = vpop.eup %2644  ;;  %v1893_v33 = vadd.f32 %v1861_v8, %v1641_v35  ;;  %2658 = vtanh.f32 %v1679_v38  ;;  %v1682_v1 = vpop.f32.mrf.mxu0  ;;  %v1665_v8 = vadd.f32 %v3594_v14, %v3557_v21  ;;  %v1671_v14 = vadd.f32 %v3600_v20, %v3557_v21 }
 0x401   :  { %v2647_v0 = vpop.eup %2646  ;;  %v1815_v26 = vmul.f32 1.442695, %v2645_v5  ;;  %v1683_v16 = vadd.f32 %v1682_v1, %v3537_v9  ;;  %v3644_v1 = vpop.xlane.xlu0 %1096 }
 0x402   :  { %2021 = vst [vmem:[#allocation13 + $0x88] sm:$0xff] %v1893_v33  ;;  %v1862_v63 = vmul.f32 %v2647_v0, %v3097_v19  ;;  %1943 = vadd.xlane.f32.xlu0 %v2645_v5  ;;  %v3618_v18 = vpop.f32.mrf.mxu0 }
 0x403   :  { %2660 = vpow2.f32 %v1815_v26 }
 0x404   :  { %v2649_v42 = vpop.eup %2648  ;;  %v1894_v34 = vadd.f32 %v1862_v63, %v1645_v41  ;;  %2662 = vtanh.f32 %v1683_v16  ;;  %v1688_v13 = vpop.f32.mrf.mxu0 }
 0x405   :  { %v2651_v27 = vpop.eup %2650  ;;  %v1817_v3 = vmul.f32 1.442695, %v2649_v42  ;;  %v1689_v17 = vadd.f32 %v1688_v13, %v3537_v9  ;;  %v3652_v13 = vpop.xlane.xlu1 %1100 }
 0x406   :  { %2022 = vst [vmem:[#allocation13 + $0x98] sm:$0xff] %v1894_v34  ;;  %v1863_v62 = vmul.f32 %v2651_v27, %v3108_v28  ;;  %1945 = vadd.xlane.f32.xlu0 %v2649_v42  ;;  %v3624_v19 = vpop.f32.mrf.mxu0 }
 0x407   :  { %2664 = vpow2.f32 %v1817_v3 }
 0x408   :  { %v2653_v51 = vpop.eup %2652  ;;  %v1895_v43 = vadd.f32 %v1863_v62, %v1651_v10  ;;  %2666 = vtanh.f32 %v1689_v17  ;;  %v1692_v40 = vpop.f32.mrf.mxu0 }
 0x409   :  { %v2655_v54 = vpop.eup %2654  ;;  %v1819_v55 = vmul.f32 1.442695, %v2653_v51  ;;  %v1693_v39 = vadd.f32 %v1692_v40, %v3537_v9  ;;  %v3654_v62 = vpop.xlane.xlu0 %1098 }
 0x40a   :  { %2023 = vst [vmem:[#allocation13 + $0xa8] sm:$0xff] %v1895_v43  ;;  %v1864_v32 = vmul.f32 %v2655_v54, %v3111_v29  ;;  %1947 = vadd.xlane.f32.xlu0 %v2653_v51  ;;  %v3630_v28 = vpop.f32.mrf.mxu0 }
 0x40b   :  { %2668 = vpow2.f32 %v1819_v55 }
 0x40c   :  { %v2657_v37 = vpop.eup %2656  ;;  %v1896_v6 = vadd.f32 %v1864_v32, %v1655_v4  ;;  %2670 = vtanh.f32 %v1693_v39  ;;  %v1698_v7 = vpop.f32.mrf.mxu0 }
 0x40d   :  { %v2659_v15 = vpop.eup %2658  ;;  %v1865_v59 = vmul.f32 %v2657_v37, %v3114_v30  ;;  %v1699_v11 = vadd.f32 %v1698_v7, %v3537_v9  ;;  %v3662_v32 = vpop.xlane.xlu1 %1102 }
 0x40e   :  { %2024 = vst [vmem:[#allocation13 + $0xb8] sm:$0xff] %v1896_v6  ;;  %v1821_v58 = vmul.f32 1.442695, %v2659_v15  ;;  %1949 = vadd.xlane.f32.xlu0 %v2659_v15  ;;  %v3636_v29 = vpop.f32.mrf.mxu0  ;;  %v3664_v37 = vpop.xlane.xlu0 %1104  ;;  %v1681_v6 = vadd.f32 %v3612_v50, %v3557_v21 }
 0x40f   :  { %v1897_v36 = vadd.f32 %v1865_v59, %v1661_v2  ;;  %2672 = vtanh.f32 %v1699_v11 }
 0x410   :  { %v2661_v60 = vpop.eup %2660  ;;  %2674 = vpow2.f32 %v1821_v58  ;;  %v1702_v38 = vpop.f32.mrf.mxu0 }
 0x411   :  { %v2663_v35 = vpop.eup %2662  ;;  %2025 = vst [vmem:[#allocation13 + $0xc8] sm:$0xff] %v1897_v36  ;;  %v1866_v61 = vmul.f32 %v2661_v60, %v3117_v31  ;;  %v1703_v30 = vadd.f32 %v1702_v38, %v3537_v9  ;;  %v3672_v36 = vpop.xlane.xlu1 %1106 }
 0x412   :  { %v1823_v5 = vmul.f32 1.442695, %v2663_v35  ;;  %1951 = vadd.xlane.f32.xlu1 %v2663_v35  ;;  %v3642_v33 = vpop.f32.mrf.mxu0  ;;  %v3674_v60 = vpop.xlane.xlu0 %1108 }
 0x413   :  { %v1898_v0 = vadd.f32 %v1866_v61, %v1665_v8  ;;  %2676 = vtanh.f32 %v1703_v30 }
 0x414   :  { %v2665_v26 = vpop.eup %2664  ;;  %2678 = vpow2.f32 %v1823_v5  ;;  %v1708_v16 = vpop.f32.mrf.mxu0 }
 0x415   :  { %v2667_v41 = vpop.eup %2666  ;;  %2026 = vst [vmem:[#allocation13 + $0xd8] sm:$0xff] %v1898_v0  ;;  %v1867_v31 = vmul.f32 %v2665_v26, %v3128_v52  ;;  %v1709_v63 = vadd.f32 %v1708_v16, %v3537_v9  ;;  %v1675_v52 = vadd.f32 %v3606_v12, %v3557_v21  ;;  %v3682_v26 = vpop.xlane.xlu1 %1110 }
 0x416   :  { %v1825_v42 = vmul.f32 1.442695, %v2667_v41  ;;  %1953 = vadd.xlane.f32.xlu0 %v2667_v41  ;;  %v3650_v34 = vpop.f32.mrf.mxu0  ;;  %v3684_v16 = vpop.xlane.xlu0 %1112 }
 0x417   :  { %v1899_v27 = vadd.f32 %v1867_v31, %v1671_v14  ;;  %2680 = vtanh.f32 %v1709_v63 }
 0x418   :  { %v2669_v3 = vpop.eup %2668  ;;  %2682 = vpow2.f32 %v1825_v42  ;;  %v1712_v17 = vpop.f32.mrf.mxu0 }
 0x419   :  { %v2671_v10 = vpop.eup %2670  ;;  %2027 = vst [vmem:[#allocation13 + $0xe8] sm:$0xff] %v1899_v27  ;;  %v1868_v20 = vmul.f32 %v2669_v3, %v3131_v53  ;;  %v1713_v51 = vadd.f32 %v1712_v17, %v3537_v9  ;;  %v3692_v17 = vpop.xlane.xlu1 %1114 }
 0x41a   :  { %v1827_v43 = vmul.f32 1.442695, %v2671_v10  ;;  %1955 = vadd.xlane.f32.xlu1 %v2671_v10  ;;  %v3660_v40 = vpop.f32.mrf.mxu0  ;;  %v3694_v10 = vpop.xlane.xlu0 %1116 }
 0x41b   :  { %v1900_v54 = vadd.f32 %v1868_v20, %v1675_v52  ;;  %2684 = vtanh.f32 %v1713_v51 }
 0x41c   :  { %v2673_v55 = vpop.eup %2672  ;;  %2686 = vpow2.f32 %v1827_v43  ;;  %v1718_v39 = vpop.f32.mrf.mxu0 }
 0x41d   :  { %v2675_v4 = vpop.eup %2674  ;;  %2028 = vst [vmem:[#allocation13 + $0xf8] sm:$0xff] %v1900_v54  ;;  %v1829_v12 = vmul.f32 1.442695, %v2673_v55  ;;  %v1719_v53 = vadd.f32 %v1718_v39, %v3537_v9 }
 0x41e   :  { %v1869_v7 = vmul.f32 %v2675_v4, %v3134_v56  ;;  %1957 = vadd.xlane.f32.xlu1 %v2673_v55  ;;  %v3670_v15 = vpop.f32.mrf.mxu0  ;;  %v1685_v56 = vadd.f32 %v3618_v18, %v3557_v21  ;;  %v3702_v4 = vpop.xlane.xlu1 %1118 }
 0x41f   :  { %2688 = vpow2.f32 %v1829_v12  ;;  %v3704_v12 = vpop.xlane.xlu0 %1120 }
 0x420   :  { %v2677_v2 = vpop.eup %2676  ;;  %v1901_v59 = vadd.f32 %v1869_v7, %v1681_v6  ;;  %2690 = vtanh.f32 %v1719_v53  ;;  %v1722_v11 = vpop.f32.mrf.mxu0  ;;  %v1701_v53 = vadd.f32 %v3636_v29, %v3557_v21 }
 0x421   :  { %v2679_v58 = vpop.eup %2678  ;;  %v1831_v38 = vmul.f32 1.442695, %v2677_v2  ;;  %v1723_v35 = vadd.f32 %v1722_v11, %v3537_v9 }
 0x422   :  { %2029 = vst [vmem:[#allocation13 + $0x108] sm:$0xff] %v1901_v59  ;;  %v1870_v50 = vmul.f32 %v2679_v58, %v3137_v57  ;;  %1959 = vadd.xlane.f32.xlu1 %v2677_v2  ;;  %v3680_v8 = vpop.f32.mrf.mxu0  ;;  %v1691_v57 = vadd.f32 %v3624_v19, %v3557_v21 }
 0x423   :  { %2692 = vpow2.f32 %v1831_v38  ;;  %v3712_v38 = vpop.xlane.xlu1 %1122 }
 0x424   :  { %v2681_v61 = vpop.eup %2680  ;;  %v1902_v30 = vadd.f32 %v1870_v50, %v1685_v56  ;;  %2694 = vtanh.f32 %v1723_v35  ;;  %v1728_v5 = vpop.f32.mrf.mxu0 }
 0x425   :  { %v2683_v0 = vpop.eup %2682  ;;  %v1833_v41 = vmul.f32 1.442695, %v2681_v61  ;;  %v1729_v14 = vadd.f32 %v1728_v5, %v3537_v9  ;;  %v3714_v35 = vpop.xlane.xlu0 %1124 }
 0x426   :  { %2030 = vst [vmem:[#allocation13 + $0x118] sm:$0xff] %v1902_v30  ;;  %v1871_v18 = vmul.f32 %v2683_v0, %v3148_v22  ;;  %1961 = vadd.xlane.f32.xlu1 %v2681_v61  ;;  %v3690_v31 = vpop.f32.mrf.mxu0  ;;  %v1695_v22 = vadd.f32 %v3630_v28, %v3557_v21 }
 0x427   :  { %2696 = vpow2.f32 %v1833_v41 }
 0x428   :  { %v2685_v63 = vpop.eup %2684  ;;  %v1903_v42 = vadd.f32 %v1871_v18, %v1691_v57  ;;  %2698 = vtanh.f32 %v1729_v14  ;;  %v1732_v27 = vpop.f32.mrf.mxu0 }
 0x429   :  { %v2687_v3 = vpop.eup %2686  ;;  %v1835_v52 = vmul.f32 1.442695, %v2685_v63  ;;  %v1733_v20 = vadd.f32 %v1732_v27, %v3537_v9  ;;  %v3722_v14 = vpop.xlane.xlu1 %1126 }
 0x42a   :  { %2031 = vst [vmem:[#allocation13 + $0x128] sm:$0xff] %v1903_v42  ;;  %v1872_v19 = vmul.f32 %v2687_v3, %v3151_v23  ;;  %1963 = vadd.xlane.f32.xlu1 %v2685_v63  ;;  %v3700_v51 = vpop.f32.mrf.mxu0  ;;  %v3724_v57 = vpop.xlane.xlu0 %1128 }
 0x42b   :  { %2700 = vpow2.f32 %v1835_v52 }
 0x42c   :  { %v2689_v43 = vpop.eup %2688  ;;  %v1904_v54 = vadd.f32 %v1872_v19, %v1695_v22  ;;  %2702 = vtanh.f32 %v1733_v20  ;;  %v1738_v55 = vpop.f32.mrf.mxu0 }
 0x42d   :  { %v2691_v39 = vpop.eup %2690  ;;  %v1873_v28 = vmul.f32 %v2689_v43, %v3154_v24  ;;  %v1739_v23 = vadd.f32 %v1738_v55, %v3537_v9  ;;  %v1705_v24 = vadd.f32 %v3642_v33, %v3557_v21  ;;  %v3732_v22 = vpop.xlane.xlu1 %1130 }
 0x42e   :  { %2032 = vst [vmem:[#allocation13 + $0x138] sm:$0xff] %v1904_v54  ;;  %v1837_v6 = vmul.f32 1.442695, %v2691_v39  ;;  %1965 = vadd.xlane.f32.xlu1 %v2691_v39  ;;  %v3710_v7 = vpop.f32.mrf.mxu0  ;;  %v3734_v19 = vpop.xlane.xlu0 %1132 }
 0x42f   :  { %v1905_v2 = vadd.f32 %v1873_v28, %v1701_v53  ;;  %2704 = vtanh.f32 %v1739_v23 }
 0x430   :  { %v2693_v59 = vpop.eup %2692  ;;  %2706 = vpow2.f32 %v1837_v6  ;;  %v1742_v11 = vpop.f32.mrf.mxu0 }
 0x431   :  { %v2695_v58 = vpop.eup %2694  ;;  %2033 = vst [vmem:[#allocation13 + $0x148] sm:$0xff] %v1905_v2  ;;  %v1874_v29 = vmul.f32 %v2693_v59, %v3157_v25  ;;  %v1743_v56 = vadd.f32 %v1742_v11, %v3537_v9  ;;  %v1711_v25 = vadd.f32 %v3650_v34, %v3557_v21  ;;  %v3740_v28 = vpop.xlane.xlu1 %1134 }
 0x432   :  { %v1839_v50 = vmul.f32 1.442695, %v2695_v58  ;;  %1967 = vadd.xlane.f32.xlu1 %v2695_v58  ;;  %v3720_v61 = vpop.f32.mrf.mxu0  ;;  %v3742_v23 = vpop.xlane.xlu0 %1136 }
 0x433   :  { %v1906_v30 = vadd.f32 %v1874_v29, %v1705_v24  ;;  %2708 = vtanh.f32 %v1743_v56  ;;  %v1725_v29 = vadd.f32 %v3680_v8, %v3557_v21 }
 0x434   :  { %v2697_v5 = vpop.eup %2696  ;;  %2710 = vpow2.f32 %v1839_v50  ;;  %v1748_v0 = vpop.f32.mrf.mxu0 }
 0x435   :  { %v2699_v41 = vpop.eup %2698  ;;  %2034 = vst [vmem:[#allocation13 + $0x158] sm:$0xff] %v1906_v30  ;;  %v1875_v33 = vmul.f32 %v2697_v5, %v3168_v44  ;;  %v1749_v18 = vadd.f32 %v1748_v0, %v3537_v9  ;;  %v1715_v44 = vadd.f32 %v3660_v40, %v3557_v21  ;;  %v1721_v40 = vadd.f32 %v3670_v15, %v3557_v21  ;;  %v3747_v11 = vpop.xlane.xlu1 %1138 }
 0x436   :  { %v1841_v63 = vmul.f32 1.442695, %v2699_v41  ;;  %1969 = vadd.xlane.f32.xlu1 %v2699_v41  ;;  %v3730_v42 = vpop.f32.mrf.mxu0  ;;  %v3749_v58 = vpop.xlane.xlu0 %1140  ;;  %v1731_v41 = vadd.f32 %v3690_v31, %v3557_v21 }
 0x437   :  { %v1907_v27 = vadd.f32 %v1875_v33, %v1711_v25  ;;  %2712 = vtanh.f32 %v1749_v18 }
 0x438   :  { %v2701_v3 = vpop.eup %2700  ;;  %2714 = vpow2.f32 %v1841_v63  ;;  %v1752_v52 = vpop.f32.mrf.mxu0 }
 0x439   :  { %v2703_v20 = vpop.eup %2702  ;;  %2035 = vst [vmem:[#allocation13 + $0x168] sm:$0xff] %v1907_v27  ;;  %v1876_v34 = vmul.f32 %v2701_v3, %v3171_v45  ;;  %v1753_v43 = vadd.f32 %v1752_v52, %v3537_v9  ;;  %v3754_v30 = vpop.xlane.xlu1 %1142  ;;  %v1735_v3 = vadd.f32 %v3700_v51, %v3557_v21 }
 0x43a   :  { %v1843_v54 = vmul.f32 1.442695, %v2703_v20  ;;  %1971 = vadd.xlane.f32.xlu1 %v2703_v20  ;;  %v3756_v5 = vpop.xlane.xlu0 %1144 }
 0x43b   :  { %v1908_v55 = vadd.f32 %v1876_v34, %v1715_v44  ;;  %2716 = vtanh.f32 %v1753_v43  ;;  %v1741_v34 = vadd.f32 %v3710_v7, %v3557_v21  ;;  %v3859_v43 = vld [vmem:[#allocation23_spill] sm:$0xff]  ;;  %v1751_v7 = vadd.f32 %v3730_v42, %v3557_v21 }
 0x43c   :  { %v2705_v39 = vpop.eup %2704  ;;  %2718 = vpow2.f32 %v1843_v54 }
 0x43d   :  { %v2707_v53 = vpop.eup %2706  ;;  %2036 = vst [vmem:[#allocation13 + $0x178] sm:$0xff] %v1908_v55  ;;  %v1845_v6 = vmul.f32 1.442695, %v2705_v39  ;;  %v3761_v18 = vpop.xlane.xlu1 %1146 }
 0x43e   :  { %v1877_v45 = vmul.f32 %v2707_v53, %v3174_v46  ;;  %1973 = vadd.xlane.f32.xlu1 %v2705_v39  ;;  %v3763_v63 = vpop.xlane.xlu0 %1148 }
 0x43f   :  { %2720 = vpow2.f32 %v1845_v6  ;;  %v3860_v6 = vld [vmem:[#allocation24_spill] sm:$0xff] }
 0x440   :  { %v2709_v9 = vpop.eup %2708  ;;  %v1909_v2 = vadd.f32 %v1877_v45, %v1721_v40 }
 0x441   :  { %v2711_v59 = vpop.eup %2710  ;;  %v1847_v24 = vmul.f32 1.442695, %v2709_v9  ;;  %v3768_v20 = vpop.xlane.xlu1 %1150 }
 0x442   :  { %2037 = vst [vmem:[#allocation13 + $0x188] sm:$0xff] %v1909_v2  ;;  %v1878_v56 = vmul.f32 %v2711_v59, %v3177_v47  ;;  %1975 = vadd.xlane.f32.xlu1 %v2709_v9  ;;  %v3770_v44 = vpop.xlane.xlu0 %1152  ;;  %v3861_v59 = vld [vmem:[#allocation25_spill] sm:$0xff] }
 0x443   :  { %2722 = vpow2.f32 %v1847_v24 }
 0x444   :  { %v2713_v15 = vpop.eup %2712  ;;  %v1910_v46 = vadd.f32 %v1878_v56, %v1725_v29  ;;  %v1754_v56 = vpop.f32.mrf.mxu0 }
 0x445   :  { %v2715_v50 = vpop.eup %2714  ;;  %v1849_v0 = vmul.f32 1.442695, %v2713_v15  ;;  %v3775_v53 = vpop.xlane.xlu1 %1154 }
 0x446   :  { %2038 = vst [vmem:[#allocation13 + $0x198] sm:$0xff] %v1910_v46  ;;  %v1879_v25 = vmul.f32 %v2715_v50, %v3060_v48  ;;  %1977 = vadd.xlane.f32.xlu1 %v2713_v15  ;;  %v3777_v51 = vpop.xlane.xlu0 %1156 }
 0x447   :  { %2724 = vpow2.f32 %v1849_v0  ;;  %v3862_v0 = vld [vmem:[#allocation26_spill] sm:$0xff] }
 0x448   :  { %v2717_v8 = vpop.eup %2716  ;;  %v1911_v47 = vadd.f32 %v1879_v25, %v1731_v41 }
 0x449   :  { %v2719_v33 = vpop.eup %2718  ;;  %v1851_v27 = vmul.f32 1.442695, %v2717_v8  ;;  %v3782_v2 = vpop.xlane.xlu1 %1158 }
 0x44a   :  { %2039 = vst [vmem:[#allocation13 + $0x1a8] sm:$0xff] %v1911_v47  ;;  %v1880_v52 = vmul.f32 %v2719_v33, %v3063_v49  ;;  %1979 = vadd.xlane.f32.xlu1 %v2717_v8  ;;  %v1745_v49 = vadd.f32 %v3720_v61, %v3557_v21  ;;  %v1755_v61 = vadd.f32 %v1754_v56, %v3557_v21 }
 0x44b   :  { %2726 = vpow2.f32 %v1851_v27 }
 0x44c   :  { %v2721_v31 = vpop.eup %2720  ;;  %v1912_v48 = vadd.f32 %v1880_v52, %v1735_v3 }
 0x44d   :  { %v1881_v54 = vmul.f32 %v2721_v31, %v3859_v43 }
 0x44e   :  { %2040 = vst [vmem:[#allocation13 + $0x1b8] sm:$0xff] %v1912_v48 }
 0x44f   :  { %v1913_v55 = vadd.f32 %v1881_v54, %v1741_v34 }
 0x450   :  { %v2723_v39 = vpop.eup %2722 }
 0x451   :  { %2041 = vst [vmem:[#allocation13 + $0x1c8] sm:$0xff] %v1913_v55  ;;  %v1882_v40 = vmul.f32 %v2723_v39, %v3860_v6 }
 0x453   :  { %v1914_v45 = vadd.f32 %v1882_v40, %v1745_v49 }
 0x454   :  { %v2725_v9 = vpop.eup %2724 }
 0x455   :  { %2042 = vst [vmem:[#allocation13 + $0x1d8] sm:$0xff] %v1914_v45  ;;  %v1883_v24 = vmul.f32 %v2725_v9, %v3861_v59  ;;  %v1918_v29 = vpop.xlane.xlu0 %1917 }
 0x456   :  { %v2045_v15 = vadd.f32 %v1918_v29, %v3644_v1 }
 0x457   :  { %v1915_v46 = vadd.f32 %v1883_v24, %v1751_v7 }
 0x458   :  { %v2727_v50 = vpop.eup %2726  ;;  %2077 = vxpose.xlu0.b32.start [1/16] (narrow) %v2045_v15, 8 }
 0x459   :  { %2043 = vst [vmem:[#allocation13 + $0x1e8] sm:$0xff] %v1915_v46  ;;  %v1884_v41 = vmul.f32 %v2727_v50, %v3862_v0  ;;  %v1920_v25 = vpop.xlane.xlu1 %1919 }
 0x45a   :  { %v2046_v8 = vadd.f32 %v1920_v25, %v3654_v62 }
 0x45b   :  { %v1916_v47 = vadd.f32 %v1884_v41, %v1755_v61 }
 0x45c   :  { %2078 = vxpose.xlu0.b32.cont [2/16] (narrow) %v2046_v8, 8 }
 0x45d   :  { %2044 = vst [vmem:[#allocation13 + $0x1f8] sm:$0xff] %v1916_v47  ;;  %v1922_v42 = vpop.xlane.xlu0 %1921 }
 0x45e   :  { %v2047_v33 = vadd.f32 %v1922_v42, %v3652_v13 }
 0x460   :  { %2079 = vxpose.xlu0.b32.cont [3/16] (narrow) %v2047_v33, 8 }
 0x461   :  { %v1924_v27 = vpop.xlane.xlu1 %1923 }
 0x462   :  { %v2048_v1 = vadd.f32 %v1924_v27, %v3662_v32 }
 0x464   :  { %2080 = vxpose.xlu0.b32.cont [4/16] (narrow) %v2048_v1, 8 }
 0x466   :  { %v1926_v3 = vpop.xlane.xlu0 %1925 }
 0x467   :  { %v2049_v52 = vadd.f32 %v1926_v3, %v3664_v37 }
 0x469   :  { %2081 = vxpose.xlu0.b32.cont [5/16] (narrow) %v2049_v52, 8 }
 0x46a   :  { %v1928_v21 = vpop.xlane.xlu0 %1927 }
 0x46b   :  { %v2050_v31 = vadd.f32 %v1928_v21, %v3672_v36 }
 0x46d   :  { %2082 = vxpose.xlu0.b32.cont [6/16] (narrow) %v2050_v31, 8 }
 0x46e   :  { %v1930_v62 = vpop.xlane.xlu0 %1929 }
 0x46f   :  { %v2051_v48 = vadd.f32 %v1930_v62, %v3674_v60 }
 0x471   :  { %2083 = vxpose.xlu0.b32.cont [7/16] (narrow) %v2051_v48, 8 }
 0x472   :  { %v1932_v34 = vpop.xlane.xlu0 %1931 }
 0x473   :  { %v2052_v13 = vadd.f32 %v1932_v34, %v3682_v26 }
 0x475   :  { %2084 = vxpose.xlu0.b32.cont [8/16] (narrow) %v2052_v13, 8 }
 0x477   :  { %v1934_v43 = vpop.xlane.xlu0 %1933 }
 0x478   :  { %v2053_v32 = vadd.f32 %v1934_v43, %v3684_v16 }
 0x47a   :  { %2085 = vxpose.xlu0.b32.cont [9/16] (narrow) %v2053_v32, 8 }
 0x47b   :  { %v1936_v54 = vpop.xlane.xlu0 %1935 }
 0x47c   :  { %v2054_v37 = vadd.f32 %v1936_v54, %v3692_v17 }
 0x47e   :  { %2086 = vxpose.xlu0.b32.cont [10/16] (narrow) %v2054_v37, 8 }
 0x47f   :  { %v1938_v55 = vpop.xlane.xlu0 %1937 }
 0x480   :  { %v2055_v36 = vadd.f32 %v1938_v55, %v3694_v10 }
 0x482   :  { %2087 = vxpose.xlu0.b32.cont [11/16] (narrow) %v2055_v36, 8 }
 0x483   :  { %v1940_v39 = vpop.xlane.xlu0 %1939 }
 0x484   :  { %v2056_v60 = vadd.f32 %v1940_v39, %v3702_v4 }
 0x486   :  { %2088 = vxpose.xlu0.b32.cont [12/16] (narrow) %v2056_v60, 8 }
 0x487   :  { %v1942_v49 = vpop.xlane.xlu0 %1941 }
 0x488   :  { %v2057_v26 = vadd.f32 %v1942_v49, %v3704_v12 }
 0x48a   :  { %2089 = vxpose.xlu0.b32.cont [13/16] (narrow) %v2057_v26, 8 }
 0x48b   :  { %v1944_v6 = vpop.xlane.xlu0 %1943 }
 0x48c   :  { %v2058_v16 = vadd.f32 %v1944_v6, %v3712_v38 }
 0x48e   :  { %2090 = vxpose.xlu0.b32.cont [14/16] (narrow) %v2058_v16, 8 }
 0x48f   :  { %v1946_v40 = vpop.xlane.xlu0 %1945 }
 0x490   :  { %v2059_v17 = vadd.f32 %v1946_v40, %v3714_v35 }
 0x492   :  { %2091 = vxpose.xlu0.b32.cont [15/16] (narrow) %v2059_v17, 8 }
 0x493   :  { %v1948_v45 = vpop.xlane.xlu0 %1947 }
 0x494   :  { %v2060_v10 = vadd.f32 %v1948_v45, %v3722_v14 }
 0x496   :  { %2092 = vxpose.xlu0.b32.end [16/16] (narrow) %v2060_v10, 8 }
 0x497   :  { %v1950_v9 = vpop.xlane.xlu0 %1949 }
 0x498   :  { %v2061_v4 = vadd.f32 %v1950_v9, %v3724_v57 }
 0x49a   :  { %2109 = vxpose.xlu1.b32.start [1/16] (narrow) %v2061_v4, 8 }
 0x49b   :  { %v1952_v7 = vpop.xlane.xlu1 %1951 }
 0x49c   :  { %v2062_v12 = vadd.f32 %v1952_v7, %v3732_v22 }
 0x49e   :  { %2110 = vxpose.xlu1.b32.cont [2/16] (narrow) %v2062_v12, 8 }
 0x49f   :  { %2859 = shalt.err (!%p2856_p6)
}
 0x4a0   :  { %2175 = dma.vmem_to_hbm [thread:$0]  %s2170_s21, 8192, %s3843_s11, [#allocation4], %s2905_s17, %s2905_s17, %s2906_s18   ;;  %v1954_v38 = vpop.xlane.xlu0 %1953  ;;  %v2914_v33 = vmov 1966171168   ;;  %v3863_v3 = vld [vmem:[#allocation22_spill] sm:$0xff]  ;;  %v3864_v31 = vlaneseq }
 0x4a1   :  { %v2063_v35 = vadd.f32 %v1954_v38, %v3734_v19  ;;  %v2145_v27 = vunpack.c.l.s4 %v2914_v33  ;;  %s2915_s11 = smov [#allocation14]  }
 0x4a2   :  { %s2182_s17 = sshll.u32 %s2915_s11, 4  ;;  %vm2161_vm0 = vcmp.lt.s32.totalorder %v3864_v31, 256  ;;  %s2183_s17 = int_to_ptr.vmem [resolvable:$true] %s2182_s17 }
 0x4a3   :  { %2111 = vxpose.xlu1.b32.cont [3/16] (narrow) %v2063_v35, 8  ;;  %v1956_v14 = vpop.xlane.xlu1 %1955  ;;  %s2868_s18 = scalar_lea.vmem %s2183_s17, 32  ;;  %p2873_p8 = scmp.lt.s32.totalorder %s2183_s17, %s2183_s17 }
 0x4a4   :  { %v2064_v57 = vadd.f32 %v1956_v14, %v3740_v28  ;;  %p2869_p7 = scmp.ne.s32.totalorder %s2183_s17, %s2868_s18  ;;  %p2874_p9 = scmp.lt.s32.totalorder %s2868_s18, %s2868_s18 }
 0x4a6   :  { %p2875_p10 = por %p2874_p9, %p2873_p8 }
 0x4a7   :  { %2112 = vxpose.xlu1.b32.cont [4/16] (narrow) %v2064_v57, 8  ;;  %v1958_v22 = vpop.xlane.xlu1 %1957 }
 0x4a8   :  { %v2065_v59 = vadd.f32 %v1958_v22, %v3742_v23  ;;  %p2876_p11 = pnand %p2875_p10, %p2869_p7 }
 0x4ab   :  { %2113 = vxpose.xlu1.b32.cont [5/16] (narrow) %v2065_v59, 8  ;;  %v1960_v24 = vpop.xlane.xlu1 %1959 }
 0x4ac   :  { %v2066_v29 = vadd.f32 %v1960_v24, %v3747_v11 }
 0x4af   :  { %2114 = vxpose.xlu1.b32.cont [6/16] (narrow) %v2066_v29, 8  ;;  %v1962_v56 = vpop.xlane.xlu1 %1961 }
 0x4b0   :  { %v2067_v15 = vadd.f32 %v1962_v56, %v3749_v58 }
 0x4b3   :  { %2115 = vxpose.xlu1.b32.cont [7/16] (narrow) %v2067_v15, 8  ;;  %v1964_v46 = vpop.xlane.xlu1 %1963 }
 0x4b4   :  { %v2068_v19 = vadd.f32 %v1964_v46, %v3754_v30 }
 0x4b7   :  { %2116 = vxpose.xlu1.b32.cont [8/16] (narrow) %v2068_v19, 8  ;;  %v1966_v50 = vpop.xlane.xlu1 %1965 }
 0x4b8   :  { %v2069_v28 = vadd.f32 %v1966_v50, %v3756_v5 }
 0x4bb   :  { %2117 = vxpose.xlu1.b32.cont [9/16] (narrow) %v2069_v28, 8  ;;  %v1968_v61 = vpop.xlane.xlu1 %1967 }
 0x4bc   :  { %v2070_v23 = vadd.f32 %v1968_v61, %v3761_v18 }
 0x4bf   :  { %2118 = vxpose.xlu1.b32.cont [10/16] (narrow) %v2070_v23, 8  ;;  %v1970_v0 = vpop.xlane.xlu1 %1969 }
 0x4c0   :  { %v2071_v11 = vadd.f32 %v1970_v0, %v3763_v63 }
 0x4c3   :  { %2119 = vxpose.xlu1.b32.cont [11/16] (narrow) %v2071_v11, 8  ;;  %v1972_v41 = vpop.xlane.xlu1 %1971 }
 0x4c4   :  { %v2072_v58 = vadd.f32 %v1972_v41, %v3768_v20  ;;  %v2146_v20 = vunpack.c.0.s8 %v2145_v27 }
 0x4c6   :  { %v2149_v52 = vsub.s32 %v2146_v20, %v3863_v3 }
 0x4c7   :  { %2120 = vxpose.xlu1.b32.cont [12/16] (narrow) %v2072_v58, 8  ;;  %v1974_v25 = vpop.xlane.xlu1 %1973 }
 0x4c8   :  { %v2073_v30 = vadd.f32 %v1974_v25, %v3770_v44 }
 0x4cb   :  { %2121 = vxpose.xlu1.b32.cont [13/16] (narrow) %v2073_v30, 8  ;;  %v1976_v8 = vpop.xlane.xlu1 %1975 }
 0x4cc   :  { %v2074_v5 = vadd.f32 %v1976_v8, %v3775_v53 }
 0x4cf   :  { %2122 = vxpose.xlu1.b32.cont [14/16] (narrow) %v2074_v5, 8  ;;  %v1978_v47 = vpop.xlane.xlu1 %1977 }
 0x4d0   :  { %v2075_v18 = vadd.f32 %v1978_v47, %v3777_v51 }
 0x4d3   :  { %2123 = vxpose.xlu1.b32.cont [15/16] (narrow) %v2075_v18, 8  ;;  %v1980_v42 = vpop.xlane.xlu1 %1979 }
 0x4d4   :  { %v2076_v63 = vadd.f32 %v1980_v42, %v3782_v2 }
 0x4d6   :  { %v2093_v1 = vpop.trf.xlu0 }
 0x4d7   :  { %2124 = vxpose.xlu1.b32.end [16/16] (narrow) %v2076_v63, 8 }
 0x517   :  { %v2125_v44 = vpop.trf.xlu1 }
 0x518   :  { %v2143_v21 = vcombine.low %v2093_v1, %v2125_v44 }
 0x51a   :  { %v2150_v53 = vrot.slane %v2143_v21, %v2149_v52 }
 0x51c   :  { %v2157_v62 = vrot.slane %v2150_v53, %v2149_v52 }
 0x51e   :  { %2163 = vst.msk [vmem:[#allocation14] sm:$0x3] %vm2161_vm0, %v2157_v62 }
 0x51f   :  { %2879 = shalt.err (!%p2876_p11)
}
 0x520   :  { %2185 = dma.vmem_to_hbm [thread:$0]  %s2183_s17, 32, %s3844_s12, [#allocation15]  }
 0x521   :  { %2896 = dma.done.wait [#allocation4], 8192  }
 0x522   :  { %2897 = vsyncadd [#allocation4], 4294959104 }
 0x523   :  { %2898 = dma.done.wait [#allocation15], 32  }
 0x524   :  { %2899 = vsyncadd [#allocation15], 4294967264 }
 0x525   :  { %2192 = vsyncpa [#allocation3], 1 }
 0x526   :  { %2193 = vsyncpa [#allocation6], 1 }
 0x527   :  { %2194 = vsyncpa [#allocation9], 1 }
 0x528   :  { %2195 = vsyncpa [#allocation12], 1 }
 0x529   :  { %2196 = vsyncpa [#allocation4], 1 }
 0x52a   :  { %2197 = vsyncpa [#allocation15], 1 }

</bundles_post_ra>
